<compile_context>
chip_gen: v7x
topology: tpu7x:2x2x1
jax: 0.10.0
libtpu: 0.0.40
codegen_flags: <defaults>
</compile_context>

<pallas_src>
import numpy as np

import jax
import jax.numpy as jnp
from jax.experimental import pallas as pl
from jax.experimental.pallas import tpu as pltpu

_C = 32  # decoder channel width

# Fixed positional order of the fused kernel's inputs.
_ARG_ORDER = (
    # backbone pyramid, channel-major [Cin, H*W] f32
    "x1", "x2", "x3", "x4",
    # rfb*_1 : 1x1 conv (bf16, transposed [C, Cin]) + folded BN ([C,1] f32)
    "rfb1_wt", "rfb1_s", "rfb1_b",
    "rfb2_wt", "rfb2_s", "rfb2_b",
    "rfb3_wt", "rfb3_s", "rfb3_b",
    "rfb4_wt", "rfb4_s", "rfb4_b",
    # aggregation_mul 3x3 convs ([9, C, C] bf16, per-tap transposed) + BN
    "mul34_wt", "mul34_s", "mul34_b",
    "mul234_wt", "mul234_s", "mul234_b",
    # aggregation_mul shared residual 1x1-MLP (same weights used twice)
    "agg_w1t", "agg_b1", "agg_w2t", "agg_b2",
    # outer residual 1x1-MLP (self.conv)
    "out_w1t", "out_b1", "out_w2t", "out_b2",
    # conv1 (C -> 1)
    "c1_w", "c1_b",
    # precomputed spatial operators (f32)
    "UT43", "UT32", "UT21",   # transposed bilinear upsample operators
    "ST3", "ST2",             # transposed 3x3 shift operators [9, HW, HW]
    "EhT", "Ew",              # HW -> (H, W) un-flatten selectors (head level)
    "Mhf", "MwTf",            # final 2x bilinear row / col operators
)


# ----------------------------------------------------------------------------
# The single fused Pallas kernel.  Everything inside is 2-D channel-major:
# activations [C, HW], channel weights left-multiply, spatial operators
# right-multiply.  No reshapes / concats / pads inside the kernel.
# ----------------------------------------------------------------------------
def _decoder_kernel(*refs):
    out_ref = refs[-1]
    R = dict(zip(_ARG_ORDER, refs[:-1]))
    f32, bf16 = jnp.float32, jnp.bfloat16

    def rd(name):
        return R[name][...]

    def dot(a, b):
        return jnp.dot(a, b, preferred_element_type=f32)

    def pw_bn(x, w, s, b):
        # BasicConv2d(k=1): 1x1 conv (channel-major => left matmul) + folded BN.
        return dot(rd(w), x.astype(bf16)) * rd(s) + rd(b)

    def res_mlp(x, w1, b1, w2, b2):
        # x + Conv1x1(ReLU(Conv1x1(x)))
        h = jnp.maximum(dot(rd(w1), x.astype(bf16)) + rd(b1), 0.0)
        return x + dot(rd(w2), h.astype(bf16)) + rd(b2)

    def conv3x3_bn(m, w, st, s, b):
        # BasicConv2d(k=3, pad=1) on the (already formed) product m, BN folded.
        # y^T = sum_k (W_k^T @ m^T) @ S_k^T  -- 9 tiny matmuls, no im2col.
        w_ref, st_ref = R[w], R[st]
        mb = m.astype(bf16)
        acc = None
        for k in range(9):
            term = dot(dot(w_ref[k], mb), st_ref[k])
            acc = term if acc is None else acc + term
        return acc * rd(s) + rd(b)

    # ---- rfb 1x1 reductions (Cin -> 32) -------------------------------------
    x1r = pw_bn(rd("x1"), "rfb1_wt", "rfb1_s", "rfb1_b")   # [32, HW1]
    x2r = pw_bn(rd("x2"), "rfb2_wt", "rfb2_s", "rfb2_b")   # [32, HW2]
    x3r = pw_bn(rd("x3"), "rfb3_wt", "rfb3_s", "rfb3_b")   # [32, HW3]
    x4r = pw_bn(rd("x4"), "rfb4_wt", "rfb4_s", "rfb4_b")   # [32, HW4]

    # ---- aggregation_mul ----------------------------------------------------
    x4u  = dot(x4r, rd("UT43"))                            # 2x up (align_corners=True)
    x34  = conv3x3_bn(x3r * x4u, "mul34_wt", "ST3", "mul34_s", "mul34_b")
    x34  = res_mlp(x34, "agg_w1t", "agg_b1", "agg_w2t", "agg_b2")
    x34u = dot(x34, rd("UT32"))                            # 2x up (align_corners=True)
    x234 = conv3x3_bn(x2r * x34u, "mul234_wt", "ST2", "mul234_s", "mul234_b")
    ra5  = res_mlp(x234, "agg_w1t", "agg_b1", "agg_w2t", "agg_b2")   # [32, HW2]

    # ---- head ---------------------------------------------------------------
    ra5u = dot(ra5, rd("UT21"))                            # 4x up (align_corners=False)
    h = jnp.maximum(dot(rd("out_w1t"), (x1r * ra5u).astype(bf16)) + rd("out_b1"), 0.0)
    ra5h = ra5u + dot(rd("out_w2t"), h.astype(bf16)) + rd("out_b2")  # [32, HW1]

    # conv1 (32 -> 1) as a sublane (VPU/XLU) reduce; stays lane-dense [1, HW1].
    v = jnp.sum(ra5h * rd("c1_w"), axis=0, keepdims=True)

    # Un-flatten HW1 -> (H1, W1) via selector matmul, then separable 2x
    # bilinear upsample (align_corners=False).  The conv1 bias commutes with
    # the upsample (interp rows sum to 1), so it is added at the very end.
    out2d = dot(rd("EhT") * v, rd("Ew"))                   # [H1, W1]
    out_ref[...] = dot(dot(rd("Mhf"), out2d), rd("MwTf")) + rd("c1_b")


# ----------------------------------------------------------------------------
# pallas_call wrapper: one launch, everything resident in VMEM (no grid).
# ----------------------------------------------------------------------------
def _decoder_call(tensors, out_hw):
    inputs = [tensors[k] for k in _ARG_ORDER]
    return pl.pallas_call(
        _decoder_kernel,
        out_shape=jax.ShapeDtypeStruct(out_hw, jnp.float32),
        in_specs=[pl.BlockSpec(memory_space=pltpu.MemorySpace.VMEM)
                  for _ in inputs],
        out_specs=pl.BlockSpec(memory_space=pltpu.MemorySpace.VMEM),
        compiler_params=pltpu.CompilerParams(vmem_limit_bytes=32 * 1024 * 1024),
    )(*inputs)


def forward(params, ops, x1, x2, x3, x4):
    """pvtv2HDNet6_aggmul.forward downstream of the backbone (NCHW in / out)."""
    B = x1.shape[0]
    out_hw = (2 * x1.shape[2], 2 * x1.shape[3])
    outs = []
    for b in range(B):
        t = dict(params)
        t.update(ops)
        # NCHW -> channel-major [C, H*W] is a pure reshape (no transpose).
        t["x1"] = x1[b].reshape(x1.shape[1], -1).astype(jnp.float32)
        t["x2"] = x2[b].reshape(x2.shape[1], -1).astype(jnp.float32)
        t["x3"] = x3[b].reshape(x3.shape[1], -1).astype(jnp.float32)
        t["x4"] = x4[b].reshape(x4.shape[1], -1).astype(jnp.float32)
        outs.append(_decoder_call(t, out_hw)[None])        # [1, 2H1, 2W1]
    return jnp.stack(outs, axis=0)                         # [B, 1, 2H1, 2W1]


# ----------------------------------------------------------------------------
# Precomputed spatial operators (built once at init with numpy).
# ----------------------------------------------------------------------------
def _bilinear_matrix(in_size, out_size, align_corners):
    """Row interpolation matrix M s.t. out = M @ x (PyTorch bilinear rules)."""
    M = np.zeros((out_size, in_size), np.float32)
    for o in range(out_size):
        if align_corners:
            src = o * (in_size - 1) / max(out_size - 1, 1)
        else:
            src = max((o + 0.5) * (in_size / out_size) - 0.5, 0.0)
        i0 = min(int(np.floor(src)), in_size - 1)
        i1 = min(i0 + 1, in_size - 1)
        frac = src - i0
        M[o, i0] += 1.0 - frac
        M[o, i1] += frac
    return M


def _upsample_op_T(hi, wi, ho, wo, align_corners):
    """Transposed flattened-HW bilinear operator: y^T = x^T @ U^T."""
    U = np.kron(_bilinear_matrix(hi, ho, align_corners),
                _bilinear_matrix(wi, wo, align_corners))
    return jnp.asarray(U.T)


def _shift_ops_T(h, w):
    """Transposed 0/1 shift operators for a 3x3/pad-1 conv, tap order (kh, kw)."""
    mats = []
    for kh in range(3):
        for kw in range(3):
            dh, dw = kh - 1, kw - 1
            S = np.zeros((h * w, h * w), np.float32)
            for i in range(h):
                for j in range(w):
                    ii, jj = i + dh, j + dw
                    if 0 <= ii < h and 0 <= jj < w:
                        S[i * w + j, ii * w + jj] = 1.0
            mats.append(S.T)
    return jnp.asarray(np.stack(mats))


def make_operators(h1, w1, h2, w2, h3, w3, h4, w4):
    assert (h3, w3) == (2 * h4, 2 * w4)
    assert (h2, w2) == (2 * h3, 2 * w3)
    assert (h1, w1) == (4 * h2, 4 * w2)
    ops = {
        "UT43": _upsample_op_T(h4, w4, h3, w3, True),
        "UT32": _upsample_op_T(h3, w3, h2, w2, True),
        "UT21": _upsample_op_T(h2, w2, h1, w1, False),
        "ST3": _shift_ops_T(h3, w3),
        "ST2": _shift_ops_T(h2, w2),
    }
    p = np.arange(h1 * w1)
    Eh = (p[:, None] // w1 == np.arange(h1)[None, :]).astype(np.float32)
    Ew = (p[:, None] % w1 == np.arange(w1)[None, :]).astype(np.float32)
    ops["EhT"] = jnp.asarray(Eh.T)                       # [H1, H1*W1]
    ops["Ew"] = jnp.asarray(Ew)                          # [H1*W1, W1]
    ops["Mhf"] = jnp.asarray(_bilinear_matrix(h1, 2 * h1, False))
    ops["MwTf"] = jnp.asarray(_bilinear_matrix(w1, 2 * w1, False).T)
    return ops


# ----------------------------------------------------------------------------
# Deterministic synthetic parameters (BN folded, channel-major weight layout).
# ----------------------------------------------------------------------------
def _fold_bn(key, c, eps=1e-5):
    kg, kb, km, kv = jax.random.split(key, 4)
    gamma = 1.0 + 0.1 * jax.random.normal(kg, (c,), jnp.float32)
    beta = 0.1 * jax.random.normal(kb, (c,), jnp.float32)
    mean = 0.1 * jax.random.normal(km, (c,), jnp.float32)
    var = 0.5 + jax.random.uniform(kv, (c,), jnp.float32)
    scale = gamma / jnp.sqrt(var + eps)
    bias = beta - mean * scale
    return scale.reshape(c, 1), bias.reshape(c, 1)


def init_params(key, channel=_C):
    bf16 = jnp.bfloat16
    ks = iter(jax.random.split(key, 32))
    p = {}
    for name, cin in (("rfb1", 64), ("rfb2", 128), ("rfb3", 320), ("rfb4", 512)):
        w = jax.random.normal(next(ks), (cin, channel), jnp.float32) / np.sqrt(cin)
        p[name + "_wt"] = w.T.astype(bf16)                        # [C, Cin]
        p[name + "_s"], p[name + "_b"] = _fold_bn(next(ks), channel)
    for name in ("mul34", "mul234"):
        w = jax.random.normal(next(ks), (3, 3, channel, channel), jnp.float32)
        w = w / np.sqrt(9.0 * channel)
        wt = jnp.transpose(w.reshape(9, channel, channel), (0, 2, 1))  # [9,Cout,Cin]
        p[name + "_wt"] = wt.astype(bf16)
        p[name + "_s"], p[name + "_b"] = _fold_bn(next(ks), channel)

    def lin(cin, cout):
        w = jax.random.normal(next(ks), (cin, cout), jnp.float32) / np.sqrt(cin)
        b = 0.1 * jax.random.normal(next(ks), (cout,), jnp.float32)
        return w.T.astype(bf16), b.reshape(cout, 1)

    p["agg_w1t"], p["agg_b1"] = lin(channel, channel)
    p["agg_w2t"], p["agg_b2"] = lin(channel, channel)
    p["out_w1t"], p["out_b1"] = lin(channel, channel)
    p["out_w2t"], p["out_b2"] = lin(channel, channel)
    p["c1_w"] = jax.random.normal(next(ks), (channel, 1), jnp.float32) / np.sqrt(channel)
    p["c1_b"] = 0.1 * jax.random.normal(next(ks), (1, 1), jnp.float32)
    return p


# ----------------------------------------------------------------------------
# Pure-JAX reference mirroring the fused kernel math (same bf16 casts).
# ----------------------------------------------------------------------------
def reference_forward(params, ops, x1, x2, x3, x4):
    f32, bf16 = jnp.float32, jnp.bfloat16
    p, o = params, ops

    def dot(a, b):
        return jnp.dot(a, b, preferred_element_type=f32,
                       precision=jax.lax.Precision.HIGHEST)

    def pw_bn(x, w, s, b):
        return dot(p[w], x.astype(bf16)) * p[s] + p[b]

    def res_mlp(x, w1, b1, w2, b2):
        h = jnp.maximum(dot(p[w1], x.astype(bf16)) + p[b1], 0.0)
        return x + dot(p[w2], h.astype(bf16)) + p[b2]

    def conv3x3_bn(m, w, st, s, b):
        mb = m.astype(bf16)
        acc = sum(dot(dot(p[w][k], mb), o[st][k]) for k in range(9))
        return acc * p[s] + p[b]

    def single(x1b, x2b, x3b, x4b):
        x1r = pw_bn(x1b, "rfb1_wt", "rfb1_s", "rfb1_b")
        x2r = pw_bn(x2b, "rfb2_wt", "rfb2_s", "rfb2_b")
        x3r = pw_bn(x3b, "rfb3_wt", "rfb3_s", "rfb3_b")
        x4r = pw_bn(x4b, "rfb4_wt", "rfb4_s", "rfb4_b")
        x4u = dot(x4r, o["UT43"])
        x34 = conv3x3_bn(x3r * x4u, "mul34_wt", "ST3", "mul34_s", "mul34_b")
        x34 = res_mlp(x34, "agg_w1t", "agg_b1", "agg_w2t", "agg_b2")
        x34u = dot(x34, o["UT32"])
        x234 = conv3x3_bn(x2r * x34u, "mul234_wt", "ST2", "mul234_s", "mul234_b")
        ra5 = res_mlp(x234, "agg_w1t", "agg_b1", "agg_w2t", "agg_b2")
        ra5u = dot(ra5, o["UT21"])
        h = jnp.maximum(dot(p["out_w1t"], (x1r * ra5u).astype(bf16)) + p["out_b1"], 0.0)
        ra5h = ra5u + dot(p["out_w2t"], h.astype(bf16)) + p["out_b2"]
        v = jnp.sum(ra5h * p["c1_w"], axis=0, keepdims=True)
        out2d = dot(o["EhT"] * v, o["Ew"])
        return dot(dot(o["Mhf"], out2d), o["MwTf"]) + p["c1_b"]

    outs = [single(x1[b].reshape(x1.shape[1], -1), x2[b].reshape(x2.shape[1], -1),
                   x3[b].reshape(x3.shape[1], -1), x4[b].reshape(x4.shape[1], -1))[None]
            for b in range(x1.shape[0])]
    return jnp.stack(outs, axis=0)


# ----------------------------------------------------------------------------
if __name__ == "__main__":
    key = jax.random.PRNGKey(0)
    k1, k2, k3, k4 = jax.random.split(key, 4)
    B = 1
    # Synthetic backbone pyramid (trans_fusion_cnn1 outputs); x1 sized so the
    # x1_rfb * upsample4x(ra5) product is shape-consistent.
    x1 = jax.random.normal(k1, (B, 64, 32, 32), jnp.float32)
    x2 = jax.random.normal(k2, (B, 128, 8, 8), jnp.float32)
    x3 = jax.random.normal(k3, (B, 320, 4, 4), jnp.float32)
    x4 = jax.random.normal(k4, (B, 512, 2, 2), jnp.float32)

    params = init_params(jax.random.PRNGKey(1))
    ops = make_operators(x1.shape[2], x1.shape[3], x2.shape[2], x2.shape[3],
                         x3.shape[2], x3.shape[3], x4.shape[2], x4.shape[3])

    out = jax.block_until_ready(jax.jit(forward)(params, ops, x1, x2, x3, x4))
    assert out.shape == (B, 1, 64, 64), out.shape
    assert bool(jnp.all(jnp.isfinite(out)))

    # Sanity check against a pure-JAX mirror of the same (bf16-cast) math.
    ref = reference_forward(params, ops, x1, x2, x3, x4)
    rel_err = float(jnp.max(jnp.abs(out - ref)) / (jnp.max(jnp.abs(ref)) + 1e-6))
    assert rel_err < 5e-2, rel_err

    print("KERNEL_OK")
</pallas_src>

<mosaic_0001>
module attributes {stable_mosaic.version = 11 : i64} {
  func.func @_decoder_kernel(%arg0: memref<64x1024xf32, #tpu.memory_space<vmem>>, %arg1: memref<128x64xf32, #tpu.memory_space<vmem>>, %arg2: memref<320x16xf32, #tpu.memory_space<vmem>>, %arg3: memref<512x4xf32, #tpu.memory_space<vmem>>, %arg4: memref<32x64xbf16, #tpu.memory_space<vmem>>, %arg5: memref<32x1xf32, #tpu.memory_space<vmem>>, %arg6: memref<32x1xf32, #tpu.memory_space<vmem>>, %arg7: memref<32x128xbf16, #tpu.memory_space<vmem>>, %arg8: memref<32x1xf32, #tpu.memory_space<vmem>>, %arg9: memref<32x1xf32, #tpu.memory_space<vmem>>, %arg10: memref<32x320xbf16, #tpu.memory_space<vmem>>, %arg11: memref<32x1xf32, #tpu.memory_space<vmem>>, %arg12: memref<32x1xf32, #tpu.memory_space<vmem>>, %arg13: memref<32x512xbf16, #tpu.memory_space<vmem>>, %arg14: memref<32x1xf32, #tpu.memory_space<vmem>>, %arg15: memref<32x1xf32, #tpu.memory_space<vmem>>, %arg16: memref<9x32x32xbf16, #tpu.memory_space<vmem>>, %arg17: memref<32x1xf32, #tpu.memory_space<vmem>>, %arg18: memref<32x1xf32, #tpu.memory_space<vmem>>, %arg19: memref<9x32x32xbf16, #tpu.memory_space<vmem>>, %arg20: memref<32x1xf32, #tpu.memory_space<vmem>>, %arg21: memref<32x1xf32, #tpu.memory_space<vmem>>, %arg22: memref<32x32xbf16, #tpu.memory_space<vmem>>, %arg23: memref<32x1xf32, #tpu.memory_space<vmem>>, %arg24: memref<32x32xbf16, #tpu.memory_space<vmem>>, %arg25: memref<32x1xf32, #tpu.memory_space<vmem>>, %arg26: memref<32x32xbf16, #tpu.memory_space<vmem>>, %arg27: memref<32x1xf32, #tpu.memory_space<vmem>>, %arg28: memref<32x32xbf16, #tpu.memory_space<vmem>>, %arg29: memref<32x1xf32, #tpu.memory_space<vmem>>, %arg30: memref<32x1xf32, #tpu.memory_space<vmem>>, %arg31: memref<1x1xf32, #tpu.memory_space<vmem>>, %arg32: memref<4x16xf32, #tpu.memory_space<vmem>>, %arg33: memref<16x64xf32, #tpu.memory_space<vmem>>, %arg34: memref<64x1024xf32, #tpu.memory_space<vmem>>, %arg35: memref<9x16x16xf32, #tpu.memory_space<vmem>>, %arg36: memref<9x64x64xf32, #tpu.memory_space<vmem>>, %arg37: memref<32x1024xf32, #tpu.memory_space<vmem>>, %arg38: memref<1024x32xf32, #tpu.memory_space<vmem>>, %arg39: memref<64x32xf32, #tpu.memory_space<vmem>>, %arg40: memref<32x64xf32, #tpu.memory_space<vmem>>, %arg41: memref<64x64xf32, #tpu.memory_space<vmem>>) attributes {dimension_semantics = [], scalar_prefetch = 0 : i64, scratch_operands = 0 : i64, tpu.core_type = #tpu.core_type<tc>} {
    %c0 = arith.constant 0 : index
    %c0_0 = arith.constant 0 : index
    %0 = vector.load %arg0[%c0, %c0_0] : memref<64x1024xf32, #tpu.memory_space<vmem>>, vector<64x1024xf32>
    %c0_1 = arith.constant 0 : index
    %c0_2 = arith.constant 0 : index
    %1 = vector.load %arg4[%c0_1, %c0_2] : memref<32x64xbf16, #tpu.memory_space<vmem>>, vector<32x64xbf16>
    %2 = arith.truncf %0 : vector<64x1024xf32> to vector<64x1024xbf16>
    %cst = arith.constant dense<0.000000e+00> : vector<32x1024xf32>
    %3 = tpu.matmul %1, %2, %cst {dimension_numbers = #tpu.dot_dimension_numbers<[1], [0], [0], [1], [0, 0, 1, 1], [], []>} : vector<32x64xbf16>, vector<64x1024xbf16>, vector<32x1024xf32> -> vector<32x1024xf32>
    %c0_3 = arith.constant 0 : index
    %c0_4 = arith.constant 0 : index
    %4 = vector.load %arg5[%c0_3, %c0_4] : memref<32x1xf32, #tpu.memory_space<vmem>>, vector<32x1xf32>
    %5 = vector.broadcast %4 : vector<32x1xf32> to vector<32x1024xf32>
    %6 = arith.mulf %3, %5 : vector<32x1024xf32>
    %c0_5 = arith.constant 0 : index
    %c0_6 = arith.constant 0 : index
    %7 = vector.load %arg6[%c0_5, %c0_6] : memref<32x1xf32, #tpu.memory_space<vmem>>, vector<32x1xf32>
    %8 = vector.broadcast %7 : vector<32x1xf32> to vector<32x1024xf32>
    %9 = arith.addf %6, %8 : vector<32x1024xf32>
    %c0_7 = arith.constant 0 : index
    %c0_8 = arith.constant 0 : index
    %10 = vector.load %arg1[%c0_7, %c0_8] : memref<128x64xf32, #tpu.memory_space<vmem>>, vector<128x64xf32>
    %c0_9 = arith.constant 0 : index
    %c0_10 = arith.constant 0 : index
    %11 = vector.load %arg7[%c0_9, %c0_10] : memref<32x128xbf16, #tpu.memory_space<vmem>>, vector<32x128xbf16>
    %12 = arith.truncf %10 : vector<128x64xf32> to vector<128x64xbf16>
    %cst_11 = arith.constant dense<0.000000e+00> : vector<32x64xf32>
    %13 = tpu.matmul %11, %12, %cst_11 {dimension_numbers = #tpu.dot_dimension_numbers<[1], [0], [0], [1], [0, 0, 1, 1], [], []>} : vector<32x128xbf16>, vector<128x64xbf16>, vector<32x64xf32> -> vector<32x64xf32>
    %c0_12 = arith.constant 0 : index
    %c0_13 = arith.constant 0 : index
    %14 = vector.load %arg8[%c0_12, %c0_13] : memref<32x1xf32, #tpu.memory_space<vmem>>, vector<32x1xf32>
    %15 = vector.broadcast %14 : vector<32x1xf32> to vector<32x64xf32>
    %16 = arith.mulf %13, %15 : vector<32x64xf32>
    %c0_14 = arith.constant 0 : index
    %c0_15 = arith.constant 0 : index
    %17 = vector.load %arg9[%c0_14, %c0_15] : memref<32x1xf32, #tpu.memory_space<vmem>>, vector<32x1xf32>
    %18 = vector.broadcast %17 : vector<32x1xf32> to vector<32x64xf32>
    %19 = arith.addf %16, %18 : vector<32x64xf32>
    %c0_16 = arith.constant 0 : index
    %c0_17 = arith.constant 0 : index
    %20 = vector.load %arg2[%c0_16, %c0_17] : memref<320x16xf32, #tpu.memory_space<vmem>>, vector<320x16xf32>
    %c0_18 = arith.constant 0 : index
    %c0_19 = arith.constant 0 : index
    %21 = vector.load %arg10[%c0_18, %c0_19] : memref<32x320xbf16, #tpu.memory_space<vmem>>, vector<32x320xbf16>
    %22 = arith.truncf %20 : vector<320x16xf32> to vector<320x16xbf16>
    %cst_20 = arith.constant dense<0.000000e+00> : vector<32x16xf32>
    %23 = tpu.matmul %21, %22, %cst_20 {dimension_numbers = #tpu.dot_dimension_numbers<[1], [0], [0], [1], [0, 0, 1, 1], [], []>} : vector<32x320xbf16>, vector<320x16xbf16>, vector<32x16xf32> -> vector<32x16xf32>
    %c0_21 = arith.constant 0 : index
    %c0_22 = arith.constant 0 : index
    %24 = vector.load %arg11[%c0_21, %c0_22] : memref<32x1xf32, #tpu.memory_space<vmem>>, vector<32x1xf32>
    %25 = vector.broadcast %24 : vector<32x1xf32> to vector<32x16xf32>
    %26 = arith.mulf %23, %25 : vector<32x16xf32>
    %c0_23 = arith.constant 0 : index
    %c0_24 = arith.constant 0 : index
    %27 = vector.load %arg12[%c0_23, %c0_24] : memref<32x1xf32, #tpu.memory_space<vmem>>, vector<32x1xf32>
    %28 = vector.broadcast %27 : vector<32x1xf32> to vector<32x16xf32>
    %29 = arith.addf %26, %28 : vector<32x16xf32>
    %c0_25 = arith.constant 0 : index
    %c0_26 = arith.constant 0 : index
    %30 = vector.load %arg3[%c0_25, %c0_26] : memref<512x4xf32, #tpu.memory_space<vmem>>, vector<512x4xf32>
    %c0_27 = arith.constant 0 : index
    %c0_28 = arith.constant 0 : index
    %31 = vector.load %arg13[%c0_27, %c0_28] : memref<32x512xbf16, #tpu.memory_space<vmem>>, vector<32x512xbf16>
    %32 = arith.truncf %30 : vector<512x4xf32> to vector<512x4xbf16>
    %cst_29 = arith.constant dense<0.000000e+00> : vector<32x4xf32>
    %33 = tpu.matmul %31, %32, %cst_29 {dimension_numbers = #tpu.dot_dimension_numbers<[1], [0], [0], [1], [0, 0, 1, 1], [], []>} : vector<32x512xbf16>, vector<512x4xbf16>, vector<32x4xf32> -> vector<32x4xf32>
    %c0_30 = arith.constant 0 : index
    %c0_31 = arith.constant 0 : index
    %34 = vector.load %arg14[%c0_30, %c0_31] : memref<32x1xf32, #tpu.memory_space<vmem>>, vector<32x1xf32>
    %35 = vector.broadcast %34 : vector<32x1xf32> to vector<32x4xf32>
    %36 = arith.mulf %33, %35 : vector<32x4xf32>
    %c0_32 = arith.constant 0 : index
    %c0_33 = arith.constant 0 : index
    %37 = vector.load %arg15[%c0_32, %c0_33] : memref<32x1xf32, #tpu.memory_space<vmem>>, vector<32x1xf32>
    %38 = vector.broadcast %37 : vector<32x1xf32> to vector<32x4xf32>
    %39 = arith.addf %36, %38 : vector<32x4xf32>
    %c0_34 = arith.constant 0 : index
    %c0_35 = arith.constant 0 : index
    %40 = vector.load %arg32[%c0_34, %c0_35] : memref<4x16xf32, #tpu.memory_space<vmem>>, vector<4x16xf32>
    %cst_36 = arith.constant dense<0.000000e+00> : vector<32x16xf32>
    %41 = tpu.matmul %39, %40, %cst_36 {dimension_numbers = #tpu.dot_dimension_numbers<[1], [0], [0], [1], [0, 0, 1, 1], [], []>} : vector<32x4xf32>, vector<4x16xf32>, vector<32x16xf32> -> vector<32x16xf32>
    %42 = arith.mulf %29, %41 : vector<32x16xf32>
    %43 = arith.truncf %42 : vector<32x16xf32> to vector<32x16xbf16>
    %c0_37 = arith.constant 0 : index
    %c0_38 = arith.constant 0 : index
    %c0_39 = arith.constant 0 : index
    %44 = vector.load %arg16[%c0_37, %c0_38, %c0_39] : memref<9x32x32xbf16, #tpu.memory_space<vmem>>, vector<1x32x32xbf16>
    %45 = vector.shape_cast %44 : vector<1x32x32xbf16> to vector<32x32xbf16>
    %cst_40 = arith.constant dense<0.000000e+00> : vector<32x16xf32>
    %46 = tpu.matmul %45, %43, %cst_40 {dimension_numbers = #tpu.dot_dimension_numbers<[1], [0], [0], [1], [0, 0, 1, 1], [], []>} : vector<32x32xbf16>, vector<32x16xbf16>, vector<32x16xf32> -> vector<32x16xf32>
    %c0_41 = arith.constant 0 : index
    %c0_42 = arith.constant 0 : index
    %c0_43 = arith.constant 0 : index
    %47 = vector.load %arg35[%c0_41, %c0_42, %c0_43] : memref<9x16x16xf32, #tpu.memory_space<vmem>>, vector<1x16x16xf32>
    %48 = vector.shape_cast %47 : vector<1x16x16xf32> to vector<16x16xf32>
    %cst_44 = arith.constant dense<0.000000e+00> : vector<32x16xf32>
    %49 = tpu.matmul %46, %48, %cst_44 {dimension_numbers = #tpu.dot_dimension_numbers<[1], [0], [0], [1], [0, 0, 1, 1], [], []>} : vector<32x16xf32>, vector<16x16xf32>, vector<32x16xf32> -> vector<32x16xf32>
    %c1 = arith.constant 1 : index
    %c0_45 = arith.constant 0 : index
    %c0_46 = arith.constant 0 : index
    %50 = vector.load %arg16[%c1, %c0_45, %c0_46] : memref<9x32x32xbf16, #tpu.memory_space<vmem>>, vector<1x32x32xbf16>
    %51 = vector.shape_cast %50 : vector<1x32x32xbf16> to vector<32x32xbf16>
    %cst_47 = arith.constant dense<0.000000e+00> : vector<32x16xf32>
    %52 = tpu.matmul %51, %43, %cst_47 {dimension_numbers = #tpu.dot_dimension_numbers<[1], [0], [0], [1], [0, 0, 1, 1], [], []>} : vector<32x32xbf16>, vector<32x16xbf16>, vector<32x16xf32> -> vector<32x16xf32>
    %c1_48 = arith.constant 1 : index
    %c0_49 = arith.constant 0 : index
    %c0_50 = arith.constant 0 : index
    %53 = vector.load %arg35[%c1_48, %c0_49, %c0_50] : memref<9x16x16xf32, #tpu.memory_space<vmem>>, vector<1x16x16xf32>
    %54 = vector.shape_cast %53 : vector<1x16x16xf32> to vector<16x16xf32>
    %cst_51 = arith.constant dense<0.000000e+00> : vector<32x16xf32>
    %55 = tpu.matmul %52, %54, %cst_51 {dimension_numbers = #tpu.dot_dimension_numbers<[1], [0], [0], [1], [0, 0, 1, 1], [], []>} : vector<32x16xf32>, vector<16x16xf32>, vector<32x16xf32> -> vector<32x16xf32>
    %56 = arith.addf %49, %55 : vector<32x16xf32>
    %c2 = arith.constant 2 : index
    %c0_52 = arith.constant 0 : index
    %c0_53 = arith.constant 0 : index
    %57 = vector.load %arg16[%c2, %c0_52, %c0_53] : memref<9x32x32xbf16, #tpu.memory_space<vmem>>, vector<1x32x32xbf16>
    %58 = vector.shape_cast %57 : vector<1x32x32xbf16> to vector<32x32xbf16>
    %cst_54 = arith.constant dense<0.000000e+00> : vector<32x16xf32>
    %59 = tpu.matmul %58, %43, %cst_54 {dimension_numbers = #tpu.dot_dimension_numbers<[1], [0], [0], [1], [0, 0, 1, 1], [], []>} : vector<32x32xbf16>, vector<32x16xbf16>, vector<32x16xf32> -> vector<32x16xf32>
    %c2_55 = arith.constant 2 : index
    %c0_56 = arith.constant 0 : index
    %c0_57 = arith.constant 0 : index
    %60 = vector.load %arg35[%c2_55, %c0_56, %c0_57] : memref<9x16x16xf32, #tpu.memory_space<vmem>>, vector<1x16x16xf32>
    %61 = vector.shape_cast %60 : vector<1x16x16xf32> to vector<16x16xf32>
    %cst_58 = arith.constant dense<0.000000e+00> : vector<32x16xf32>
    %62 = tpu.matmul %59, %61, %cst_58 {dimension_numbers = #tpu.dot_dimension_numbers<[1], [0], [0], [1], [0, 0, 1, 1], [], []>} : vector<32x16xf32>, vector<16x16xf32>, vector<32x16xf32> -> vector<32x16xf32>
    %63 = arith.addf %56, %62 : vector<32x16xf32>
    %c3 = arith.constant 3 : index
    %c0_59 = arith.constant 0 : index
    %c0_60 = arith.constant 0 : index
    %64 = vector.load %arg16[%c3, %c0_59, %c0_60] : memref<9x32x32xbf16, #tpu.memory_space<vmem>>, vector<1x32x32xbf16>
    %65 = vector.shape_cast %64 : vector<1x32x32xbf16> to vector<32x32xbf16>
    %cst_61 = arith.constant dense<0.000000e+00> : vector<32x16xf32>
    %66 = tpu.matmul %65, %43, %cst_61 {dimension_numbers = #tpu.dot_dimension_numbers<[1], [0], [0], [1], [0, 0, 1, 1], [], []>} : vector<32x32xbf16>, vector<32x16xbf16>, vector<32x16xf32> -> vector<32x16xf32>
    %c3_62 = arith.constant 3 : index
    %c0_63 = arith.constant 0 : index
    %c0_64 = arith.constant 0 : index
    %67 = vector.load %arg35[%c3_62, %c0_63, %c0_64] : memref<9x16x16xf32, #tpu.memory_space<vmem>>, vector<1x16x16xf32>
    %68 = vector.shape_cast %67 : vector<1x16x16xf32> to vector<16x16xf32>
    %cst_65 = arith.constant dense<0.000000e+00> : vector<32x16xf32>
    %69 = tpu.matmul %66, %68, %cst_65 {dimension_numbers = #tpu.dot_dimension_numbers<[1], [0], [0], [1], [0, 0, 1, 1], [], []>} : vector<32x16xf32>, vector<16x16xf32>, vector<32x16xf32> -> vector<32x16xf32>
    %70 = arith.addf %63, %69 : vector<32x16xf32>
    %c4 = arith.constant 4 : index
    %c0_66 = arith.constant 0 : index
    %c0_67 = arith.constant 0 : index
    %71 = vector.load %arg16[%c4, %c0_66, %c0_67] : memref<9x32x32xbf16, #tpu.memory_space<vmem>>, vector<1x32x32xbf16>
    %72 = vector.shape_cast %71 : vector<1x32x32xbf16> to vector<32x32xbf16>
    %cst_68 = arith.constant dense<0.000000e+00> : vector<32x16xf32>
    %73 = tpu.matmul %72, %43, %cst_68 {dimension_numbers = #tpu.dot_dimension_numbers<[1], [0], [0], [1], [0, 0, 1, 1], [], []>} : vector<32x32xbf16>, vector<32x16xbf16>, vector<32x16xf32> -> vector<32x16xf32>
    %c4_69 = arith.constant 4 : index
    %c0_70 = arith.constant 0 : index
    %c0_71 = arith.constant 0 : index
    %74 = vector.load %arg35[%c4_69, %c0_70, %c0_71] : memref<9x16x16xf32, #tpu.memory_space<vmem>>, vector<1x16x16xf32>
    %75 = vector.shape_cast %74 : vector<1x16x16xf32> to vector<16x16xf32>
    %cst_72 = arith.constant dense<0.000000e+00> : vector<32x16xf32>
    %76 = tpu.matmul %73, %75, %cst_72 {dimension_numbers = #tpu.dot_dimension_numbers<[1], [0], [0], [1], [0, 0, 1, 1], [], []>} : vector<32x16xf32>, vector<16x16xf32>, vector<32x16xf32> -> vector<32x16xf32>
    %77 = arith.addf %70, %76 : vector<32x16xf32>
    %c5 = arith.constant 5 : index
    %c0_73 = arith.constant 0 : index
    %c0_74 = arith.constant 0 : index
    %78 = vector.load %arg16[%c5, %c0_73, %c0_74] : memref<9x32x32xbf16, #tpu.memory_space<vmem>>, vector<1x32x32xbf16>
    %79 = vector.shape_cast %78 : vector<1x32x32xbf16> to vector<32x32xbf16>
    %cst_75 = arith.constant dense<0.000000e+00> : vector<32x16xf32>
    %80 = tpu.matmul %79, %43, %cst_75 {dimension_numbers = #tpu.dot_dimension_numbers<[1], [0], [0], [1], [0, 0, 1, 1], [], []>} : vector<32x32xbf16>, vector<32x16xbf16>, vector<32x16xf32> -> vector<32x16xf32>
    %c5_76 = arith.constant 5 : index
    %c0_77 = arith.constant 0 : index
    %c0_78 = arith.constant 0 : index
    %81 = vector.load %arg35[%c5_76, %c0_77, %c0_78] : memref<9x16x16xf32, #tpu.memory_space<vmem>>, vector<1x16x16xf32>
    %82 = vector.shape_cast %81 : vector<1x16x16xf32> to vector<16x16xf32>
    %cst_79 = arith.constant dense<0.000000e+00> : vector<32x16xf32>
    %83 = tpu.matmul %80, %82, %cst_79 {dimension_numbers = #tpu.dot_dimension_numbers<[1], [0], [0], [1], [0, 0, 1, 1], [], []>} : vector<32x16xf32>, vector<16x16xf32>, vector<32x16xf32> -> vector<32x16xf32>
    %84 = arith.addf %77, %83 : vector<32x16xf32>
    %c6 = arith.constant 6 : index
    %c0_80 = arith.constant 0 : index
    %c0_81 = arith.constant 0 : index
    %85 = vector.load %arg16[%c6, %c0_80, %c0_81] : memref<9x32x32xbf16, #tpu.memory_space<vmem>>, vector<1x32x32xbf16>
    %86 = vector.shape_cast %85 : vector<1x32x32xbf16> to vector<32x32xbf16>
    %cst_82 = arith.constant dense<0.000000e+00> : vector<32x16xf32>
    %87 = tpu.matmul %86, %43, %cst_82 {dimension_numbers = #tpu.dot_dimension_numbers<[1], [0], [0], [1], [0, 0, 1, 1], [], []>} : vector<32x32xbf16>, vector<32x16xbf16>, vector<32x16xf32> -> vector<32x16xf32>
    %c6_83 = arith.constant 6 : index
    %c0_84 = arith.constant 0 : index
    %c0_85 = arith.constant 0 : index
    %88 = vector.load %arg35[%c6_83, %c0_84, %c0_85] : memref<9x16x16xf32, #tpu.memory_space<vmem>>, vector<1x16x16xf32>
    %89 = vector.shape_cast %88 : vector<1x16x16xf32> to vector<16x16xf32>
    %cst_86 = arith.constant dense<0.000000e+00> : vector<32x16xf32>
    %90 = tpu.matmul %87, %89, %cst_86 {dimension_numbers = #tpu.dot_dimension_numbers<[1], [0], [0], [1], [0, 0, 1, 1], [], []>} : vector<32x16xf32>, vector<16x16xf32>, vector<32x16xf32> -> vector<32x16xf32>
    %91 = arith.addf %84, %90 : vector<32x16xf32>
    %c7 = arith.constant 7 : index
    %c0_87 = arith.constant 0 : index
    %c0_88 = arith.constant 0 : index
    %92 = vector.load %arg16[%c7, %c0_87, %c0_88] : memref<9x32x32xbf16, #tpu.memory_space<vmem>>, vector<1x32x32xbf16>
    %93 = vector.shape_cast %92 : vector<1x32x32xbf16> to vector<32x32xbf16>
    %cst_89 = arith.constant dense<0.000000e+00> : vector<32x16xf32>
    %94 = tpu.matmul %93, %43, %cst_89 {dimension_numbers = #tpu.dot_dimension_numbers<[1], [0], [0], [1], [0, 0, 1, 1], [], []>} : vector<32x32xbf16>, vector<32x16xbf16>, vector<32x16xf32> -> vector<32x16xf32>
    %c7_90 = arith.constant 7 : index
    %c0_91 = arith.constant 0 : index
    %c0_92 = arith.constant 0 : index
    %95 = vector.load %arg35[%c7_90, %c0_91, %c0_92] : memref<9x16x16xf32, #tpu.memory_space<vmem>>, vector<1x16x16xf32>
    %96 = vector.shape_cast %95 : vector<1x16x16xf32> to vector<16x16xf32>
    %cst_93 = arith.constant dense<0.000000e+00> : vector<32x16xf32>
    %97 = tpu.matmul %94, %96, %cst_93 {dimension_numbers = #tpu.dot_dimension_numbers<[1], [0], [0], [1], [0, 0, 1, 1], [], []>} : vector<32x16xf32>, vector<16x16xf32>, vector<32x16xf32> -> vector<32x16xf32>
    %98 = arith.addf %91, %97 : vector<32x16xf32>
    %c8 = arith.constant 8 : index
    %c0_94 = arith.constant 0 : index
    %c0_95 = arith.constant 0 : index
    %99 = vector.load %arg16[%c8, %c0_94, %c0_95] : memref<9x32x32xbf16, #tpu.memory_space<vmem>>, vector<1x32x32xbf16>
    %100 = vector.shape_cast %99 : vector<1x32x32xbf16> to vector<32x32xbf16>
    %cst_96 = arith.constant dense<0.000000e+00> : vector<32x16xf32>
    %101 = tpu.matmul %100, %43, %cst_96 {dimension_numbers = #tpu.dot_dimension_numbers<[1], [0], [0], [1], [0, 0, 1, 1], [], []>} : vector<32x32xbf16>, vector<32x16xbf16>, vector<32x16xf32> -> vector<32x16xf32>
    %c8_97 = arith.constant 8 : index
    %c0_98 = arith.constant 0 : index
    %c0_99 = arith.constant 0 : index
    %102 = vector.load %arg35[%c8_97, %c0_98, %c0_99] : memref<9x16x16xf32, #tpu.memory_space<vmem>>, vector<1x16x16xf32>
    %103 = vector.shape_cast %102 : vector<1x16x16xf32> to vector<16x16xf32>
    %cst_100 = arith.constant dense<0.000000e+00> : vector<32x16xf32>
    %104 = tpu.matmul %101, %103, %cst_100 {dimension_numbers = #tpu.dot_dimension_numbers<[1], [0], [0], [1], [0, 0, 1, 1], [], []>} : vector<32x16xf32>, vector<16x16xf32>, vector<32x16xf32> -> vector<32x16xf32>
    %105 = arith.addf %98, %104 : vector<32x16xf32>
    %c0_101 = arith.constant 0 : index
    %c0_102 = arith.constant 0 : index
    %106 = vector.load %arg17[%c0_101, %c0_102] : memref<32x1xf32, #tpu.memory_space<vmem>>, vector<32x1xf32>
    %107 = vector.broadcast %106 : vector<32x1xf32> to vector<32x16xf32>
    %108 = arith.mulf %105, %107 : vector<32x16xf32>
    %c0_103 = arith.constant 0 : index
    %c0_104 = arith.constant 0 : index
    %109 = vector.load %arg18[%c0_103, %c0_104] : memref<32x1xf32, #tpu.memory_space<vmem>>, vector<32x1xf32>
    %110 = vector.broadcast %109 : vector<32x1xf32> to vector<32x16xf32>
    %111 = arith.addf %108, %110 : vector<32x16xf32>
    %c0_105 = arith.constant 0 : index
    %c0_106 = arith.constant 0 : index
    %112 = vector.load %arg22[%c0_105, %c0_106] : memref<32x32xbf16, #tpu.memory_space<vmem>>, vector<32x32xbf16>
    %113 = arith.truncf %111 : vector<32x16xf32> to vector<32x16xbf16>
    %cst_107 = arith.constant dense<0.000000e+00> : vector<32x16xf32>
    %114 = tpu.matmul %112, %113, %cst_107 {dimension_numbers = #tpu.dot_dimension_numbers<[1], [0], [0], [1], [0, 0, 1, 1], [], []>} : vector<32x32xbf16>, vector<32x16xbf16>, vector<32x16xf32> -> vector<32x16xf32>
    %c0_108 = arith.constant 0 : index
    %c0_109 = arith.constant 0 : index
    %115 = vector.load %arg23[%c0_108, %c0_109] : memref<32x1xf32, #tpu.memory_space<vmem>>, vector<32x1xf32>
    %116 = vector.broadcast %115 : vector<32x1xf32> to vector<32x16xf32>
    %117 = arith.addf %114, %116 : vector<32x16xf32>
    %cst_110 = arith.constant 0.000000e+00 : f32
    %118 = vector.broadcast %cst_110 : f32 to vector<32x16xf32>
    %119 = arith.maximumf %117, %118 : vector<32x16xf32>
    %c0_111 = arith.constant 0 : index
    %c0_112 = arith.constant 0 : index
    %120 = vector.load %arg24[%c0_111, %c0_112] : memref<32x32xbf16, #tpu.memory_space<vmem>>, vector<32x32xbf16>
    %121 = arith.truncf %119 : vector<32x16xf32> to vector<32x16xbf16>
    %cst_113 = arith.constant dense<0.000000e+00> : vector<32x16xf32>
    %122 = tpu.matmul %120, %121, %cst_113 {dimension_numbers = #tpu.dot_dimension_numbers<[1], [0], [0], [1], [0, 0, 1, 1], [], []>} : vector<32x32xbf16>, vector<32x16xbf16>, vector<32x16xf32> -> vector<32x16xf32>
    %123 = arith.addf %111, %122 : vector<32x16xf32>
    %c0_114 = arith.constant 0 : index
    %c0_115 = arith.constant 0 : index
    %124 = vector.load %arg25[%c0_114, %c0_115] : memref<32x1xf32, #tpu.memory_space<vmem>>, vector<32x1xf32>
    %125 = vector.broadcast %124 : vector<32x1xf32> to vector<32x16xf32>
    %126 = arith.addf %123, %125 : vector<32x16xf32>
    %c0_116 = arith.constant 0 : index
    %c0_117 = arith.constant 0 : index
    %127 = vector.load %arg33[%c0_116, %c0_117] : memref<16x64xf32, #tpu.memory_space<vmem>>, vector<16x64xf32>
    %cst_118 = arith.constant dense<0.000000e+00> : vector<32x64xf32>
    %128 = tpu.matmul %126, %127, %cst_118 {dimension_numbers = #tpu.dot_dimension_numbers<[1], [0], [0], [1], [0, 0, 1, 1], [], []>} : vector<32x16xf32>, vector<16x64xf32>, vector<32x64xf32> -> vector<32x64xf32>
    %129 = arith.mulf %19, %128 : vector<32x64xf32>
    %130 = arith.truncf %129 : vector<32x64xf32> to vector<32x64xbf16>
    %c0_119 = arith.constant 0 : index
    %c0_120 = arith.constant 0 : index
    %c0_121 = arith.constant 0 : index
    %131 = vector.load %arg19[%c0_119, %c0_120, %c0_121] : memref<9x32x32xbf16, #tpu.memory_space<vmem>>, vector<1x32x32xbf16>
    %132 = vector.shape_cast %131 : vector<1x32x32xbf16> to vector<32x32xbf16>
    %cst_122 = arith.constant dense<0.000000e+00> : vector<32x64xf32>
    %133 = tpu.matmul %132, %130, %cst_122 {dimension_numbers = #tpu.dot_dimension_numbers<[1], [0], [0], [1], [0, 0, 1, 1], [], []>} : vector<32x32xbf16>, vector<32x64xbf16>, vector<32x64xf32> -> vector<32x64xf32>
    %c0_123 = arith.constant 0 : index
    %c0_124 = arith.constant 0 : index
    %c0_125 = arith.constant 0 : index
    %134 = vector.load %arg36[%c0_123, %c0_124, %c0_125] : memref<9x64x64xf32, #tpu.memory_space<vmem>>, vector<1x64x64xf32>
    %135 = vector.shape_cast %134 : vector<1x64x64xf32> to vector<64x64xf32>
    %cst_126 = arith.constant dense<0.000000e+00> : vector<32x64xf32>
    %136 = tpu.matmul %133, %135, %cst_126 {dimension_numbers = #tpu.dot_dimension_numbers<[1], [0], [0], [1], [0, 0, 1, 1], [], []>} : vector<32x64xf32>, vector<64x64xf32>, vector<32x64xf32> -> vector<32x64xf32>
    %c1_127 = arith.constant 1 : index
    %c0_128 = arith.constant 0 : index
    %c0_129 = arith.constant 0 : index
    %137 = vector.load %arg19[%c1_127, %c0_128, %c0_129] : memref<9x32x32xbf16, #tpu.memory_space<vmem>>, vector<1x32x32xbf16>
    %138 = vector.shape_cast %137 : vector<1x32x32xbf16> to vector<32x32xbf16>
    %cst_130 = arith.constant dense<0.000000e+00> : vector<32x64xf32>
    %139 = tpu.matmul %138, %130, %cst_130 {dimension_numbers = #tpu.dot_dimension_numbers<[1], [0], [0], [1], [0, 0, 1, 1], [], []>} : vector<32x32xbf16>, vector<32x64xbf16>, vector<32x64xf32> -> vector<32x64xf32>
    %c1_131 = arith.constant 1 : index
    %c0_132 = arith.constant 0 : index
    %c0_133 = arith.constant 0 : index
    %140 = vector.load %arg36[%c1_131, %c0_132, %c0_133] : memref<9x64x64xf32, #tpu.memory_space<vmem>>, vector<1x64x64xf32>
    %141 = vector.shape_cast %140 : vector<1x64x64xf32> to vector<64x64xf32>
    %cst_134 = arith.constant dense<0.000000e+00> : vector<32x64xf32>
    %142 = tpu.matmul %139, %141, %cst_134 {dimension_numbers = #tpu.dot_dimension_numbers<[1], [0], [0], [1], [0, 0, 1, 1], [], []>} : vector<32x64xf32>, vector<64x64xf32>, vector<32x64xf32> -> vector<32x64xf32>
    %143 = arith.addf %136, %142 : vector<32x64xf32>
    %c2_135 = arith.constant 2 : index
    %c0_136 = arith.constant 0 : index
    %c0_137 = arith.constant 0 : index
    %144 = vector.load %arg19[%c2_135, %c0_136, %c0_137] : memref<9x32x32xbf16, #tpu.memory_space<vmem>>, vector<1x32x32xbf16>
    %145 = vector.shape_cast %144 : vector<1x32x32xbf16> to vector<32x32xbf16>
    %cst_138 = arith.constant dense<0.000000e+00> : vector<32x64xf32>
    %146 = tpu.matmul %145, %130, %cst_138 {dimension_numbers = #tpu.dot_dimension_numbers<[1], [0], [0], [1], [0, 0, 1, 1], [], []>} : vector<32x32xbf16>, vector<32x64xbf16>, vector<32x64xf32> -> vector<32x64xf32>
    %c2_139 = arith.constant 2 : index
    %c0_140 = arith.constant 0 : index
    %c0_141 = arith.constant 0 : index
    %147 = vector.load %arg36[%c2_139, %c0_140, %c0_141] : memref<9x64x64xf32, #tpu.memory_space<vmem>>, vector<1x64x64xf32>
    %148 = vector.shape_cast %147 : vector<1x64x64xf32> to vector<64x64xf32>
    %cst_142 = arith.constant dense<0.000000e+00> : vector<32x64xf32>
    %149 = tpu.matmul %146, %148, %cst_142 {dimension_numbers = #tpu.dot_dimension_numbers<[1], [0], [0], [1], [0, 0, 1, 1], [], []>} : vector<32x64xf32>, vector<64x64xf32>, vector<32x64xf32> -> vector<32x64xf32>
    %150 = arith.addf %143, %149 : vector<32x64xf32>
    %c3_143 = arith.constant 3 : index
    %c0_144 = arith.constant 0 : index
    %c0_145 = arith.constant 0 : index
    %151 = vector.load %arg19[%c3_143, %c0_144, %c0_145] : memref<9x32x32xbf16, #tpu.memory_space<vmem>>, vector<1x32x32xbf16>
    %152 = vector.shape_cast %151 : vector<1x32x32xbf16> to vector<32x32xbf16>
    %cst_146 = arith.constant dense<0.000000e+00> : vector<32x64xf32>
    %153 = tpu.matmul %152, %130, %cst_146 {dimension_numbers = #tpu.dot_dimension_numbers<[1], [0], [0], [1], [0, 0, 1, 1], [], []>} : vector<32x32xbf16>, vector<32x64xbf16>, vector<32x64xf32> -> vector<32x64xf32>
    %c3_147 = arith.constant 3 : index
    %c0_148 = arith.constant 0 : index
    %c0_149 = arith.constant 0 : index
    %154 = vector.load %arg36[%c3_147, %c0_148, %c0_149] : memref<9x64x64xf32, #tpu.memory_space<vmem>>, vector<1x64x64xf32>
    %155 = vector.shape_cast %154 : vector<1x64x64xf32> to vector<64x64xf32>
    %cst_150 = arith.constant dense<0.000000e+00> : vector<32x64xf32>
    %156 = tpu.matmul %153, %155, %cst_150 {dimension_numbers = #tpu.dot_dimension_numbers<[1], [0], [0], [1], [0, 0, 1, 1], [], []>} : vector<32x64xf32>, vector<64x64xf32>, vector<32x64xf32> -> vector<32x64xf32>
    %157 = arith.addf %150, %156 : vector<32x64xf32>
    %c4_151 = arith.constant 4 : index
    %c0_152 = arith.constant 0 : index
    %c0_153 = arith.constant 0 : index
    %158 = vector.load %arg19[%c4_151, %c0_152, %c0_153] : memref<9x32x32xbf16, #tpu.memory_space<vmem>>, vector<1x32x32xbf16>
    %159 = vector.shape_cast %158 : vector<1x32x32xbf16> to vector<32x32xbf16>
    %cst_154 = arith.constant dense<0.000000e+00> : vector<32x64xf32>
    %160 = tpu.matmul %159, %130, %cst_154 {dimension_numbers = #tpu.dot_dimension_numbers<[1], [0], [0], [1], [0, 0, 1, 1], [], []>} : vector<32x32xbf16>, vector<32x64xbf16>, vector<32x64xf32> -> vector<32x64xf32>
    %c4_155 = arith.constant 4 : index
    %c0_156 = arith.constant 0 : index
    %c0_157 = arith.constant 0 : index
    %161 = vector.load %arg36[%c4_155, %c0_156, %c0_157] : memref<9x64x64xf32, #tpu.memory_space<vmem>>, vector<1x64x64xf32>
    %162 = vector.shape_cast %161 : vector<1x64x64xf32> to vector<64x64xf32>
    %cst_158 = arith.constant dense<0.000000e+00> : vector<32x64xf32>
    %163 = tpu.matmul %160, %162, %cst_158 {dimension_numbers = #tpu.dot_dimension_numbers<[1], [0], [0], [1], [0, 0, 1, 1], [], []>} : vector<32x64xf32>, vector<64x64xf32>, vector<32x64xf32> -> vector<32x64xf32>
    %164 = arith.addf %157, %163 : vector<32x64xf32>
    %c5_159 = arith.constant 5 : index
    %c0_160 = arith.constant 0 : index
    %c0_161 = arith.constant 0 : index
    %165 = vector.load %arg19[%c5_159, %c0_160, %c0_161] : memref<9x32x32xbf16, #tpu.memory_space<vmem>>, vector<1x32x32xbf16>
    %166 = vector.shape_cast %165 : vector<1x32x32xbf16> to vector<32x32xbf16>
    %cst_162 = arith.constant dense<0.000000e+00> : vector<32x64xf32>
    %167 = tpu.matmul %166, %130, %cst_162 {dimension_numbers = #tpu.dot_dimension_numbers<[1], [0], [0], [1], [0, 0, 1, 1], [], []>} : vector<32x32xbf16>, vector<32x64xbf16>, vector<32x64xf32> -> vector<32x64xf32>
    %c5_163 = arith.constant 5 : index
    %c0_164 = arith.constant 0 : index
    %c0_165 = arith.constant 0 : index
    %168 = vector.load %arg36[%c5_163, %c0_164, %c0_165] : memref<9x64x64xf32, #tpu.memory_space<vmem>>, vector<1x64x64xf32>
    %169 = vector.shape_cast %168 : vector<1x64x64xf32> to vector<64x64xf32>
    %cst_166 = arith.constant dense<0.000000e+00> : vector<32x64xf32>
    %170 = tpu.matmul %167, %169, %cst_166 {dimension_numbers = #tpu.dot_dimension_numbers<[1], [0], [0], [1], [0, 0, 1, 1], [], []>} : vector<32x64xf32>, vector<64x64xf32>, vector<32x64xf32> -> vector<32x64xf32>
    %171 = arith.addf %164, %170 : vector<32x64xf32>
    %c6_167 = arith.constant 6 : index
    %c0_168 = arith.constant 0 : index
    %c0_169 = arith.constant 0 : index
    %172 = vector.load %arg19[%c6_167, %c0_168, %c0_169] : memref<9x32x32xbf16, #tpu.memory_space<vmem>>, vector<1x32x32xbf16>
    %173 = vector.shape_cast %172 : vector<1x32x32xbf16> to vector<32x32xbf16>
    %cst_170 = arith.constant dense<0.000000e+00> : vector<32x64xf32>
    %174 = tpu.matmul %173, %130, %cst_170 {dimension_numbers = #tpu.dot_dimension_numbers<[1], [0], [0], [1], [0, 0, 1, 1], [], []>} : vector<32x32xbf16>, vector<32x64xbf16>, vector<32x64xf32> -> vector<32x64xf32>
    %c6_171 = arith.constant 6 : index
    %c0_172 = arith.constant 0 : index
    %c0_173 = arith.constant 0 : index
    %175 = vector.load %arg36[%c6_171, %c0_172, %c0_173] : memref<9x64x64xf32, #tpu.memory_space<vmem>>, vector<1x64x64xf32>
    %176 = vector.shape_cast %175 : vector<1x64x64xf32> to vector<64x64xf32>
    %cst_174 = arith.constant dense<0.000000e+00> : vector<32x64xf32>
    %177 = tpu.matmul %174, %176, %cst_174 {dimension_numbers = #tpu.dot_dimension_numbers<[1], [0], [0], [1], [0, 0, 1, 1], [], []>} : vector<32x64xf32>, vector<64x64xf32>, vector<32x64xf32> -> vector<32x64xf32>
    %178 = arith.addf %171, %177 : vector<32x64xf32>
    %c7_175 = arith.constant 7 : index
    %c0_176 = arith.constant 0 : index
    %c0_177 = arith.constant 0 : index
    %179 = vector.load %arg19[%c7_175, %c0_176, %c0_177] : memref<9x32x32xbf16, #tpu.memory_space<vmem>>, vector<1x32x32xbf16>
    %180 = vector.shape_cast %179 : vector<1x32x32xbf16> to vector<32x32xbf16>
    %cst_178 = arith.constant dense<0.000000e+00> : vector<32x64xf32>
    %181 = tpu.matmul %180, %130, %cst_178 {dimension_numbers = #tpu.dot_dimension_numbers<[1], [0], [0], [1], [0, 0, 1, 1], [], []>} : vector<32x32xbf16>, vector<32x64xbf16>, vector<32x64xf32> -> vector<32x64xf32>
    %c7_179 = arith.constant 7 : index
    %c0_180 = arith.constant 0 : index
    %c0_181 = arith.constant 0 : index
    %182 = vector.load %arg36[%c7_179, %c0_180, %c0_181] : memref<9x64x64xf32, #tpu.memory_space<vmem>>, vector<1x64x64xf32>
    %183 = vector.shape_cast %182 : vector<1x64x64xf32> to vector<64x64xf32>
    %cst_182 = arith.constant dense<0.000000e+00> : vector<32x64xf32>
    %184 = tpu.matmul %181, %183, %cst_182 {dimension_numbers = #tpu.dot_dimension_numbers<[1], [0], [0], [1], [0, 0, 1, 1], [], []>} : vector<32x64xf32>, vector<64x64xf32>, vector<32x64xf32> -> vector<32x64xf32>
    %185 = arith.addf %178, %184 : vector<32x64xf32>
    %c8_183 = arith.constant 8 : index
    %c0_184 = arith.constant 0 : index
    %c0_185 = arith.constant 0 : index
    %186 = vector.load %arg19[%c8_183, %c0_184, %c0_185] : memref<9x32x32xbf16, #tpu.memory_space<vmem>>, vector<1x32x32xbf16>
    %187 = vector.shape_cast %186 : vector<1x32x32xbf16> to vector<32x32xbf16>
    %cst_186 = arith.constant dense<0.000000e+00> : vector<32x64xf32>
    %188 = tpu.matmul %187, %130, %cst_186 {dimension_numbers = #tpu.dot_dimension_numbers<[1], [0], [0], [1], [0, 0, 1, 1], [], []>} : vector<32x32xbf16>, vector<32x64xbf16>, vector<32x64xf32> -> vector<32x64xf32>
    %c8_187 = arith.constant 8 : index
    %c0_188 = arith.constant 0 : index
    %c0_189 = arith.constant 0 : index
    %189 = vector.load %arg36[%c8_187, %c0_188, %c0_189] : memref<9x64x64xf32, #tpu.memory_space<vmem>>, vector<1x64x64xf32>
    %190 = vector.shape_cast %189 : vector<1x64x64xf32> to vector<64x64xf32>
    %cst_190 = arith.constant dense<0.000000e+00> : vector<32x64xf32>
    %191 = tpu.matmul %188, %190, %cst_190 {dimension_numbers = #tpu.dot_dimension_numbers<[1], [0], [0], [1], [0, 0, 1, 1], [], []>} : vector<32x64xf32>, vector<64x64xf32>, vector<32x64xf32> -> vector<32x64xf32>
    %192 = arith.addf %185, %191 : vector<32x64xf32>
    %c0_191 = arith.constant 0 : index
    %c0_192 = arith.constant 0 : index
    %193 = vector.load %arg20[%c0_191, %c0_192] : memref<32x1xf32, #tpu.memory_space<vmem>>, vector<32x1xf32>
    %194 = vector.broadcast %193 : vector<32x1xf32> to vector<32x64xf32>
    %195 = arith.mulf %192, %194 : vector<32x64xf32>
    %c0_193 = arith.constant 0 : index
    %c0_194 = arith.constant 0 : index
    %196 = vector.load %arg21[%c0_193, %c0_194] : memref<32x1xf32, #tpu.memory_space<vmem>>, vector<32x1xf32>
    %197 = vector.broadcast %196 : vector<32x1xf32> to vector<32x64xf32>
    %198 = arith.addf %195, %197 : vector<32x64xf32>
    %c0_195 = arith.constant 0 : index
    %c0_196 = arith.constant 0 : index
    %199 = vector.load %arg22[%c0_195, %c0_196] : memref<32x32xbf16, #tpu.memory_space<vmem>>, vector<32x32xbf16>
    %200 = arith.truncf %198 : vector<32x64xf32> to vector<32x64xbf16>
    %cst_197 = arith.constant dense<0.000000e+00> : vector<32x64xf32>
    %201 = tpu.matmul %199, %200, %cst_197 {dimension_numbers = #tpu.dot_dimension_numbers<[1], [0], [0], [1], [0, 0, 1, 1], [], []>} : vector<32x32xbf16>, vector<32x64xbf16>, vector<32x64xf32> -> vector<32x64xf32>
    %c0_198 = arith.constant 0 : index
    %c0_199 = arith.constant 0 : index
    %202 = vector.load %arg23[%c0_198, %c0_199] : memref<32x1xf32, #tpu.memory_space<vmem>>, vector<32x1xf32>
    %203 = vector.broadcast %202 : vector<32x1xf32> to vector<32x64xf32>
    %204 = arith.addf %201, %203 : vector<32x64xf32>
    %cst_200 = arith.constant 0.000000e+00 : f32
    %205 = vector.broadcast %cst_200 : f32 to vector<32x64xf32>
    %206 = arith.maximumf %204, %205 : vector<32x64xf32>
    %c0_201 = arith.constant 0 : index
    %c0_202 = arith.constant 0 : index
    %207 = vector.load %arg24[%c0_201, %c0_202] : memref<32x32xbf16, #tpu.memory_space<vmem>>, vector<32x32xbf16>
    %208 = arith.truncf %206 : vector<32x64xf32> to vector<32x64xbf16>
    %cst_203 = arith.constant dense<0.000000e+00> : vector<32x64xf32>
    %209 = tpu.matmul %207, %208, %cst_203 {dimension_numbers = #tpu.dot_dimension_numbers<[1], [0], [0], [1], [0, 0, 1, 1], [], []>} : vector<32x32xbf16>, vector<32x64xbf16>, vector<32x64xf32> -> vector<32x64xf32>
    %210 = arith.addf %198, %209 : vector<32x64xf32>
    %c0_204 = arith.constant 0 : index
    %c0_205 = arith.constant 0 : index
    %211 = vector.load %arg25[%c0_204, %c0_205] : memref<32x1xf32, #tpu.memory_space<vmem>>, vector<32x1xf32>
    %212 = vector.broadcast %211 : vector<32x1xf32> to vector<32x64xf32>
    %213 = arith.addf %210, %212 : vector<32x64xf32>
    %c0_206 = arith.constant 0 : index
    %c0_207 = arith.constant 0 : index
    %214 = vector.load %arg34[%c0_206, %c0_207] : memref<64x1024xf32, #tpu.memory_space<vmem>>, vector<64x1024xf32>
    %cst_208 = arith.constant dense<0.000000e+00> : vector<32x1024xf32>
    %215 = tpu.matmul %213, %214, %cst_208 {dimension_numbers = #tpu.dot_dimension_numbers<[1], [0], [0], [1], [0, 0, 1, 1], [], []>} : vector<32x64xf32>, vector<64x1024xf32>, vector<32x1024xf32> -> vector<32x1024xf32>
    %c0_209 = arith.constant 0 : index
    %c0_210 = arith.constant 0 : index
    %216 = vector.load %arg26[%c0_209, %c0_210] : memref<32x32xbf16, #tpu.memory_space<vmem>>, vector<32x32xbf16>
    %217 = arith.mulf %9, %215 : vector<32x1024xf32>
    %218 = arith.truncf %217 : vector<32x1024xf32> to vector<32x1024xbf16>
    %cst_211 = arith.constant dense<0.000000e+00> : vector<32x1024xf32>
    %219 = tpu.matmul %216, %218, %cst_211 {dimension_numbers = #tpu.dot_dimension_numbers<[1], [0], [0], [1], [0, 0, 1, 1], [], []>} : vector<32x32xbf16>, vector<32x1024xbf16>, vector<32x1024xf32> -> vector<32x1024xf32>
    %c0_212 = arith.constant 0 : index
    %c0_213 = arith.constant 0 : index
    %220 = vector.load %arg27[%c0_212, %c0_213] : memref<32x1xf32, #tpu.memory_space<vmem>>, vector<32x1xf32>
    %221 = vector.broadcast %220 : vector<32x1xf32> to vector<32x1024xf32>
    %222 = arith.addf %219, %221 : vector<32x1024xf32>
    %cst_214 = arith.constant 0.000000e+00 : f32
    %223 = vector.broadcast %cst_214 : f32 to vector<32x1024xf32>
    %224 = arith.maximumf %222, %223 : vector<32x1024xf32>
    %c0_215 = arith.constant 0 : index
    %c0_216 = arith.constant 0 : index
    %225 = vector.load %arg28[%c0_215, %c0_216] : memref<32x32xbf16, #tpu.memory_space<vmem>>, vector<32x32xbf16>
    %226 = arith.truncf %224 : vector<32x1024xf32> to vector<32x1024xbf16>
    %cst_217 = arith.constant dense<0.000000e+00> : vector<32x1024xf32>
    %227 = tpu.matmul %225, %226, %cst_217 {dimension_numbers = #tpu.dot_dimension_numbers<[1], [0], [0], [1], [0, 0, 1, 1], [], []>} : vector<32x32xbf16>, vector<32x1024xbf16>, vector<32x1024xf32> -> vector<32x1024xf32>
    %228 = arith.addf %215, %227 : vector<32x1024xf32>
    %c0_218 = arith.constant 0 : index
    %c0_219 = arith.constant 0 : index
    %229 = vector.load %arg29[%c0_218, %c0_219] : memref<32x1xf32, #tpu.memory_space<vmem>>, vector<32x1xf32>
    %230 = vector.broadcast %229 : vector<32x1xf32> to vector<32x1024xf32>
    %231 = arith.addf %228, %230 : vector<32x1024xf32>
    %c0_220 = arith.constant 0 : index
    %c0_221 = arith.constant 0 : index
    %232 = vector.load %arg30[%c0_220, %c0_221] : memref<32x1xf32, #tpu.memory_space<vmem>>, vector<32x1xf32>
    %233 = vector.broadcast %232 : vector<32x1xf32> to vector<32x1024xf32>
    %234 = arith.mulf %231, %233 : vector<32x1024xf32>
    %cst_222 = arith.constant dense<0.000000e+00> : vector<1024xf32>
    %235 = vector.multi_reduction <add>, %234, %cst_222 [0] : vector<32x1024xf32> to vector<1024xf32>
    %236 = vector.shape_cast %235 : vector<1024xf32> to vector<1x1024xf32>
    %c0_223 = arith.constant 0 : index
    %c0_224 = arith.constant 0 : index
    %237 = vector.load %arg37[%c0_223, %c0_224] : memref<32x1024xf32, #tpu.memory_space<vmem>>, vector<32x1024xf32>
    %238 = vector.broadcast %236 : vector<1x1024xf32> to vector<32x1024xf32>
    %239 = arith.mulf %237, %238 : vector<32x1024xf32>
    %c0_225 = arith.constant 0 : index
    %c0_226 = arith.constant 0 : index
    %240 = vector.load %arg38[%c0_225, %c0_226] : memref<1024x32xf32, #tpu.memory_space<vmem>>, vector<1024x32xf32>
    %cst_227 = arith.constant dense<0.000000e+00> : vector<32x32xf32>
    %241 = tpu.matmul %239, %240, %cst_227 {dimension_numbers = #tpu.dot_dimension_numbers<[1], [0], [0], [1], [0, 0, 1, 1], [], []>} : vector<32x1024xf32>, vector<1024x32xf32>, vector<32x32xf32> -> vector<32x32xf32>
    %c0_228 = arith.constant 0 : index
    %c0_229 = arith.constant 0 : index
    %242 = vector.load %arg39[%c0_228, %c0_229] : memref<64x32xf32, #tpu.memory_space<vmem>>, vector<64x32xf32>
    %cst_230 = arith.constant dense<0.000000e+00> : vector<64x32xf32>
    %243 = tpu.matmul %242, %241, %cst_230 {dimension_numbers = #tpu.dot_dimension_numbers<[1], [0], [0], [1], [0, 0, 1, 1], [], []>} : vector<64x32xf32>, vector<32x32xf32>, vector<64x32xf32> -> vector<64x32xf32>
    %c0_231 = arith.constant 0 : index
    %c0_232 = arith.constant 0 : index
    %244 = vector.load %arg40[%c0_231, %c0_232] : memref<32x64xf32, #tpu.memory_space<vmem>>, vector<32x64xf32>
    %cst_233 = arith.constant dense<0.000000e+00> : vector<64x64xf32>
    %245 = tpu.matmul %243, %244, %cst_233 {dimension_numbers = #tpu.dot_dimension_numbers<[1], [0], [0], [1], [0, 0, 1, 1], [], []>} : vector<64x32xf32>, vector<32x64xf32>, vector<64x64xf32> -> vector<64x64xf32>
    %c0_234 = arith.constant 0 : index
    %c0_235 = arith.constant 0 : index
    %246 = vector.load %arg31[%c0_234, %c0_235] : memref<1x1xf32, #tpu.memory_space<vmem>>, vector<1x1xf32>
    %247 = vector.broadcast %246 : vector<1x1xf32> to vector<64x64xf32>
    %248 = arith.addf %245, %247 : vector<64x64xf32>
    %c0_236 = arith.constant 0 : index
    %c0_237 = arith.constant 0 : index
    %249 = vector.load %arg41[%c0_236, %c0_237] : memref<64x64xf32, #tpu.memory_space<vmem>>, vector<64x64xf32>
    tpu.vector_store %arg41[%c0_236, %c0_237], %248 {strides = array<i32>} : memref<64x64xf32, #tpu.memory_space<vmem>>, vector<64x64xf32>,
    return
  }
}

</mosaic_0001>

<bundles_post_ra>
// kernel: squeeze.6
= control target key start
LH: loop header
LB: loop body
LE: loop exit
PB: predicated region body
PF: predicated region fallthrough
CT: control target
= control target key end

     0   :  { %vm62_vm0 = vcmask 523264   ;;  %s228_s0 = inlined_call_operand.vmem [shape: f32[1,320,4,4], index: 0, kind: input, shape index: {}]   ;;  %s229_s1 = inlined_call_operand.vmem [shape: f32[320,16], index: 1, kind: output, shape index: {}]  }
   0x1   :  { %v120_v0 = vld [vmem:[%s228_s0 + $0x2c] sm:$0xf]  ;;  %v121_v1 = vld [vmem:[%s228_s0 + $0x28] sm:$0xf]  ;;  %v122_v2 = vld [vmem:[%s228_s0 + $0x24] sm:$0xf] }
   0x2   :  { %8 = vst [vmem:[#allocation0 + $0x58] sm:$0xf] %v120_v0  ;;  %13 = vst [vmem:[#allocation0 + $0x50] sm:$0xf] %v121_v1  ;;  %v123_v3 = vld [vmem:[%s228_s0 + $0x20] sm:$0xf] }
   0x3   :  { %18 = vst [vmem:[#allocation0 + $0x48] sm:$0xf] %v122_v2  ;;  %v124_v4 = vld [vmem:[%s228_s0 + $0x1c] sm:$0xf]  ;;  %v125_v5 = vld [vmem:[%s228_s0 + $0x18] sm:$0xf] }
   0x4   :  { %23 = vst [vmem:[#allocation0 + $0x40] sm:$0xf] %v123_v3  ;;  %28 = vst [vmem:[#allocation0 + $0x38] sm:$0xf] %v124_v4  ;;  %v126_v6 = vld [vmem:[%s228_s0 + $0x14] sm:$0xf] }
   0x5   :  { %33 = vst [vmem:[#allocation0 + $0x30] sm:$0xf] %v125_v5  ;;  %v127_v7 = vld [vmem:[%s228_s0 + $0x10] sm:$0xf]  ;;  %v128_v8 = vld [vmem:[%s228_s0 + $0xc] sm:$0xf] }
   0x6   :  { %38 = vst [vmem:[#allocation0 + $0x28] sm:$0xf] %v126_v6  ;;  %43 = vst [vmem:[#allocation0 + $0x20] sm:$0xf] %v127_v7  ;;  %v129_v9 = vld [vmem:[%s228_s0 + $0x8] sm:$0xf] }
   0x7   :  { %48 = vst [vmem:[#allocation0 + $0x18] sm:$0xf] %v128_v8  ;;  %v130_v10 = vld [vmem:[%s228_s0 + $0x4] sm:$0xf]  ;;  %v58_v11 = vld [vmem:[%s228_s0] sm:$0xf] }
   0x8   :  { %53 = vst [vmem:[#allocation0 + $0x10] sm:$0xf] %v129_v9  ;;  %57 = vst [vmem:[#allocation0 + $0x8] sm:$0xf] %v130_v10 }
   0x9   :  { %59 = vst [vmem:[#allocation0] sm:$0xf] %v58_v11  ;;  %v76_v12 = vld [vmem:[#allocation0 + $0x58] sm:$0xf]   ;;  %v107_v14 = vld [vmem:[#allocation0 + $0x50] sm:$0xf]  }
   0xa   :  { %v103_v13 = vld [vmem:[#allocation0 + $0x48] sm:$0xf]   ;;  %134 = vst.msk [vmem:[%s229_s1 + $0x2c] sm:$0xf] %vm62_vm0, %v76_v12   ;;  %141 = vst [vmem:[%s229_s1 + $0x24] sm:$0xf] %v107_v14  }
   0xb   :  { %v71_v15 = vld [vmem:[#allocation0 + $0x40] sm:$0xf]   ;;  %v99_v17 = vld [vmem:[#allocation0 + $0x38] sm:$0xf]   ;;  %140 = vst [vmem:[%s229_s1 + $0x1c] sm:$0xf] %v103_v13  }
   0xc   :  { %v95_v16 = vld [vmem:[#allocation0 + $0x30] sm:$0xf]   ;;  %133 = vst.msk [vmem:[%s229_s1 + $0x28] sm:$0xf] %vm62_vm0, %v71_v15   ;;  %139 = vst [vmem:[%s229_s1 + $0x20] sm:$0xf] %v99_v17  }
   0xd   :  { %v66_v18 = vld [vmem:[#allocation0 + $0x28] sm:$0xf]   ;;  %v91_v20 = vld [vmem:[#allocation0 + $0x20] sm:$0xf]   ;;  %138 = vst [vmem:[%s229_s1 + $0x18] sm:$0xf] %v95_v16  }
   0xe   :  { %v87_v19 = vld [vmem:[#allocation0 + $0x18] sm:$0xf]   ;;  %132 = vst.msk [vmem:[%s229_s1 + $0x14] sm:$0xf] %vm62_vm0, %v66_v18   ;;  %137 = vst [vmem:[%s229_s1 + $0xc] sm:$0xf] %v91_v20  }
   0xf   :  { %v61_v21 = vld [vmem:[#allocation0 + $0x10] sm:$0xf]   ;;  %v83_v23 = vld [vmem:[#allocation0 + $0x8] sm:$0xf]   ;;  %136 = vst [vmem:[%s229_s1 + $0x4] sm:$0xf] %v87_v19  }
  0x10   :  { %v80_v22 = vld [vmem:[#allocation0] sm:$0xf]   ;;  %131 = vst.msk [vmem:[%s229_s1 + $0x10] sm:$0xf] %vm62_vm0, %v61_v21   ;;  %135 = vst [vmem:[%s229_s1 + $0x8] sm:$0xf] %v83_v23  }
  0x11   :  { %81 = vst [vmem:[%s229_s1] sm:$0xf] %v80_v22  }

// kernel: squeeze.7
= control target key start
LH: loop header
LB: loop body
LE: loop exit
PB: predicated region body
PF: predicated region fallthrough
CT: control target
= control target key end

     0   :  { %s157_s0 = inlined_call_operand.vmem [shape: f32[1,512,2,2], index: 0, kind: input, shape index: {}]   ;;  %s158_s1 = inlined_call_operand.vmem [shape: f32[512,4], index: 1, kind: output, shape index: {}]  }
   0x1   :  { %v101_v0 = vld [vmem:[%s157_s0 + $0xe] sm:$0x3]  ;;  %v102_v1 = vld [vmem:[%s157_s0 + $0xc] sm:$0x3]  ;;  %v103_v2 = vld [vmem:[%s157_s0 + $0xa] sm:$0x3] }
   0x2   :  { %8 = vst [vmem:[#allocation1 + $0x38] sm:$0x3] %v101_v0  ;;  %13 = vst [vmem:[#allocation1 + $0x30] sm:$0x3] %v102_v1  ;;  %v104_v3 = vld [vmem:[%s157_s0 + $0x8] sm:$0x3] }
   0x3   :  { %18 = vst [vmem:[#allocation1 + $0x28] sm:$0x3] %v103_v2  ;;  %v105_v4 = vld [vmem:[%s157_s0 + $0x6] sm:$0x3]  ;;  %v106_v5 = vld [vmem:[%s157_s0 + $0x4] sm:$0x3] }
   0x4   :  { %23 = vst [vmem:[#allocation1 + $0x20] sm:$0x3] %v104_v3  ;;  %28 = vst [vmem:[#allocation1 + $0x18] sm:$0x3] %v105_v4  ;;  %v107_v6 = vld [vmem:[%s157_s0 + $0x2] sm:$0x3] }
   0x5   :  { %33 = vst [vmem:[#allocation1 + $0x10] sm:$0x3] %v106_v5  ;;  %v38_v7 = vld [vmem:[%s157_s0] sm:$0x3]  ;;  %37 = vst [vmem:[#allocation1 + $0x8] sm:$0x3] %v107_v6 }
   0x6   :  { %39 = vst [vmem:[#allocation1] sm:$0x3] %v38_v7 }
   0x9   :  { %v63_v9 = vld [vmem:[#allocation1 + $0x30] sm:$0x3]   ;;  %v67_v10 = vld [vmem:[#allocation1 + $0x38] sm:$0x3]  }
   0xa   :  { %v59_v8 = vld [vmem:[#allocation1 + $0x28] sm:$0x3]   ;;  %65 = vst [vmem:[#allocation0 + $0x12] sm:$0x3] %v63_v9   ;;  %69 = vst [vmem:[#allocation0 + $0x1a] sm:$0x3] %v67_v10  }
   0xb   :  { %v51_v12 = vld [vmem:[#allocation1 + $0x18] sm:$0x3]   ;;  %v55_v13 = vld [vmem:[#allocation1 + $0x20] sm:$0x3]   ;;  %61 = vst [vmem:[#allocation0 + $0xa] sm:$0x3] %v59_v8  }
   0xc   :  { %v47_v11 = vld [vmem:[#allocation1 + $0x10] sm:$0x3]   ;;  %v43_v15 = vld [vmem:[#allocation1 + $0x8] sm:$0x3]   ;;  %53 = vst [vmem:[#allocation0 + $0x18] sm:$0x3] %v51_v12  }
   0xd   :  { %v40_v14 = vld [vmem:[#allocation1] sm:$0x3]   ;;  %49 = vst [vmem:[#allocation0 + $0x10] sm:$0x3] %v47_v11   ;;  %57 = vst [vmem:[#allocation0 + $0x2] sm:$0x3] %v55_v13  }
   0xe   :  { %41 = vst [vmem:[#allocation0] sm:$0x3] %v40_v14   ;;  %45 = vst [vmem:[#allocation0 + $0x8] sm:$0x3] %v43_v15  }
  0x13   :  { %v88_v17 = vld [vmem:[#allocation0 + $0x18] sm:$0xf] }
  0x14   :  { %v82_v16 = vld [vmem:[#allocation0 + $0x10] sm:$0xf]  ;;  %110 = vst [vmem:[%s158_s1 + $0xc] sm:$0xf] %v88_v17 }
  0x15   :  { %v73_v18 = vld [vmem:[#allocation0] sm:$0xf]  ;;  %v77_v19 = vld [vmem:[#allocation0 + $0x8] sm:$0xf]  ;;  %109 = vst [vmem:[%s158_s1 + $0x8] sm:$0xf] %v82_v16 }
  0x16   :  { %75 = vst [vmem:[%s158_s1] sm:$0xf] %v73_v18  ;;  %108 = vst [vmem:[%s158_s1 + $0x4] sm:$0xf] %v77_v19 }

// kernel: forward.1
= control target key start
LH: loop header
LB: loop body
LE: loop exit
PB: predicated region body
PF: predicated region fallthrough
CT: control target
= control target key end

     0   :  { %s9336_s6 = smov 1   ;;  %s9337_s10 = smov 2   ;;  %s11349_s0 = inlined_call_operand.smem [shape: u32[42], index: -1, kind: input, shape index: {}] }
   0x1   :  { %s9390_s5 = sld [smem:[%s11349_s0]]   ;;  %s9338_s14 = smov 3  }
   0x2   :  { %s9395_s9 = sld [smem:[%s11349_s0 + %s9336_s6]]   ;;  %s9339_s18 = smov 4  }
   0x3   :  { %s9400_s13 = sld [smem:[%s11349_s0 + %s9337_s10]]   ;;  %s9340_s22 = smov 5  }
   0x4   :  { %s9405_s17 = sld [smem:[%s11349_s0 + %s9338_s14]]   ;;  %s9341_s26 = smov 6  }
   0x5   :  { %s9410_s21 = sld [smem:[%s11349_s0 + %s9339_s18]]   ;;  %s9342_s30 = smov 7  }
   0x6   :  { %s9415_s25 = sld [smem:[%s11349_s0 + %s9340_s22]]   ;;  %s9343_s4 = smov 8  }
   0x7   :  { %s9420_s29 = sld [smem:[%s11349_s0 + %s9341_s26]]   ;;  %s9344_s10 = smov 9  }
   0x8   :  { %s9425_s3 = sld [smem:[%s11349_s0 + %s9342_s30]]   ;;  %s9345_s15 = smov 10  }
   0x9   :  { %s9430_s8 = sld [smem:[%s11349_s0 + %s9343_s4]]   ;;  %s9346_s20 = smov 11  }
   0xa   :  { %11373 = sst [smem:[#allocation6_spill]] %s9405_s17  ;;  %s9347_s26 = smov 12  }
   0xb   :  { %s9435_s14 = sld [smem:[%s11349_s0 + %s9344_s10]]   ;;  %s9348_s1 = smov 13  }
   0xc   :  { %11374 = sst [smem:[#allocation7_spill]] %s9415_s25  ;;  %s9349_s7 = smov 14  }
   0xd   :  { %11375 = sst [smem:[#allocation8_spill]] %s9420_s29  ;;  %s9351_s22 = smov 16  }
   0xe   :  { %s9440_s19 = sld [smem:[%s11349_s0 + %s9345_s15]]   ;;  %s9350_s15 = smov 15  }
   0xf   :  { %11376 = sst [smem:[#allocation9_spill]] %s9430_s8  ;;  %s9352_s28 = smov 17  }
  0x10   :  { %s9445_s24 = sld [smem:[%s11349_s0 + %s9346_s20]]   ;;  %s9367_s23 = smov 32  }
  0x11   :  { %11377 = sst [smem:[#allocation10_spill]] %s9435_s14  ;;  %s9369_s10 = smov 34  }
  0x12   :  { %s9450_s30 = sld [smem:[%s11349_s0 + %s9347_s26]]   ;;  %s9370_s16 = smov 35  }
  0x13   :  { %s9455_s6 = sld [smem:[%s11349_s0 + %s9348_s1]]   ;;  %s9368_s1 = smov 33  }
  0x14   :  { %s9460_s12 = sld [smem:[%s11349_s0 + %s9349_s7]]   ;;  %s9353_s7 = smov 18  }
  0x15   :  { %s9465_s20 = sld [smem:[%s11349_s0 + %s9350_s15]]   ;;  %s9354_s15 = smov 19  }
  0x16   :  { %s9470_s27 = sld [smem:[%s11349_s0 + %s9351_s22]]   ;;  %s9355_s22 = smov 20  }
  0x17   :  { %s9475_s4 = sld [smem:[%s11349_s0 + %s9352_s28]]   ;;  %s9356_s28 = smov 21  }
  0x18   :  { %s9480_s29 = sld [smem:[%s11349_s0 + %s9353_s7]]   ;;  %s9357_s7 = smov 22  }
  0x19   :  { %11378 = sst [smem:[#allocation11_spill]] %s9455_s6 }
  0x1a   :  { %s9485_s25 = sld [smem:[%s11349_s0 + %s9354_s15]]   ;;  %s9358_s15 = smov 23  }
  0x1b   :  { %s9495_s6 = sld [smem:[%s11349_s0 + %s9356_s28]]   ;;  %s9360_s28 = smov 25  }
  0x1c   :  { %11379 = sst [smem:[#allocation12_spill]] %s9470_s27 }
  0x1d   :  { %s9490_s27 = sld [smem:[%s11349_s0 + %s9355_s22]]   ;;  %s9359_s22 = smov 24  }
  0x1e   :  { %s9500_s14 = sld [smem:[%s11349_s0 + %s9357_s7]]   ;;  %s9361_s7 = smov 26  }
  0x20   :  { %11380 = sst [smem:[#allocation13_spill]] %s9485_s25 }
  0x21   :  { %11382 = sst [smem:[#allocation15_spill]] %s9495_s6 }
  0x22   :  { %s9505_s25 = sld [smem:[%s11349_s0 + %s9358_s15]]   ;;  %s9362_s15 = smov 27  }
  0x23   :  { %11381 = sst [smem:[#allocation14_spill]] %s9490_s27 }
  0x24   :  { %11383 = sst [smem:[#allocation16_spill]] %s9500_s14 }
  0x25   :  { %s9510_s27 = sld [smem:[%s11349_s0 + %s9359_s22]]   ;;  %s9363_s22 = smov 28  }
  0x26   :  { %s9515_s6 = sld [smem:[%s11349_s0 + %s9360_s28]]   ;;  %s9364_s28 = smov 29  }
  0x27   :  { %s9520_s14 = sld [smem:[%s11349_s0 + %s9361_s7]]   ;;  %s9365_s7 = smov 30  }
  0x28   :  { %s9525_s8 = sld [smem:[%s11349_s0 + %s9362_s15]]   ;;  %s9366_s15 = smov 31  }
  0x29   :  { %s9535_s17 = sld [smem:[%s11349_s0 + %s9364_s28]]  }
  0x2b   :  { %11384 = sst [smem:[#allocation17_spill]] %s9510_s27 }
  0x2c   :  { %11385 = sst [smem:[#allocation18_spill]] %s9515_s6 }
  0x2d   :  { %11386 = sst [smem:[#allocation19_spill]] %s9520_s14 }
  0x2e   :  { %11387 = sst [smem:[#allocation20_spill]] %s9525_s8 }
  0x2f   :  { %s9530_s27 = sld [smem:[%s11349_s0 + %s9363_s22]]   ;;  %s9375_s22 = smov 40  }
  0x30   :  { %11389 = sst [smem:[#allocation22_spill]] %s9535_s17 }
  0x31   :  { %s9540_s14 = sld [smem:[%s11349_s0 + %s9365_s7]]  }
  0x32   :  { %s7224_s8 = sld [smem:[%s11349_s0 + %s9366_s15]]  }
  0x33   :  { %s9553_s17 = sld [smem:[%s11349_s0 + %s9368_s1]]   ;;  %s9372_s1 = smov 37  }
  0x34   :  { %s9563_s6 = sld [smem:[%s11349_s0 + %s9370_s16]]   ;;  %s9374_s16 = smov 39  }
  0x35   :  { %11388 = sst [smem:[#allocation21_spill]] %s9530_s27 }
  0x36   :  { %s9548_s27 = sld [smem:[%s11349_s0 + %s9367_s23]]   ;;  %s9371_s23 = smov 36  }
  0x37   :  { %11390 = sst [smem:[#allocation23_spill]] %s9540_s14 }
  0x38   :  { %s9558_s14 = sld [smem:[%s11349_s0 + %s9369_s10]]   ;;  %v88_v0 = vstv %s7224_s8  ;;  %s9373_s10 = smov 38  }
  0x39   :  { %11392 = sst [smem:[#allocation25_spill]] %s9553_s17  ;;  %89 = vst [vmem:[#allocation2] sm:$0x1] %v88_v0  ;;  %s9376_s8 = smov 41  }
  0x3a   :  { %s9573_s17 = sld [smem:[%s11349_s0 + %s9372_s1]]  }
  0x3b   :  { %s9578_s15 = sld [smem:[%s11349_s0 + %s9373_s10]]  }
  0x3c   :  { %11391 = sst [smem:[#allocation24_spill]] %s9548_s27 }
  0x3d   :  { %s9568_s27 = sld [smem:[%s11349_s0 + %s9371_s23]]  }
  0x3e   :  { %11393 = sst [smem:[#allocation26_spill]] %s9558_s14 }
  0x3f   :  { %s9583_s23 = sld [smem:[%s11349_s0 + %s9374_s16]]  }
  0x40   :  { %s9588_s1 = sld [smem:[%s11349_s0 + %s9375_s22]]  }
  0x41   :  { %s9593_s7 = sld [smem:[%s11349_s0 + %s9376_s8]]  }
  0x43   :  { %11394 = sst [smem:[#allocation27_spill]] %s9568_s27 }
  0x44   :  { %v175_v1 = vld [vmem:[%s9390_s5 + $0x8] sm:$0xff]  ;;  %v174_v3 = vld [vmem:[%s9390_s5] sm:$0xff]  ;;  %v11371_v6 = vmov 0   ;;  %v177_v15 = vld [vmem:[%s9390_s5 + $0x18] sm:$0xff]  ;;  %vm284_vm0 = vcmask 523264   ;;  %s11395_s0 = sld [smem:[#allocation18_spill]] }
  0x45   :  { %v183_v2 = vld [vmem:[%s9390_s5 + $0x48] sm:$0xff]  ;;  %v182_v5 = vld [vmem:[%s9390_s5 + $0x40] sm:$0xff]  ;;  %9242 = vset.pattern.permute.xlu0 %v11371_v6  ;;  %9243 = vset.pattern.permute.xlu1 %v11371_v6  ;;  %v185_v16 = vld [vmem:[%s9390_s5 + $0x58] sm:$0xff]  ;;  %s11403_s14 = sld [smem:[#allocation8_spill]] }
  0x46   :  { %v243_v4 = vpack.c.bf16 %v183_v2, %v175_v1  ;;  %v1260_v7 = vld [vmem:[%s9460_s12] sm:$0xff]  ;;  %v242_v9 = vpack.c.bf16 %v182_v5, %v174_v3  ;;  %v191_v10 = vld [vmem:[%s9390_s5 + $0x88] sm:$0xff]  ;;  %323 = vmatprep.mubr.bf16.mxu0 %v11371_v6  ;;  %v245_v18 = vpack.c.bf16 %v185_v16, %v177_v15  ;;  %v176_v19 = vld [vmem:[%s9390_s5 + $0x10] sm:$0xff]  ;;  %376 = vmatprep.mubr.bf16.mxu1 %v11371_v6 }
  0x47   :  { %v1288_v8 = vld [vmem:[%s9465_s20] sm:$0xff]  ;;  %1266 = vperm.xlu0 %9242, %v1260_v7   ;;  %v199_v11 = vld [vmem:[%s9390_s5 + $0xc8] sm:$0xff]  ;;  %v184_v20 = vld [vmem:[%s9390_s5 + $0x50] sm:$0xff] }
  0x48   :  { %1294 = vperm.xlu1 %9243, %v1288_v8   ;;  %v190_v12 = vld [vmem:[%s9390_s5 + $0x80] sm:$0xff]  ;;  %291 = vmatprep.subr.bf16.mxu0 %v243_v4  ;;  %v251_v13 = vpack.c.bf16 %v199_v11, %v191_v10  ;;  %v1261_v21 = vld [vmem:[%s9460_s12 + $0x8] sm:$0xff]  ;;  %v244_v22 = vpack.c.bf16 %v184_v20, %v176_v19  ;;  %v193_v29 = vld [vmem:[%s9390_s5 + $0x98] sm:$0xff] }
  0x49   :  { %v198_v14 = vld [vmem:[%s9390_s5 + $0xc0] sm:$0xff]  ;;  %292 = vmatpush1.bf16.msra.mxu0 %v242_v9  ;;  %v1289_v23 = vld [vmem:[%s9465_s20 + $0x8] sm:$0xff]  ;;  %344 = vmatprep.subr.bf16.mxu1 %v245_v18  ;;  %v201_v30 = vld [vmem:[%s9390_s5 + $0xd8] sm:$0xff] }
  0x4a   :  { %v250_v17 = vpack.c.bf16 %v198_v14, %v190_v12  ;;  %293 = vmatprep.subr.bf16.mxu0 %v251_v13  ;;  %v207_v24 = vld [vmem:[%s9390_s5 + $0x108] sm:$0xff]  ;;  %v206_v27 = vld [vmem:[%s9390_s5 + $0x100] sm:$0xff]  ;;  %345 = vmatpush1.bf16.msra.mxu1 %v244_v22  ;;  %v192_v31 = vld [vmem:[%s9390_s5 + $0x90] sm:$0xff]  ;;  %v253_v34 = vpack.c.bf16 %v201_v30, %v193_v29 }
  0x4b   :  { %v215_v25 = vld [vmem:[%s9390_s5 + $0x148] sm:$0xff]  ;;  %1271 = vperm.xlu0 %9242, %v1261_v21   ;;  %v214_v28 = vld [vmem:[%s9390_s5 + $0x140] sm:$0xff]  ;;  %v200_v32 = vld [vmem:[%s9390_s5 + $0xd0] sm:$0xff] }
  0x4c   :  { %v259_v26 = vpack.c.bf16 %v215_v25, %v207_v24  ;;  %1299 = vperm.xlu1 %9243, %v1289_v23   ;;  %v258_v33 = vpack.c.bf16 %v214_v28, %v206_v27  ;;  %v252_v35 = vpack.c.bf16 %v200_v32, %v192_v31  ;;  %v1262_v36 = vld [vmem:[%s9460_s12 + $0x10] sm:$0xff]  ;;  %v1263_v37 = vld [vmem:[%s9460_s12 + $0x18] sm:$0xff]  ;;  %v223_v38 = vld [vmem:[%s9390_s5 + $0x188] sm:$0xff]  ;;  %346 = vmatprep.subr.bf16.mxu1 %v253_v34 }
  0x4d   :  { %294 = vmatpush1.bf16.msra.mxu0 %v250_v17  ;;  %v231_v39 = vld [vmem:[%s9390_s5 + $0x1c8] sm:$0xff]  ;;  %v222_v40 = vld [vmem:[%s9390_s5 + $0x180] sm:$0xff]  ;;  %v209_v43 = vld [vmem:[%s9390_s5 + $0x118] sm:$0xff] }
  0x4e   :  { %295 = vmatprep.subr.bf16.mxu0 %v259_v26  ;;  %v230_v41 = vld [vmem:[%s9390_s5 + $0x1c0] sm:$0xff]  ;;  %v267_v42 = vpack.c.bf16 %v231_v39, %v223_v38  ;;  %v217_v44 = vld [vmem:[%s9390_s5 + $0x158] sm:$0xff]  ;;  %v208_v45 = vld [vmem:[%s9390_s5 + $0x110] sm:$0xff]  ;;  %347 = vmatpush1.bf16.msra.mxu1 %v252_v35 }
  0x4f   :  { %1276 = vperm.xlu0 %9242, %v1262_v36   ;;  %v261_v46 = vpack.c.bf16 %v217_v44, %v209_v43  ;;  %v216_v47 = vld [vmem:[%s9390_s5 + $0x150] sm:$0xff]  ;;  %v266_v49 = vpack.c.bf16 %v230_v41, %v222_v40  ;;  %v1291_v51 = vld [vmem:[%s9465_s20 + $0x18] sm:$0xff]  ;;  %v9636_v52 = vld [vmem:[%s9410_s21] sm:$0xff]  }
  0x50   :  { %1281 = vperm.xlu1 %9243, %v1263_v37   ;;  %v1290_v48 = vld [vmem:[%s9465_s20 + $0x10] sm:$0xff]  ;;  %v260_v50 = vpack.c.bf16 %v216_v47, %v208_v45  ;;  %v179_v53 = vld [vmem:[%s9390_s5 + $0x28] sm:$0xff]  ;;  %v225_v55 = vld [vmem:[%s9390_s5 + $0x198] sm:$0xff] }
  0x51   :  { %296 = vmatpush1.bf16.msra.mxu0 %v258_v33  ;;  %348 = vmatprep.subr.bf16.mxu1 %v261_v46  ;;  %v187_v54 = vld [vmem:[%s9390_s5 + $0x68] sm:$0xff]  ;;  %v233_v57 = vld [vmem:[%s9390_s5 + $0x1d8] sm:$0xff]  ;;  %v178_v58 = vld [vmem:[%s9390_s5 + $0x20] sm:$0xff] }
  0x52   :  { %297 = vmatprep.subr.bf16.mxu0 %v267_v42  ;;  %v247_v56 = vpack.c.bf16 %v187_v54, %v179_v53  ;;  %v186_v59 = vld [vmem:[%s9390_s5 + $0x60] sm:$0xff]  ;;  %349 = vmatpush1.bf16.msra.mxu1 %v260_v50  ;;  %v269_v60 = vpack.c.bf16 %v233_v57, %v225_v55  ;;  %v224_v61 = vld [vmem:[%s9390_s5 + $0x190] sm:$0xff]  ;;  %v963_v2 = vld [vmem:[%s9445_s24 + $0x8] sm:$0xff] }
  0x53   :  { %1304 = vperm.xlu0 %9242, %v1290_v48   ;;  %v232_v62 = vld [vmem:[%s9390_s5 + $0x1d0] sm:$0xff]  ;;  %v962_v63 = vld [vmem:[%s9445_s24] sm:$0xff]  ;;  %v246_v0 = vpack.c.bf16 %v186_v59, %v178_v58  ;;  %v195_v3 = vld [vmem:[%s9390_s5 + $0xa8] sm:$0xff] }
  0x54   :  { %1309 = vperm.xlu1 %9243, %v1291_v51   ;;  %v268_v1 = vpack.c.bf16 %v232_v62, %v224_v61  ;;  %v203_v4 = vld [vmem:[%s9390_s5 + $0xe8] sm:$0xff]  ;;  %350 = vmatprep.subr.bf16.mxu1 %v269_v60  ;;  %v194_v7 = vld [vmem:[%s9390_s5 + $0xa0] sm:$0xff]  ;;  %v181_v9 = vld [vmem:[%s9390_s5 + $0x38] sm:$0xff] }
  0x55   :  { %298 = vmatpush1.bf16.msra.mxu0 %v266_v49  ;;  %v255_v5 = vpack.c.bf16 %v203_v4, %v195_v3  ;;  %v202_v8 = vld [vmem:[%s9390_s5 + $0xe0] sm:$0xff]  ;;  %v189_v10 = vld [vmem:[%s9390_s5 + $0x78] sm:$0xff]  ;;  %v180_v11 = vld [vmem:[%s9390_s5 + $0x30] sm:$0xff] }
  0x56   :  { %397 = vmatprep.subr.bf16.mxu0 %v247_v56  ;;  %v188_v12 = vld [vmem:[%s9390_s5 + $0x70] sm:$0xff]  ;;  %351 = vmatpush1.bf16.msra.mxu1 %v268_v1  ;;  %v249_v13 = vpack.c.bf16 %v189_v10, %v181_v9  ;;  %v990_v15 = vld [vmem:[%s9450_s30] sm:$0xff]  ;;  %v254_v16 = vpack.c.bf16 %v202_v8, %v194_v7  ;;  %v991_v17 = vld [vmem:[%s9450_s30 + $0x8] sm:$0xff] }
  0x57   :  { %968 = vperm.xlu0 %9242, %v962_v63   ;;  %v248_v14 = vpack.c.bf16 %v188_v12, %v180_v11  ;;  %v211_v18 = vld [vmem:[%s9390_s5 + $0x128] sm:$0xff]  ;;  %v210_v21 = vld [vmem:[%s9390_s5 + $0x120] sm:$0xff]  ;;  %v197_v24 = vld [vmem:[%s9390_s5 + $0xb8] sm:$0xff] }
  0x58   :  { %7237 = vmatmul.mubr.msk.bf16.vlgmr.msra.gmra.mrb[0].mxu0 %vm284_vm0, %v9636_v52  ;;  %973 = vperm.xlu1 %9243, %v963_v2   ;;  %v9662_v19 = vld [vmem:[%s9410_s21 + $0x8] sm:$0xff]   ;;  %v218_v22 = vld [vmem:[%s9390_s5 + $0x160] sm:$0xff]  ;;  %v205_v25 = vld [vmem:[%s9390_s5 + $0xf8] sm:$0xff]  ;;  %s11398_s21 = sld [smem:[#allocation10_spill]] }
  0x59   :  { %398 = vmatpush1.bf16.msra.mxu0 %v246_v0  ;;  %450 = vmatprep.subr.bf16.mxu1 %v249_v13  ;;  %v219_v20 = vld [vmem:[%s9390_s5 + $0x168] sm:$0xff]  ;;  %v196_v26 = vld [vmem:[%s9390_s5 + $0xb0] sm:$0xff]  ;;  %v257_v27 = vpack.c.bf16 %v205_v25, %v197_v24  ;;  %v965_v30 = vld [vmem:[%s9445_s24 + $0x18] sm:$0xff]  ;;  %v262_v31 = vpack.c.bf16 %v218_v22, %v210_v21 }
  0x5a   :  { %399 = vmatprep.subr.bf16.mxu0 %v255_v5  ;;  %7239 = vmatmul.mubr.msk.bf16.vlgmr.msra.gmra.mrb[0].mxu1 %vm284_vm0, %v9636_v52  ;;  %v263_v23 = vpack.c.bf16 %v219_v20, %v211_v18  ;;  %v204_v28 = vld [vmem:[%s9390_s5 + $0xf0] sm:$0xff]  ;;  %v227_v33 = vld [vmem:[%s9390_s5 + $0x1a8] sm:$0xff]  ;;  %v226_v35 = vld [vmem:[%s9390_s5 + $0x1a0] sm:$0xff] }
  0x5b   :  { %996 = vperm.xlu0 %9242, %v990_v15   ;;  %451 = vmatpush1.bf16.msra.mxu1 %v248_v14  ;;  %v964_v29 = vld [vmem:[%s9445_s24 + $0x10] sm:$0xff]  ;;  %v256_v32 = vpack.c.bf16 %v204_v28, %v196_v26  ;;  %v235_v34 = vld [vmem:[%s9390_s5 + $0x1e8] sm:$0xff]  ;;  %v234_v37 = vld [vmem:[%s9390_s5 + $0x1e0] sm:$0xff]  ;;  %s11405_s24 = sld [smem:[#allocation22_spill]] }
  0x5c   :  { %333 = vmatprep.mubr.bf16.mxu0 %v11371_v6  ;;  %1001 = vperm.xlu1 %9243, %v991_v17   ;;  %v271_v36 = vpack.c.bf16 %v235_v34, %v227_v33  ;;  %v213_v38 = vld [vmem:[%s9390_s5 + $0x138] sm:$0xff]  ;;  %v212_v41 = vld [vmem:[%s9390_s5 + $0x130] sm:$0xff]  ;;  %v615_v45 = vld [vmem:[%s9395_s9] sm:$0xff]  ;;  %v270_v47 = vpack.c.bf16 %v234_v37, %v226_v35 }
  0x5d   :  { %400 = vmatpush1.bf16.msra.mxu0 %v254_v16  ;;  %452 = vmatprep.subr.bf16.mxu1 %v257_v27  ;;  %v221_v39 = vld [vmem:[%s9390_s5 + $0x178] sm:$0xff]  ;;  %v220_v42 = vld [vmem:[%s9390_s5 + $0x170] sm:$0xff]  ;;  %v616_v46 = vld [vmem:[%s9395_s9 + $0x8] sm:$0xff] }
  0x5e   :  { %401 = vmatprep.subr.bf16.mxu0 %v263_v23  ;;  %386 = vmatprep.mubr.bf16.mxu1 %v11371_v6  ;;  %v265_v40 = vpack.c.bf16 %v221_v39, %v213_v38  ;;  %v264_v43 = vpack.c.bf16 %v220_v42, %v212_v41  ;;  %v992_v44 = vld [vmem:[%s9450_s30 + $0x10] sm:$0xff]  ;;  %v229_v48 = vld [vmem:[%s9390_s5 + $0x1b8] sm:$0xff]  ;;  %v635_v53 = vpack.c.bf16 %v616_v46, %v615_v45  ;;  %v776_v58 = vld [vmem:[%s9400_s13 + $0x80] sm:$0xff] }
  0x5f   :  { %978 = vperm.xlu0 %9242, %v964_v29   ;;  %453 = vmatpush1.bf16.msra.mxu1 %v256_v32  ;;  %v237_v49 = vld [vmem:[%s9390_s5 + $0x1f8] sm:$0xff]  ;;  %v228_v50 = vld [vmem:[%s9390_s5 + $0x1b0] sm:$0xff]  ;;  %v2983_v60 = vld [vmem:[%s9475_s4] sm:$0xff] }
  0x60   :  { %7238 = vmatmul.mubr.msk.bf16.gmra.mrb[4].mxu0 %vm284_vm0, %v9662_v19  ;;  %983 = vperm.xlu1 %9243, %v965_v30   ;;  %v993_v51 = vld [vmem:[%s9450_s30 + $0x18] sm:$0xff]  ;;  %v273_v54 = vpack.c.bf16 %v237_v49, %v229_v48  ;;  %v236_v55 = vld [vmem:[%s9390_s5 + $0x1f0] sm:$0xff]  ;;  %v777_v61 = vld [vmem:[%s9400_s13 + $0x88] sm:$0xff]  ;;  %s11396_s5 = sld [smem:[#allocation6_spill]]  ;;  %s11406_s30 = sld [smem:[#allocation23_spill]] }
  0x61   :  { %402 = vmatpush1.bf16.msra.mxu0 %v262_v31  ;;  %454 = vmatprep.subr.bf16.mxu1 %v265_v40  ;;  %v617_v56 = vld [vmem:[%s9395_s9 + $0x10] sm:$0xff]  ;;  %v618_v57 = vld [vmem:[%s9395_s9 + $0x18] sm:$0xff]  ;;  %v272_v59 = vpack.c.bf16 %v236_v55, %v228_v50  ;;  %v760_v62 = vld [vmem:[%s9400_s13] sm:$0xff]  ;;  %v816_v2 = vpack.c.bf16 %v777_v61, %v776_v58 }
  0x62   :  { %403 = vmatprep.subr.bf16.mxu0 %v271_v36  ;;  %7240 = vmatmul.mubr.msk.bf16.gmra.mrb[4].mxu1 %vm284_vm0, %v9662_v19  ;;  %v761_v63 = vld [vmem:[%s9400_s13 + $0x8] sm:$0xff]  ;;  %v636_v1 = vpack.c.bf16 %v618_v57, %v617_v56  ;;  %v619_v3 = vld [vmem:[%s9395_s9 + $0x20] sm:$0xff]  ;;  %v778_v5 = vld [vmem:[%s9400_s13 + $0x90] sm:$0xff] }
  0x63   :  { %1006 = vperm.xlu0 %9242, %v992_v44   ;;  %455 = vmatpush1.bf16.msra.mxu1 %v264_v43  ;;  %v2984_v0 = vld [vmem:[%s9475_s4 + $0x8] sm:$0xff]  ;;  %v779_v7 = vld [vmem:[%s9400_s13 + $0x98] sm:$0xff]  ;;  %v808_v8 = vpack.c.bf16 %v761_v63, %v760_v62  ;;  %v3011_v9 = vld [vmem:[%s9480_s29] sm:$0xff] }
  0x64   :  { %429 = vmatprep.mubr.bf16.mxu0 %v11371_v6  ;;  %1011 = vperm.xlu1 %9243, %v993_v51   ;;  %v620_v4 = vld [vmem:[%s9395_s9 + $0x28] sm:$0xff]  ;;  %v762_v10 = vld [vmem:[%s9400_s13 + $0x10] sm:$0xff]  ;;  %v763_v11 = vld [vmem:[%s9400_s13 + $0x18] sm:$0xff]  ;;  %v817_v14 = vpack.c.bf16 %v779_v7, %v778_v5 }
  0x65   :  { %404 = vmatpush1.bf16.msra.mxu0 %v270_v47  ;;  %456 = vmatprep.subr.bf16.mxu1 %v273_v54  ;;  %v3012_v12 = vld [vmem:[%s9480_s29 + $0x8] sm:$0xff]  ;;  %v637_v13 = vpack.c.bf16 %v620_v4, %v619_v3  ;;  %v621_v15 = vld [vmem:[%s9395_s9 + $0x30] sm:$0xff]  ;;  %v622_v16 = vld [vmem:[%s9395_s9 + $0x38] sm:$0xff]  ;;  %v809_v20 = vpack.c.bf16 %v763_v11, %v762_v10 }
  0x66   :  { %8186 = vmatprep.subr.bf16.mxu0 %v635_v53  ;;  %482 = vmatprep.mubr.bf16.mxu1 %v11371_v6  ;;  %v780_v17 = vld [vmem:[%s9400_s13 + $0xa0] sm:$0xff]  ;;  %v781_v18 = vld [vmem:[%s9400_s13 + $0xa8] sm:$0xff]  ;;  %v2985_v21 = vld [vmem:[%s9475_s4 + $0x10] sm:$0xff]  ;;  %v638_v24 = vpack.c.bf16 %v622_v16, %v621_v15 }
  0x67   :  { %2989 = vperm.xlu0 %9242, %v2983_v60   ;;  %457 = vmatpush1.bf16.msra.mxu1 %v272_v59  ;;  %v764_v22 = vld [vmem:[%s9400_s13 + $0x20] sm:$0xff]  ;;  %v765_v23 = vld [vmem:[%s9400_s13 + $0x28] sm:$0xff]  ;;  %v818_v25 = vpack.c.bf16 %v781_v18, %v780_v17  ;;  %v782_v28 = vld [vmem:[%s9400_s13 + $0xb0] sm:$0xff] }
  0x68   :  { %7241 = vmatmul.mubr.msk.bf16.vlgmr.msra.gmra.mrb[8].mxu0 %vm284_vm0, %v9636_v52  ;;  %2994 = vperm.xlu1 %9243, %v2984_v0   ;;  %v623_v26 = vld [vmem:[%s9395_s9 + $0x40] sm:$0xff]  ;;  %v624_v27 = vld [vmem:[%s9395_s9 + $0x48] sm:$0xff]  ;;  %v783_v29 = vld [vmem:[%s9400_s13 + $0xb8] sm:$0xff]  ;;  %v810_v30 = vpack.c.bf16 %v765_v23, %v764_v22 }
  0x69   :  { %8187 = vmatpush3.bf16.msra.mxu0 %v635_v53  ;;  %7635 = vmatprep.subr.bf16.mxu1 %v816_v2  ;;  %v3013_v31 = vld [vmem:[%s9480_s29 + $0x10] sm:$0xff]  ;;  %v767_v33 = vld [vmem:[%s9400_s13 + $0x38] sm:$0xff]  ;;  %v639_v35 = vpack.c.bf16 %v624_v27, %v623_v26  ;;  %v819_v36 = vpack.c.bf16 %v783_v29, %v782_v28  ;;  %v3045_v37 = vld [vmem:[%s9505_s25] sm:$0xff] }
  0x6a   :  { %8188 = vmatprep.subr.bf16.mxu0 %v636_v1  ;;  %7243 = vmatmul.mubr.msk.bf16.vlgmr.msra.gmra.mrb[8].mxu1 %vm284_vm0, %v9636_v52  ;;  %v2986_v52 = vld [vmem:[%s9475_s4 + $0x18] sm:$0xff]  ;;  %v766_v32 = vld [vmem:[%s9400_s13 + $0x30] sm:$0xff]  ;;  %v784_v40 = vld [vmem:[%s9400_s13 + $0xc0] sm:$0xff] }
  0x6b   :  { %3017 = vperm.xlu0 %9242, %v3011_v9   ;;  %7636 = vmatpush3.bf16.msra.mxu1 %v808_v8  ;;  %v3014_v34 = vld [vmem:[%s9480_s29 + $0x18] sm:$0xff]  ;;  %v625_v38 = vld [vmem:[%s9395_s9 + $0x50] sm:$0xff]  ;;  %v785_v41 = vld [vmem:[%s9400_s13 + $0xc8] sm:$0xff]  ;;  %v811_v42 = vpack.c.bf16 %v767_v33, %v766_v32  ;;  %s11401_s29 = sld [smem:[#allocation11_spill]] }
  0x6c   :  { %439 = vmatprep.mubr.bf16.mxu0 %v11371_v6  ;;  %3022 = vperm.xlu1 %9243, %v3012_v12   ;;  %v626_v39 = vld [vmem:[%s9395_s9 + $0x58] sm:$0xff]  ;;  %v3046_v43 = vld [vmem:[%s9505_s25 + $0x8] sm:$0xff]  ;;  %v768_v44 = vld [vmem:[%s9400_s13 + $0x40] sm:$0xff]  ;;  %v820_v48 = vpack.c.bf16 %v785_v41, %v784_v40 }
  0x6d   :  { %8189 = vmatpush3.bf16.msra.mxu0 %v636_v1  ;;  %7637 = vmatprep.subr.bf16.mxu1 %v817_v14  ;;  %v769_v45 = vld [vmem:[%s9400_s13 + $0x48] sm:$0xff]  ;;  %v627_v46 = vld [vmem:[%s9395_s9 + $0x60] sm:$0xff]  ;;  %v640_v47 = vpack.c.bf16 %v626_v39, %v625_v38  ;;  %v786_v50 = vld [vmem:[%s9400_s13 + $0xd0] sm:$0xff] }
  0x6e   :  { %8190 = vmatprep.subr.bf16.mxu0 %v637_v13  ;;  %492 = vmatprep.mubr.bf16.mxu1 %v11371_v6  ;;  %v9246_v49 = vld [vmem:[%s9425_s3] sm:$0xff]   ;;  %v787_v51 = vld [vmem:[%s9400_s13 + $0xd8] sm:$0xff]  ;;  %v812_v53 = vpack.c.bf16 %v769_v45, %v768_v44  ;;  %v3047_v54 = vld [vmem:[%s9505_s25 + $0x10] sm:$0xff] }
  0x6f   :  { %2999 = vperm.xlu0 %9242, %v2985_v21   ;;  %7638 = vmatpush3.bf16.msra.mxu1 %v809_v20  ;;  %v3048_v55 = vld [vmem:[%s9505_s25 + $0x18] sm:$0xff]  ;;  %v770_v56 = vld [vmem:[%s9400_s13 + $0x50] sm:$0xff]  ;;  %v821_v60 = vpack.c.bf16 %v787_v51, %v786_v50  ;;  %v788_v62 = vld [vmem:[%s9400_s13 + $0xe0] sm:$0xff]  ;;  %s11400_s25 = sld [smem:[#allocation15_spill]] }
  0x70   :  { %7242 = vmatmul.mubr.msk.bf16.gmra.mrb[12].mxu0 %vm284_vm0, %v9662_v19  ;;  %3004 = vperm.xlu1 %9243, %v2986_v52   ;;  %v771_v57 = vld [vmem:[%s9400_s13 + $0x58] sm:$0xff]  ;;  %v629_v58 = vld [vmem:[%s9395_s9 + $0x70] sm:$0xff]  ;;  %v789_v63 = vld [vmem:[%s9400_s13 + $0xe8] sm:$0xff] }
  0x71   :  { %8191 = vmatpush3.bf16.msra.mxu0 %v637_v13  ;;  %7639 = vmatprep.subr.bf16.mxu1 %v818_v25  ;;  %v630_v61 = vld [vmem:[%s9395_s9 + $0x78] sm:$0xff]  ;;  %v9250_v0 = vld [vmem:[%s9440_s19 + $0x4] ss:$12 sps:$4 sm:$0xff]   ;;  %v813_v1 = vpack.c.bf16 %v771_v57, %v770_v56  ;;  %v3214_v3 = vld [vmem:[%s11395_s0 + $0x8] sm:$0xff]  ;;  %v822_v8 = vpack.c.bf16 %v789_v63, %v788_v62 }
  0x72   :  { %8192 = vmatprep.subr.bf16.mxu0 %v638_v24  ;;  %7244 = vmatmul.mubr.msk.bf16.gmra.mrb[12].mxu1 %vm284_vm0, %v9662_v19  ;;  %v628_v19 = vld [vmem:[%s9395_s9 + $0x68] sm:$0xff]  ;;  %v3213_v2 = vld [vmem:[%s11395_s0] sm:$0xff]  ;;  %v642_v7 = vpack.c.bf16 %v630_v61, %v629_v58  ;;  %v790_v11 = vld [vmem:[%s9400_s13 + $0xf0] sm:$0xff]  ;;  %s11397_s9 = sld [smem:[#allocation9_spill]] }
  0x73   :  { %3027 = vperm.xlu0 %9242, %v3013_v31   ;;  %7640 = vmatpush3.bf16.msra.mxu1 %v810_v30  ;;  %v641_v59 = vpack.c.bf16 %v628_v19, %v627_v46  ;;  %v772_v4 = vld [vmem:[%s9400_s13 + $0x60] sm:$0xff]  ;;  %v773_v5 = vld [vmem:[%s9400_s13 + $0x68] sm:$0xff]  ;;  %v791_v12 = vld [vmem:[%s9400_s13 + $0xf8] sm:$0xff] }
  0x74   :  { %3032 = vperm.xlu1 %9243, %v3014_v34   ;;  %7641 = vmatprep.subr.bf16.mxu1 %v819_v36  ;;  %v792_v9 = vld [vmem:[%s9400_s13 + $0x100] sm:$0xff]  ;;  %v793_v10 = vld [vmem:[%s9400_s13 + $0x108] sm:$0xff]  ;;  %v814_v13 = vpack.c.bf16 %v773_v5, %v772_v4  ;;  %v3215_v14 = vld [vmem:[%s11395_s0 + $0x10] sm:$0xff]  ;;  %v823_v22 = vpack.c.bf16 %v791_v12, %v790_v11 }
  0x75   :  { %8193 = vmatpush3.bf16.msra.mxu0 %v638_v24  ;;  %8202 = vmatprep.mubr.bf16.mxu0 %v9246_v49  ;;  %v3216_v15 = vld [vmem:[%s11395_s0 + $0x18] sm:$0xff]  ;;  %v774_v16 = vld [vmem:[%s9400_s13 + $0x70] sm:$0xff]  ;;  %v824_v21 = vpack.c.bf16 %v793_v10, %v792_v9  ;;  %v1034_v23 = vld [vmem:[%s11396_s5 + $0x80] sm:$0xff] }
  0x76   :  { %8194 = vmatprep.subr.bf16.mxu0 %v639_v35  ;;  %896 = vmatprep.mubr.bf16.mxu1 %v9250_v0  ;;  %v775_v17 = vld [vmem:[%s9400_s13 + $0x78] sm:$0xff]  ;;  %v794_v18 = vld [vmem:[%s9400_s13 + $0x110] sm:$0xff]  ;;  %v1035_v52 = vld [vmem:[%s11396_s5 + $0x88] sm:$0xff] }
  0x77   :  { %3051 = vperm.xlu0 %9242, %v3045_v37   ;;  %7642 = vmatpush3.bf16.msra.mxu1 %v811_v42  ;;  %v795_v20 = vld [vmem:[%s9400_s13 + $0x118] sm:$0xff]  ;;  %v9247_v24 = vld [vmem:[%s9425_s3 + $0x8] sm:$0xff]   ;;  %v815_v25 = vpack.c.bf16 %v775_v17, %v774_v16  ;;  %v1018_v27 = vld [vmem:[%s11396_s5] sm:$0xff]  ;;  %v1098_v32 = vpack.c.bf16 %v1035_v52, %v1034_v23  ;;  %s11402_s3 = sld [smem:[#allocation7_spill]] }
  0x78   :  { %3056 = vperm.xlu1 %9243, %v3046_v43   ;;  %7643 = vmatprep.subr.bf16.mxu1 %v820_v48  ;;  %v704_v26 = vld [vmem:[%s11397_s9] sm:$0xff]  ;;  %v1019_v28 = vld [vmem:[%s11396_s5 + $0x8] sm:$0xff]  ;;  %v825_v31 = vpack.c.bf16 %v795_v20, %v794_v18  ;;  %v1036_v38 = vld [vmem:[%s11396_s5 + $0x90] sm:$0xff] }
  0x79   :  { %8195 = vmatpush3.bf16.msra.mxu0 %v639_v35  ;;  %v705_v29 = vld [vmem:[%s11397_s9 + $0x8] sm:$0xff]  ;;  %v732_v33 = vld [vmem:[%s11398_s21] sm:$0xff]  ;;  %v1090_v37 = vpack.c.bf16 %v1019_v28, %v1018_v27  ;;  %v1037_v39 = vld [vmem:[%s11396_s5 + $0x98] sm:$0xff] }
  0x7a   :  { %8196 = vmatprep.subr.bf16.mxu0 %v640_v47  ;;  %v9248_v30 = vld [vmem:[%s9440_s19] ss:$12 sps:$4 sm:$0xff]   ;;  %v9251_v36 = vld [vmem:[%s9440_s19 + $0x1c] ss:$12 sps:$4 sm:$0xff]   ;;  %v1020_v40 = vld [vmem:[%s11396_s5 + $0x10] sm:$0xff] }
  0x7b   :  { %3061 = vperm.xlu0 %9242, %v3047_v54   ;;  %7644 = vmatpush3.bf16.msra.mxu1 %v812_v53  ;;  %v796_v34 = vld [vmem:[%s9400_s13 + $0x120] sm:$0xff]  ;;  %v797_v35 = vld [vmem:[%s9400_s13 + $0x128] sm:$0xff]  ;;  %v1021_v41 = vld [vmem:[%s11396_s5 + $0x18] sm:$0xff] }
  0x7c   :  { %3066 = vperm.xlu1 %9243, %v3048_v55   ;;  %7645 = vmatprep.subr.bf16.mxu1 %v821_v60  ;;  %v733_v42 = vld [vmem:[%s11398_s21 + $0x8] sm:$0xff]  ;;  %v826_v43 = vpack.c.bf16 %v797_v35, %v796_v34  ;;  %v798_v44 = vld [vmem:[%s9400_s13 + $0x130] sm:$0xff]  ;;  %v799_v46 = vld [vmem:[%s9400_s13 + $0x138] sm:$0xff]  ;;  %v1091_v50 = vpack.c.bf16 %v1021_v41, %v1020_v40  ;;  %s11399_s13 = sld [smem:[#allocation14_spill]] }
  0x7d   :  { %8197 = vmatpush3.bf16.msra.mxu0 %v640_v47  ;;  %v9254_v45 = vld [vmem:[%s9440_s19 + $0x8] ss:$12 sps:$4 sm:$0xff]   ;;  %v1099_v47 = vpack.c.bf16 %v1037_v39, %v1036_v38  ;;  %v1038_v48 = vld [vmem:[%s11396_s5 + $0xa0] sm:$0xff]  ;;  %v707_v54 = vld [vmem:[%s11397_s9 + $0x18] sm:$0xff]  ;;  %v827_v55 = vpack.c.bf16 %v799_v46, %v798_v44 }
  0x7e   :  { %8198 = vmatprep.subr.bf16.mxu0 %v641_v59  ;;  %v1039_v19 = vld [vmem:[%s11396_s5 + $0xa8] sm:$0xff]  ;;  %v706_v49 = vld [vmem:[%s11397_s9 + $0x10] sm:$0xff]  ;;  %v1022_v51 = vld [vmem:[%s11396_s5 + $0x20] sm:$0xff] }
  0x7f   :  { %3219 = vperm.xlu0 %9242, %v3213_v2   ;;  %7646 = vmatpush3.bf16.msra.mxu1 %v813_v1  ;;  %v1023_v53 = vld [vmem:[%s11396_s5 + $0x28] sm:$0xff]  ;;  %v9253_v56 = vld [vmem:[%s9440_s19 + $0x18] ss:$12 sps:$4 sm:$0xff]   ;;  %v1100_v58 = vpack.c.bf16 %v1039_v19, %v1038_v48  ;;  %v1040_v60 = vld [vmem:[%s11396_s5 + $0xb0] sm:$0xff] }
  0x80   :  { %3224 = vperm.xlu1 %9243, %v3214_v3   ;;  %7647 = vmatprep.subr.bf16.mxu1 %v822_v8  ;;  %v1066_v57 = vld [vmem:[%s11396_s5 + $0x180] sm:$0xff]  ;;  %v1041_v61 = vld [vmem:[%s11396_s5 + $0xb8] sm:$0xff]  ;;  %v734_v62 = vld [vmem:[%s11398_s21 + $0x10] sm:$0xff]  ;;  %v1092_v63 = vpack.c.bf16 %v1023_v53, %v1022_v51 }
  0x81   :  { %8199 = vmatpush3.bf16.msra.mxu0 %v641_v59  ;;  %v1067_v59 = vld [vmem:[%s11396_s5 + $0x188] sm:$0xff]  ;;  %v735_v0 = vld [vmem:[%s11398_s21 + $0x18] sm:$0xff]  ;;  %v1024_v1 = vld [vmem:[%s11396_s5 + $0x30] sm:$0xff]  ;;  %v1101_v8 = vpack.c.bf16 %v1041_v61, %v1040_v60 }
  0x82   :  { %8200 = vmatprep.subr.bf16.mxu0 %v642_v7  ;;  %v1025_v2 = vld [vmem:[%s11396_s5 + $0x38] sm:$0xff]  ;;  %v1114_v3 = vpack.c.bf16 %v1067_v59, %v1066_v57  ;;  %v1050_v4 = vld [vmem:[%s11396_s5 + $0x100] sm:$0xff]  ;;  %v1051_v5 = vld [vmem:[%s11396_s5 + $0x108] sm:$0xff] }
  0x83   :  { %3229 = vperm.xlu0 %9242, %v3215_v14   ;;  %7648 = vmatpush3.bf16.msra.mxu1 %v814_v13  ;;  %v1069_v9 = vld [vmem:[%s11396_s5 + $0x198] sm:$0xff]  ;;  %v1042_v10 = vld [vmem:[%s11396_s5 + $0xc0] sm:$0xff]  ;;  %v1043_v11 = vld [vmem:[%s11396_s5 + $0xc8] sm:$0xff]  ;;  %v1093_v14 = vpack.c.bf16 %v1025_v2, %v1024_v1 }
  0x84   :  { %3234 = vperm.xlu1 %9243, %v3216_v15   ;;  %7649 = vmatprep.subr.bf16.mxu1 %v823_v22  ;;  %v9255_v12 = vld [vmem:[%s9440_s19 + $0x20] ss:$12 sps:$4 sm:$0xff]   ;;  %v1106_v15 = vpack.c.bf16 %v1051_v5, %v1050_v4  ;;  %v1053_v22 = vld [vmem:[%s11396_s5 + $0x118] sm:$0xff]  ;;  %v1102_v52 = vpack.c.bf16 %v1043_v11, %v1042_v10  ;;  %v9258_v46 = vld [vmem:[%s11401_s29 + $0x4] ss:$16 sps:$4 sm:$0xff]   ;;  %s11404_s19 = sld [smem:[#allocation20_spill]] }
  0x85   :  { %8201 = vmatpush3.bf16.msra.mxu0 %v642_v7  ;;  %v1068_v7 = vld [vmem:[%s11396_s5 + $0x190] sm:$0xff]  ;;  %v4956_v13 = vld [vmem:[%s11399_s13] sm:$0xff]  ;;  %v4957_v16 = vld [vmem:[%s11399_s13 + $0x8] sm:$0xff] }
  0x86   :  { %8206 = vmatprep.subr.bf16.mxu0 %v824_v21  ;;  %v1026_v17 = vld [vmem:[%s11396_s5 + $0x40] sm:$0xff]  ;;  %v1027_v18 = vld [vmem:[%s11396_s5 + $0x48] sm:$0xff]  ;;  %v1115_v20 = vpack.c.bf16 %v1069_v9, %v1068_v7  ;;  %v1029_v34 = vld [vmem:[%s11396_s5 + $0x58] sm:$0xff] }
  0x87   :  { %710 = vperm.xlu0 %9242, %v704_v26   ;;  %7650 = vmatpush3.bf16.msra.mxu1 %v815_v25  ;;  %v1070_v23 = vld [vmem:[%s11396_s5 + $0x1a0] sm:$0xff]  ;;  %v1044_v25 = vld [vmem:[%s11396_s5 + $0xd0] sm:$0xff]  ;;  %v1045_v26 = vld [vmem:[%s11396_s5 + $0xd8] sm:$0xff] }
  0x88   :  { %8203 = vmatmul.mubr.bf16.vlgmr.msra.gmra.mrb[16].mxu0 %v9247_v24  ;;  %715 = vperm.xlu1 %9243, %v705_v29   ;;  %v1071_v24 = vld [vmem:[%s11396_s5 + $0x1a8] sm:$0xff]  ;;  %v4984_v27 = vld [vmem:[%s11400_s25] sm:$0xff]  ;;  %v1073_v38 = vld [vmem:[%s11396_s5 + $0x1b8] sm:$0xff]  ;;  %v1103_v39 = vpack.c.bf16 %v1045_v26, %v1044_v25 }
  0x89   :  { %8207 = vmatpush3.bf16.msra.mxu0 %v824_v21  ;;  %7669 = vmatprep.subr.bf16.mxu1 %v1098_v32  ;;  %v1052_v21 = vld [vmem:[%s11396_s5 + $0x110] sm:$0xff]  ;;  %v4985_v28 = vld [vmem:[%s11400_s25 + $0x8] sm:$0xff]  ;;  %v1054_v29 = vld [vmem:[%s11396_s5 + $0x120] sm:$0xff]  ;;  %v1116_v35 = vpack.c.bf16 %v1071_v24, %v1070_v23 }
  0x8a   :  { %8208 = vmatprep.subr.bf16.mxu0 %v825_v31  ;;  %897 = vmatmul.mubr.bf16.vlgmr.msra.gmra.mrb[16].mxu1 %v9248_v30  ;;  %v1094_v30 = vpack.c.bf16 %v1027_v18, %v1026_v17  ;;  %v1055_v32 = vld [vmem:[%s11396_s5 + $0x128] sm:$0xff]  ;;  %v1046_v40 = vld [vmem:[%s11396_s5 + $0xe0] sm:$0xff]  ;;  %v1057_v44 = vld [vmem:[%s11396_s5 + $0x138] sm:$0xff] }
  0x8b   :  { %738 = vperm.xlu0 %9242, %v732_v33   ;;  %904 = vmatprep.mubr.bf16.mxu1 %v9251_v36  ;;  %v1028_v33 = vld [vmem:[%s11396_s5 + $0x50] sm:$0xff]  ;;  %v1047_v41 = vld [vmem:[%s11396_s5 + $0xe8] sm:$0xff]  ;;  %v1074_v48 = vld [vmem:[%s11396_s5 + $0x1c0] sm:$0xff] }
  0x8c   :  { %7670 = vmatpush3.bf16.msra.mxu1 %v1090_v37  ;;  %743 = vperm.xlu1 %9243, %v733_v42   ;;  %v4958_v36 = vld [vmem:[%s11399_s13 + $0x10] sm:$0xff]  ;;  %v4959_v42 = vld [vmem:[%s11399_s13 + $0x18] sm:$0xff]  ;;  %v1030_v19 = vld [vmem:[%s11396_s5 + $0x60] sm:$0xff] }
  0x8d   :  { %8209 = vmatpush3.bf16.msra.mxu0 %v825_v31  ;;  %8214 = vmatprep.mubr.msk.bf16.mxu0 %vm284_vm0, %v9254_v45  ;;  %v1107_v31 = vpack.c.bf16 %v1053_v22, %v1052_v21  ;;  %v1072_v37 = vld [vmem:[%s11396_s5 + $0x1b0] sm:$0xff]  ;;  %v1095_v45 = vpack.c.bf16 %v1029_v34, %v1028_v33  ;;  %v1075_v53 = vld [vmem:[%s11396_s5 + $0x1c8] sm:$0xff]  ;;  %v1077_v4 = vld [vmem:[%s11396_s5 + $0x1d8] sm:$0xff] }
  0x8e   :  { %8210 = vmatprep.subr.bf16.mxu0 %v826_v43  ;;  %7671 = vmatprep.subr.bf16.mxu1 %v1099_v47  ;;  %v1108_v47 = vpack.c.bf16 %v1055_v32, %v1054_v29  ;;  %v4986_v51 = vld [vmem:[%s11400_s25 + $0x10] sm:$0xff]  ;;  %v9261_v57 = vld [vmem:[%s11401_s29 + $0xc] ss:$16 sps:$4 sm:$0xff]   ;;  %v503_v5 = vld [vmem:[%s11402_s3] sm:$0xff] }
  0x8f   :  { %720 = vperm.xlu0 %9242, %v706_v49   ;;  %v1031_v49 = vld [vmem:[%s11396_s5 + $0x68] sm:$0xff]  ;;  %v1032_v61 = vld [vmem:[%s11396_s5 + $0x70] sm:$0xff]  ;;  %v1061_v11 = vld [vmem:[%s11396_s5 + $0x158] sm:$0xff] }
  0x90   :  { %7672 = vmatpush3.bf16.msra.mxu1 %v1091_v50  ;;  %725 = vperm.xlu1 %9243, %v707_v54   ;;  %v1117_v50 = vpack.c.bf16 %v1073_v38, %v1072_v37  ;;  %v1104_v54 = vpack.c.bf16 %v1047_v41, %v1046_v40  ;;  %v1096_v59 = vpack.c.bf16 %v1031_v49, %v1030_v19  ;;  %v1059_v1 = vld [vmem:[%s11396_s5 + $0x148] sm:$0xff]  ;;  %v1060_v10 = vld [vmem:[%s11396_s5 + $0x150] sm:$0xff]  ;;  %v506_v26 = vld [vmem:[%s11402_s3 + $0x18] sm:$0xff] }
  0x91   :  { %8211 = vmatpush3.bf16.msra.mxu0 %v826_v43  ;;  %7673 = vmatprep.subr.bf16.mxu1 %v1100_v58  ;;  %v1056_v43 = vld [vmem:[%s11396_s5 + $0x130] sm:$0xff]  ;;  %v4987_v58 = vld [vmem:[%s11400_s25 + $0x18] sm:$0xff]  ;;  %v504_v9 = vld [vmem:[%s11402_s3 + $0x8] sm:$0xff]  ;;  %v1111_v22 = vpack.c.bf16 %v1061_v11, %v1060_v10 }
  0x92   :  { %8212 = vmatprep.subr.bf16.mxu0 %v827_v55  ;;  %905 = vmatmul.mubr.bf16.gmra.mrb[20].mxu1 %v9253_v56  ;;  %v1049_v56 = vld [vmem:[%s11396_s5 + $0xf8] sm:$0xff]  ;;  %v1109_v60 = vpack.c.bf16 %v1057_v44, %v1056_v43  ;;  %v9262_v17 = vld [vmem:[%s11401_s29 + $0x24] ss:$16 sps:$4 sm:$0xff]   ;;  %v560_v18 = vld [vmem:[%s11403_s14 + $0x8] sm:$0xff] }
  0x93   :  { %748 = vperm.xlu0 %9242, %v734_v62   ;;  %1194 = vmatprep.mubr.bf16.mxu1 %v9258_v46  ;;  %v1033_v62 = vld [vmem:[%s11396_s5 + $0x78] sm:$0xff]  ;;  %v1063_v21 = vld [vmem:[%s11396_s5 + $0x168] sm:$0xff]  ;;  %v1080_v23 = vld [vmem:[%s11396_s5 + $0x1f0] sm:$0xff] }
  0x94   :  { %7674 = vmatpush3.bf16.msra.mxu1 %v1092_v63  ;;  %753 = vperm.xlu1 %9243, %v735_v0   ;;  %v1118_v63 = vpack.c.bf16 %v1075_v53, %v1074_v48  ;;  %v1058_v0 = vld [vmem:[%s11396_s5 + $0x140] sm:$0xff]  ;;  %v1097_v7 = vpack.c.bf16 %v1033_v62, %v1032_v61  ;;  %v505_v25 = vld [vmem:[%s11402_s3 + $0x10] sm:$0xff]  ;;  %v562_v33 = vld [vmem:[%s11403_s14 + $0x18] sm:$0xff] }
  0x95   :  { %8213 = vmatpush3.bf16.msra.mxu0 %v827_v55  ;;  %7675 = vmatprep.subr.bf16.mxu1 %v1101_v8  ;;  %v1048_v55 = vld [vmem:[%s11396_s5 + $0xf0] sm:$0xff]  ;;  %v1110_v8 = vpack.c.bf16 %v1059_v1, %v1058_v0  ;;  %v9265_v37 = vld [vmem:[%s11401_s29 + $0x2c] ss:$16 sps:$4 sm:$0xff]   ;;  %v9267_v41 = vld [vmem:[%s11401_s29 + $0x28] ss:$16 sps:$4 sm:$0xff]  }
  0x96   :  { %7697 = vmatprep.subr.bf16.mxu0 %v1114_v3  ;;  %v1105_v2 = vpack.c.bf16 %v1049_v56, %v1048_v55  ;;  %v1076_v3 = vld [vmem:[%s11396_s5 + $0x1d0] sm:$0xff]  ;;  %v5611_v38 = vld [vmem:[%s11404_s19 + $0x8] sm:$0xff]  ;;  %v5613_v40 = vld [vmem:[%s11404_s19 + $0x18] sm:$0xff] }
  0x97   :  { %4962 = vperm.xlu0 %9242, %v4956_v13   ;;  %v559_v13 = vld [vmem:[%s11403_s14] sm:$0xff]  ;;  %v561_v32 = vld [vmem:[%s11403_s14 + $0x10] sm:$0xff]  ;;  %v6175_v43 = vld [vmem:[%s11405_s24 + $0x8] sm:$0xff] }
  0x98   :  { %8215 = vmatmul.mubr.msk.bf16.vlgmr.msra.gmra.mrb[20].mxu0 %vm284_vm0, %v9255_v12  ;;  %7676 = vmatpush3.bf16.msra.mxu1 %v1093_v14  ;;  %v1119_v12 = vpack.c.bf16 %v1077_v4, %v1076_v3  ;;  %v1078_v14 = vld [vmem:[%s11396_s5 + $0x1e0] sm:$0xff]  ;;  %v6176_v44 = vld [vmem:[%s11405_s24 + $0x10] sm:$0xff]  ;;  %v6231_v46 = vld [vmem:[%s11406_s30 + $0x8] sm:$0xff] }
  0x99   :  { %7698 = vmatpush3.bf16.msra.mxu0 %v1106_v15  ;;  %4967 = vperm.xlu1 %9243, %v4957_v16   ;;  %v1079_v15 = vld [vmem:[%s11396_s5 + $0x1e8] sm:$0xff]  ;;  %v9256_v16 = vld [vmem:[%s11401_s29] ss:$16 sps:$4 sm:$0xff]  }
  0x9a   :  { %7699 = vmatprep.subr.bf16.mxu0 %v1115_v20  ;;  %7677 = vmatprep.subr.bf16.mxu1 %v1102_v52  ;;  %v1062_v20 = vld [vmem:[%s11396_s5 + $0x160] sm:$0xff]  ;;  %v1081_v52 = vld [vmem:[%s11396_s5 + $0x1f8] sm:$0xff]  ;;  %v1120_v24 = vpack.c.bf16 %v1079_v15, %v1078_v14 }
  0x9b   :  { %4990 = vperm.xlu0 %9242, %v4984_v27   ;;  %1243 = vmatprep.mubr.bf16.mxu0 %v9261_v57  ;;  %v1064_v27 = vld [vmem:[%s11396_s5 + $0x170] sm:$0xff]  ;;  %v1112_v29 = vpack.c.bf16 %v1063_v21, %v1062_v20 }
  0x9c   :  { %7678 = vmatpush3.bf16.msra.mxu1 %v1094_v30  ;;  %v9264_v30 = vld [vmem:[%s11401_s29 + $0x20] ss:$16 sps:$4 sm:$0xff]  }
  0x9d   :  { %7700 = vmatpush3.bf16.msra.mxu0 %v1107_v31  ;;  %4995 = vperm.xlu1 %9243, %v4985_v28   ;;  %v1065_v28 = vld [vmem:[%s11396_s5 + $0x178] sm:$0xff]  ;;  %v1121_v31 = vpack.c.bf16 %v1081_v52, %v1080_v23 }
  0x9e   :  { %7701 = vmatprep.subr.bf16.mxu0 %v1116_v35  ;;  %7679 = vmatprep.subr.bf16.mxu1 %v1103_v39  ;;  %v1113_v34 = vpack.c.bf16 %v1065_v28, %v1064_v27  ;;  %v9259_v35 = vld [vmem:[%s11401_s29 + $0x8] ss:$16 sps:$4 sm:$0xff]   ;;  %v5612_v39 = vld [vmem:[%s11404_s19 + $0x10] sm:$0xff] }
  0x9f   :  { %4972 = vperm.xlu0 %9242, %v4958_v36   ;;  %v5610_v36 = vld [vmem:[%s11404_s19] sm:$0xff] }
  0xa0   :  { %7680 = vmatpush3.bf16.msra.mxu1 %v1095_v45  ;;  %v6230_v45 = vld [vmem:[%s11406_s30] sm:$0xff] }
  0xa1   :  { %7702 = vmatpush3.bf16.msra.mxu0 %v1108_v47  ;;  %4977 = vperm.xlu1 %9243, %v4959_v42   ;;  %v6174_v42 = vld [vmem:[%s11405_s24] sm:$0xff] }
  0xa2   :  { %7703 = vmatprep.subr.bf16.mxu0 %v1117_v50  ;;  %7681 = vmatprep.subr.bf16.mxu1 %v1104_v54 }
  0xa3   :  { %5000 = vperm.xlu0 %9242, %v4986_v51  }
  0xa4   :  { %7682 = vmatpush3.bf16.msra.mxu1 %v1096_v59 }
  0xa5   :  { %7704 = vmatpush3.bf16.msra.mxu0 %v1109_v60  ;;  %5005 = vperm.xlu1 %9243, %v4987_v58  }
  0xa6   :  { %7705 = vmatprep.subr.bf16.mxu0 %v1118_v63  ;;  %7683 = vmatprep.subr.bf16.mxu1 %v1105_v2 }
  0xa7   :  { %509 = vperm.xlu0 %9242, %v503_v5  }
  0xa8   :  { %7684 = vmatpush3.bf16.msra.mxu1 %v1097_v7 }
  0xa9   :  { %7706 = vmatpush3.bf16.msra.mxu0 %v1110_v8  ;;  %514 = vperm.xlu1 %9243, %v504_v9  }
  0xaa   :  { %7707 = vmatprep.subr.bf16.mxu0 %v1119_v12 }
  0xab   :  { %565 = vperm.xlu0 %9242, %v559_v13   ;;  %1195 = vmatmul.mubr.bf16.vlgmr.msra.gmra.mrb[24].mxu1 %v9256_v16 }
  0xac   :  { %1202 = vmatprep.mubr.bf16.mxu1 %v9262_v17 }
  0xad   :  { %7708 = vmatpush3.bf16.msra.mxu0 %v1111_v22  ;;  %570 = vperm.xlu1 %9243, %v560_v18  }
  0xae   :  { %7709 = vmatprep.subr.bf16.mxu0 %v1120_v24 }
  0xaf   :  { %519 = vperm.xlu0 %9242, %v505_v25  }
  0xb1   :  { %7710 = vmatpush3.bf16.msra.mxu0 %v1112_v29  ;;  %524 = vperm.xlu1 %9243, %v506_v26  }
  0xb2   :  { %7711 = vmatprep.subr.bf16.mxu0 %v1121_v31 }
  0xb3   :  { %575 = vperm.xlu0 %9242, %v561_v32   ;;  %1203 = vmatmul.mubr.bf16.gmra.mrb[28].mxu1 %v9264_v30 }
  0xb5   :  { %7712 = vmatpush3.bf16.msra.mxu0 %v1113_v34  ;;  %580 = vperm.xlu1 %9243, %v562_v33  }
  0xb7   :  { %5616 = vperm.xlu0 %9242, %v5610_v36  }
  0xb8   :  { %1244 = vmatmul.mubr.bf16.vlgmr.msra.gmra.mrb[24].mxu0 %v9259_v35 }
  0xb9   :  { %1251 = vmatprep.mubr.bf16.mxu0 %v9265_v37  ;;  %5621 = vperm.xlu1 %9243, %v5611_v38  }
  0xbb   :  { %5626 = vperm.xlu0 %9242, %v5612_v39  }
  0xbd   :  { %5631 = vperm.xlu1 %9243, %v5613_v40  }
  0xbf   :  { %6180 = vperm.xlu0 %9242, %v6174_v42  }
  0xc0   :  { %1252 = vmatmul.mubr.bf16.gmra.mrb[28].mxu0 %v9267_v41 }
  0xc1   :  { %6185 = vperm.xlu1 %9243, %v6175_v43  }
  0xc3   :  { %6190 = vperm.xlu0 %9242, %v6176_v44  }
  0xc4   :  { %90 = vsyncpa [#allocation4], 0  ;;  %s11407_s12 = sld [smem:[#allocation24_spill]]  ;;  %v6177_v47 = vld [vmem:[%s11405_s24 + $0x18] sm:$0xff]  ;;  %v6232_v48 = vld [vmem:[%s11406_s30 + $0x10] sm:$0xff]  ;;  %vm1330_vm1 = vcmask 1043456  }
  0xc5   :  { %6236 = vperm.xlu1 %9243, %v6230_v45   ;;  %v6233_v19 = vld [vmem:[%s11406_s30 + $0x18] sm:$0xff]  ;;  %v7616_v49 = vld [vmem:[#allocation2] ss:$0 sm:$0xff]  ;;  %vm1317_vm2 = vcmask 31744   ;;  %s11417_s20 = sld [smem:[#allocation12_spill]]  ;;  %vm1439_vm3 = vcmask 261120  }
  0xc6   :  { %vm1570_vm4 = vcmask 130048   ;;  %s11418_s27 = sld [smem:[#allocation16_spill]]  ;;  %s11420_s4 = sld [smem:[#allocation25_spill]] }
  0xc7   :  { %6241 = vperm.xlu0 %9242, %v6231_v46   ;;  %s11421_s10 = sld [smem:[#allocation13_spill]]  ;;  %s11422_s11 = sld [smem:[#allocation27_spill]] }
  0xc8   :  { %s11424_s16 = sld [smem:[#allocation26_spill]]  ;;  %s11425_s18 = sld [smem:[#allocation19_spill]] }
  0xc9   :  { %6195 = vperm.xlu1 %9243, %v6177_v47   ;;  %s11435_s22 = sld [smem:[#allocation21_spill]] }
  0xca   :  { %v1316_v50 = vld [vmem:[%s11407_s12] sm:$0xf] }
  0xcb   :  { %6246 = vperm.xlu0 %9242, %v6232_v48   ;;  %8218 = vmatprep.subr.msk.mxu1 %vm1330_vm1, %v1316_v50 }
  0xcc   :  { %8219 = vmatpush3.msk.msra.mxu1 %vm1330_vm1, %v1316_v50 }
  0xcd   :  { %6251 = vperm.xlu1 %9243, %v6233_v19  }
  0xcf   :  { %7038 = vperm.xlu0 %9242, %v7616_v49  }
 0x12b   :  { %v9898_v51 = vpop.f32.mrb[0].mxu0 }
 0x12c   :  { %v9900_v53 = vpop.f32.mrb[1].mxu0 }
 0x12d   :  { %v9902_v54 = vpop.f32.mrb[2].mxu0  ;;  %v9906_v56 = vpop.f32.mrb[0].mxu1 }
 0x12e   :  { %v9904_v55 = vpop.f32.mrb[3].mxu0  ;;  %v9908_v57 = vpop.f32.mrb[1].mxu1 }
 0x12f   :  { %v9910_v58 = vpop.f32.mrb[2].mxu1 }
 0x130   :  { %v9912_v59 = vpop.f32.mrb[3].mxu1 }
 0x133   :  { %v9914_v60 = vpop.f32.mrb[4].mxu0 }
 0x134   :  { %v9916_v61 = vpop.f32.mrb[5].mxu0 }
 0x135   :  { %v9918_v62 = vpop.f32.mrb[6].mxu0  ;;  %v9922_v0 = vpop.f32.mrb[4].mxu1 }
 0x136   :  { %v9920_v63 = vpop.f32.mrb[7].mxu0  ;;  %v9924_v1 = vpop.f32.mrb[5].mxu1 }
 0x137   :  { %v9926_v2 = vpop.f32.mrb[6].mxu1 }
 0x138   :  { %v9928_v3 = vpop.f32.mrb[7].mxu1 }
 0x13b   :  { %v9930_v4 = vpop.f32.mrb[8].mxu0 }
 0x13c   :  { %v9932_v5 = vpop.f32.mrb[9].mxu0 }
 0x13d   :  { %v9934_v7 = vpop.f32.mrb[10].mxu0  ;;  %v9938_v9 = vpop.f32.mrb[8].mxu1 }
 0x13e   :  { %v9936_v8 = vpop.f32.mrb[11].mxu0  ;;  %11408 = vst [vmem:[#allocation28_spill] sm:$0xff] %v9938_v9  ;;  %v9940_v10 = vpop.f32.mrb[9].mxu1 }
 0x13f   :  { %11409 = vst [vmem:[#allocation29_spill] sm:$0xff] %v9940_v10  ;;  %v9942_v11 = vpop.f32.mrb[10].mxu1  ;;  %v7481_v10 = vld [vmem:[%s11422_s11 + $0x128] sm:$0xff] }
 0x140   :  { %11410 = vst [vmem:[#allocation30_spill] sm:$0xff] %v9942_v11  ;;  %v9944_v12 = vpop.f32.mrb[11].mxu1  ;;  %v7480_v11 = vld [vmem:[%s11422_s11 + $0x120] sm:$0xff] }
 0x141   :  { %11411 = vst [vmem:[#allocation31_spill] sm:$0xff] %v9944_v12 }
 0x143   :  { %v9946_v13 = vpop.f32.mrb[12].mxu0 }
 0x144   :  { %v9948_v14 = vpop.f32.mrb[13].mxu0 }
 0x145   :  { %v9950_v15 = vpop.f32.mrb[14].mxu0  ;;  %v9954_v17 = vpop.f32.mrb[12].mxu1 }
 0x146   :  { %v9952_v16 = vpop.f32.mrb[15].mxu0  ;;  %11413 = vst [vmem:[#allocation33_spill] sm:$0xff] %v9954_v17  ;;  %v9956_v18 = vpop.f32.mrb[13].mxu1 }
 0x147   :  { %11412 = vst [vmem:[#allocation32_spill] sm:$0xff] %v9952_v16  ;;  %11414 = vst [vmem:[#allocation34_spill] sm:$0xff] %v9956_v18  ;;  %v9958_v20 = vpop.f32.mrb[14].mxu1  ;;  %v7461_v18 = vld [vmem:[%s11422_s11 + $0xe8] sm:$0xff]  ;;  %v7500_v16 = vld [vmem:[%s11422_s11 + $0x160] sm:$0xff] }
 0x148   :  { %11415 = vst [vmem:[#allocation35_spill] sm:$0xff] %v9958_v20  ;;  %v9960_v21 = vpop.f32.mrb[15].mxu1 }
 0x149   :  { %11416 = vst [vmem:[#allocation36_spill] sm:$0xff] %v9960_v21 }
 0x15b   :  { %v9962_v22 = vpop.f32.mrb[16].mxu0 }
 0x15c   :  { %v9964_v23 = vpop.f32.mrb[17].mxu0 }
 0x15d   :  { %v9966_v52 = vpop.f32.mrb[18].mxu0  ;;  %v7651_v25 = vpop.f32.mrb[16].mxu1 }
 0x15e   :  { %v9968_v24 = vpop.f32.mrb[19].mxu0  ;;  %v7652_v26 = vpop.f32.mrb[17].mxu1 }
 0x15f   :  { %v7653_v27 = vadd.f32 %v7652_v26, %v7651_v25  ;;  %v7654_v28 = vpop.f32.mrb[18].mxu1  ;;  %v1267_v26 = vpop.permute.xlu0 %1266 }
 0x160   :  { %v7655_v29 = vpop.f32.mrb[19].mxu1 }
 0x161   :  { %v7656_v30 = vadd.f32 %v7655_v29, %v7654_v28 }
 0x165   :  { %v7657_v31 = vpop.f32.mrb[20].mxu1 }
 0x166   :  { %v7658_v32 = vpop.f32.mrb[21].mxu1 }
 0x167   :  { %v7659_v33 = vadd.f32 %v7658_v32, %v7657_v31  ;;  %v7660_v34 = vpop.f32.mrb[22].mxu1  ;;  %v1295_v32 = vpop.permute.xlu1 %1294 }
 0x168   :  { %v7661_v35 = vpop.f32.mrb[23].mxu1 }
 0x169   :  { %v7662_v36 = vadd.f32 %v7661_v35, %v7660_v34 }
 0x16b   :  { %v8216_v37 = vpop.f32.mrb[20].mxu0 }
 0x16c   :  { %v9970_v38 = vadd.f32 %v8216_v37, %v7659_v33  ;;  %v947_v39 = vpop.f32.mrb[21].mxu0  ;;  %v1272_v37 = vpop.permute.xlu0 %1271 }
 0x16d   :  { %v9972_v40 = vadd.f32 %v7653_v27, %v947_v39  ;;  %v8217_v41 = vpop.f32.mrb[22].mxu0 }
 0x16e   :  { %v9974_v42 = vadd.f32 %v8217_v41, %v7662_v36  ;;  %v950_v43 = vpop.f32.mrb[23].mxu0 }
 0x16f   :  { %v951_v44 = vadd.f32 %v7656_v30, %v950_v43  ;;  %v1300_v43 = vpop.permute.xlu1 %1299 }
 0x17e   :  { %v7685_v45 = vpop.f32.mrb[24].mxu1 }
 0x17f   :  { %v7686_v46 = vpop.f32.mrb[25].mxu1 }
 0x180   :  { %v7687_v47 = vadd.f32 %v7686_v46, %v7685_v45  ;;  %v7688_v48 = vpop.f32.mrb[26].mxu1 }
 0x181   :  { %v7689_v19 = vpop.f32.mrb[27].mxu1 }
 0x182   :  { %v7690_v49 = vadd.f32 %v7689_v19, %v7688_v48 }
 0x186   :  { %v7691_v50 = vpop.f32.mrb[28].mxu1 }
 0x187   :  { %v7692_v25 = vpop.f32.mrb[29].mxu1 }
 0x188   :  { %v7693_v28 = vadd.f32 %v7692_v25, %v7691_v50  ;;  %v7694_v29 = vpop.f32.mrb[30].mxu1  ;;  %v1277_v50 = vpop.permute.xlu0 %1276 }
 0x189   :  { %v7695_v31 = vpop.f32.mrb[31].mxu1 }
 0x18a   :  { %v7696_v27 = vadd.f32 %v7695_v31, %v7694_v29  ;;  %v1282_v31 = vpop.permute.xlu1 %1281 }
 0x18b   :  { %v7713_v33 = vpop.f32.mrb[24].mxu0 }
 0x18c   :  { %v7714_v34 = vpop.f32.mrb[25].mxu0 }
 0x18d   :  { %v7715_v35 = vadd.f32 %v7714_v34, %v7713_v33  ;;  %v7716_v36 = vpop.f32.mrb[26].mxu0 }
 0x18e   :  { %v7717_v30 = vpop.f32.mrb[27].mxu0 }
 0x18f   :  { %v1246_v39 = vadd.f32 %v7715_v35, %v7687_v47  ;;  %v7718_v41 = vadd.f32 %v7717_v30, %v7716_v36 }
 0x191   :  { %v1284_v45 = vmul.f32 %v1267_v26, %v1246_v39  ;;  %v1249_v46 = vadd.f32 %v7718_v41, %v7690_v49  ;;  %v9270_v39 = vld [vmem:[%s11417_s20] sm:$0xff]  }
 0x193   :  { %v1312_v48 = vadd.f32 %v1295_v32, %v1284_v45  ;;  %v1285_v19 = vmul.f32 %v1272_v37, %v1249_v46  ;;  %v7719_v6 = vpop.f32.mrb[28].mxu0  ;;  %v1305_v32 = vpop.permute.xlu0 %1304 }
 0x194   :  { %v7720_v25 = vpop.f32.mrb[29].mxu0  ;;  %v1310_v37 = vpop.permute.xlu1 %1309 }
 0x195   :  { %v1313_v21 = vadd.f32 %v1300_v43, %v1285_v19  ;;  %v7721_v20 = vadd.f32 %v7720_v25, %v7719_v6  ;;  %v7722_v29 = vpop.f32.mrb[30].mxu0  ;;  %8220 = vmatprep.mubr.msk.f32.mxu1 %vm1317_vm2, %v1312_v48  ;;  %v9268_v6 = vld [vmem:[%s11417_s20 + $0x10] sm:$0xff]  }
 0x196   :  { %v7723_v33 = vpop.f32.mrb[31].mxu0  ;;  %8238 = vmatprep.mubr.msk.bf16.mxu0 %vm1439_vm3, %v9268_v6  ;;  %v9272_v6 = vld [vmem:[%s11417_s20 + $0x20] sm:$0xff]  }
 0x197   :  { %v1254_v47 = vadd.f32 %v7721_v20, %v7693_v28  ;;  %v7724_v34 = vadd.f32 %v7723_v33, %v7722_v29  ;;  %8221 = vmatmul.mubr.msk.f32.vlgmr.msra.gmra.mrb[32].mxu1 %vm1317_vm2, %v1313_v21  ;;  %v969_v21 = vpop.permute.xlu0 %968 }
 0x198   :  { %v974_v20 = vpop.permute.xlu1 %973  ;;  %v986_v43 = vmul.f32 %v969_v21, %v9972_v40  ;;  %v9275_v21 = vld [vmem:[%s11417_s20 + $0x38] sm:$0xff]  }
 0x199   :  { %v1286_v49 = vmul.f32 %v1277_v50, %v1254_v47  ;;  %v1257_v26 = vadd.f32 %v7724_v34, %v7696_v27  ;;  %v987_v41 = vmul.f32 %v974_v20, %v951_v44  ;;  %v9274_v20 = vld [vmem:[%s11417_s20 + $0x30] sm:$0xff]  }
 0x19b   :  { %v1314_v35 = vadd.f32 %v1305_v32, %v1286_v49  ;;  %v1287_v36 = vmul.f32 %v1282_v31, %v1257_v26  ;;  %v997_v27 = vpop.permute.xlu0 %996 }
 0x19c   :  { %v1002_v28 = vpop.permute.xlu1 %1001  ;;  %v1014_v19 = vadd.f32 %v997_v27, %v986_v43  ;;  %v9277_v27 = vld [vmem:[%s11417_s20 + $0x48] sm:$0xff]   ;;  %v9279_v43 = vld [vmem:[%s11417_s20 + $0x58] sm:$0xff]  }
 0x19d   :  { %v1315_v30 = vadd.f32 %v1310_v37, %v1287_v36  ;;  %8223 = vmatprep.mubr.msk.f32.mxu1 %vm1317_vm2, %v1314_v35  ;;  %v1015_v45 = vadd.f32 %v1002_v28, %v987_v41  ;;  %v9269_v37 = vld [vmem:[%s11417_s20 + $0x18] sm:$0xff]   ;;  %v9276_v28 = vld [vmem:[%s11417_s20 + $0x40] sm:$0xff]   ;;  %v9278_v41 = vld [vmem:[%s11417_s20 + $0x50] sm:$0xff]  }
 0x19f   :  { %8224 = vmatmul.mubr.msk.f32.gmra.mrb[34].mxu1 %vm1317_vm2, %v1315_v30  ;;  %v979_v50 = vpop.permute.xlu0 %978  ;;  %v9271_v30 = vld [vmem:[%s11417_s20 + $0x8] sm:$0xff]  }
 0x1a0   :  { %8230 = vmatprep.mubr.msk.bf16.mxu1 %vm1439_vm3, %v9270_v39  ;;  %v984_v46 = vpop.permute.xlu1 %983  ;;  %v988_v47 = vmul.f32 %v979_v50, %v9970_v38  ;;  %v9273_v39 = vld [vmem:[%s11417_s20 + $0x28] sm:$0xff]   ;;  %v9284_v50 = vld [vmem:[%s11417_s20 + $0x80] sm:$0xff]  }
 0x1a1   :  { %v989_v33 = vmul.f32 %v984_v46, %v9974_v42  ;;  %v9281_v46 = vld [vmem:[%s11417_s20 + $0x68] sm:$0xff]  }
 0x1a3   :  { %v1007_v40 = vpop.permute.xlu0 %1006 }
 0x1a4   :  { %v1012_v49 = vpop.permute.xlu1 %1011  ;;  %v1016_v42 = vadd.f32 %v1007_v40, %v988_v47  ;;  %v1495_v47 = vld [vmem:[%s9563_s6] sm:$0xff] }
 0x1a5   :  { %v1017_v44 = vadd.f32 %v1012_v49, %v989_v33  ;;  %v1496_v49 = vld [vmem:[%s9563_s6 + $0x8] sm:$0xff] }
 0x1a6   :  { %v8744_v40 = vpack.c.bf16 %v1496_v49, %v1495_v47 }
 0x26a   :  { %v8222_v48 = vpop.f32.mrb[32].mxu1 }
 0x26b   :  { %v1420_v25 = vmul.f32 %v8222_v48, %v1015_v45  ;;  %v1400_v29 = vpop.f32.mrb[33].mxu1  ;;  %v9280_v45 = vld [vmem:[%s11417_s20 + $0x60] sm:$0xff]   ;;  %v9282_v48 = vld [vmem:[%s11417_s20 + $0x70] sm:$0xff]  }
 0x26c   :  { %v1419_v31 = vmul.f32 %v1400_v29, %v1014_v19  ;;  %v9283_v19 = vld [vmem:[%s11417_s20 + $0x78] sm:$0xff]   ;;  %v7280_v29 = vld [vmem:[%s9563_s6 + $0x10] sm:$0xff] }
 0x26e   :  { %v9987_v34 = vpack.c.bf16 %v1420_v25, %v1419_v31  ;;  %v9285_v25 = vld [vmem:[%s11417_s20 + $0x88] sm:$0xff]   ;;  %v7281_v31 = vld [vmem:[%s9563_s6 + $0x18] sm:$0xff] }
 0x26f   :  { %v8740_v33 = vpack.c.bf16 %v7281_v31, %v7280_v29  ;;  %v7340_v31 = vld [vmem:[%s9563_s6 + $0x50] sm:$0xff] }
 0x270   :  { %8226 = vmatprep.subr.bf16.mxu1 %v9987_v34  ;;  %8234 = vmatprep.subr.bf16.mxu0 %v9987_v34 }
 0x271   :  { %8227 = vmatpush3.bf16.msra.mxu1 %v9987_v34  ;;  %8235 = vmatpush3.bf16.msra.mxu0 %v9987_v34 }
 0x272   :  { %v8225_v26 = vpop.f32.mrb[34].mxu1 }
 0x273   :  { %v1422_v32 = vmul.f32 %v8225_v26, %v1017_v44  ;;  %v1410_v38 = vpop.f32.mrb[35].mxu1  ;;  %v7299_v44 = vld [vmem:[%s9563_s6 + $0x28] sm:$0xff] }
 0x274   :  { %v1421_v35 = vmul.f32 %v1410_v38, %v1016_v42 }
 0x276   :  { %v1424_v36 = vpack.c.bf16 %v1422_v32, %v1421_v35 }
 0x278   :  { %8228 = vmatprep.subr.bf16.mxu1 %v1424_v36  ;;  %8236 = vmatprep.subr.bf16.mxu0 %v1424_v36 }
 0x279   :  { %8229 = vmatpush3.bf16.msra.mxu1 %v1424_v36  ;;  %8237 = vmatpush3.bf16.msra.mxu0 %v1424_v36 }
 0x27a   :  { %8262 = vmatprep.subr.bf16.mxu0 %v9987_v34  ;;  %8741 = vmatprep.subr.bf16.mxu1 %v8740_v33 }
 0x27c   :  { %8239 = vmatmul.mubr.msk.bf16.vlgmr.msra.gmra.mrb[32].mxu0 %vm1439_vm3, %v9269_v37  ;;  %8231 = vmatmul.mubr.msk.bf16.vlgmr.msra.gmra.mrb[36].mxu1 %vm1439_vm3, %v9271_v30 }
 0x27d   :  { %8263 = vmatpush3.bf16.msra.mxu0 %v9987_v34  ;;  %8266 = vmatprep.mubr.msk.bf16.mxu0 %vm1439_vm3, %v9272_v6 }
 0x27e   :  { %8264 = vmatprep.subr.bf16.mxu0 %v1424_v36  ;;  %8743 = vmatpush3.bf16.msra.mxu1 %v8740_v33  ;;  %v7341_v33 = vld [vmem:[%s9563_s6 + $0x58] sm:$0xff] }
 0x27f   :  { %8745 = vmatprep.subr.bf16.mxu1 %v8744_v40 }
 0x281   :  { %8265 = vmatpush3.bf16.msra.mxu0 %v1424_v36 }
 0x282   :  { %8280 = vmatprep.subr.bf16.mxu0 %v9987_v34 }
 0x284   :  { %8267 = vmatmul.mubr.msk.bf16.vlgmr.msra.gmra.mrb[36].mxu0 %vm1439_vm3, %v9273_v39  ;;  %v7312_v39 = vld [vmem:[%s9563_s6 + $0x30] sm:$0xff] }
 0x285   :  { %8281 = vmatpush3.bf16.msra.mxu0 %v9987_v34  ;;  %8284 = vmatprep.mubr.msk.bf16.mxu0 %vm1439_vm3, %v9274_v20  ;;  %v7313_v20 = vld [vmem:[%s9563_s6 + $0x38] sm:$0xff] }
 0x286   :  { %8282 = vmatprep.subr.bf16.mxu0 %v1424_v36 }
 0x289   :  { %8283 = vmatpush3.bf16.msra.mxu0 %v1424_v36 }
 0x28a   :  { %8298 = vmatprep.subr.bf16.mxu0 %v9987_v34 }
 0x28c   :  { %8285 = vmatmul.mubr.msk.bf16.vlgmr.msra.gmra.mrb[40].mxu0 %vm1439_vm3, %v9275_v21 }
 0x28d   :  { %8299 = vmatpush3.bf16.msra.mxu0 %v9987_v34  ;;  %8302 = vmatprep.mubr.msk.bf16.mxu0 %vm1439_vm3, %v9276_v28 }
 0x28e   :  { %8300 = vmatprep.subr.bf16.mxu0 %v1424_v36 }
 0x291   :  { %8301 = vmatpush3.bf16.msra.mxu0 %v1424_v36 }
 0x292   :  { %8316 = vmatprep.subr.bf16.mxu0 %v9987_v34 }
 0x294   :  { %8303 = vmatmul.mubr.msk.bf16.vlgmr.msra.gmra.mrb[44].mxu0 %vm1439_vm3, %v9277_v27 }
 0x295   :  { %8317 = vmatpush3.bf16.msra.mxu0 %v9987_v34  ;;  %8320 = vmatprep.mubr.msk.bf16.mxu0 %vm1439_vm3, %v9278_v41  ;;  %v8752_v41 = vpack.c.bf16 %v7313_v20, %v7312_v39 }
 0x296   :  { %8318 = vmatprep.subr.bf16.mxu0 %v1424_v36 }
 0x299   :  { %8319 = vmatpush3.bf16.msra.mxu0 %v1424_v36 }
 0x29a   :  { %8334 = vmatprep.subr.bf16.mxu0 %v9987_v34 }
 0x29c   :  { %8321 = vmatmul.mubr.msk.bf16.vlgmr.msra.gmra.mrb[48].mxu0 %vm1439_vm3, %v9279_v43 }
 0x29d   :  { %8335 = vmatpush3.bf16.msra.mxu0 %v9987_v34  ;;  %8338 = vmatprep.mubr.msk.bf16.mxu0 %vm1439_vm3, %v9280_v45  ;;  %v7326_v45 = vld [vmem:[%s9563_s6 + $0x40] sm:$0xff] }
 0x29e   :  { %8336 = vmatprep.subr.bf16.mxu0 %v1424_v36 }
 0x2a1   :  { %8337 = vmatpush3.bf16.msra.mxu0 %v1424_v36 }
 0x2a2   :  { %8352 = vmatprep.subr.bf16.mxu0 %v9987_v34 }
 0x2a4   :  { %8339 = vmatmul.mubr.msk.bf16.vlgmr.msra.gmra.mrb[52].mxu0 %vm1439_vm3, %v9281_v46  ;;  %v7327_v46 = vld [vmem:[%s9563_s6 + $0x48] sm:$0xff] }
 0x2a5   :  { %8353 = vmatpush3.bf16.msra.mxu0 %v9987_v34  ;;  %8356 = vmatprep.mubr.msk.bf16.mxu0 %vm1439_vm3, %v9282_v48 }
 0x2a6   :  { %8354 = vmatprep.subr.bf16.mxu0 %v1424_v36 }
 0x2a9   :  { %8355 = vmatpush3.bf16.msra.mxu0 %v1424_v36 }
 0x2aa   :  { %8370 = vmatprep.subr.bf16.mxu0 %v9987_v34 }
 0x2ac   :  { %8357 = vmatmul.mubr.msk.bf16.vlgmr.msra.gmra.mrb[56].mxu0 %vm1439_vm3, %v9283_v19 }
 0x2ad   :  { %8371 = vmatpush3.bf16.msra.mxu0 %v9987_v34  ;;  %8374 = vmatprep.mubr.msk.bf16.mxu0 %vm1439_vm3, %v9284_v50  ;;  %v7298_v34 = vld [vmem:[%s9563_s6 + $0x20] sm:$0xff] }
 0x2ae   :  { %8372 = vmatprep.subr.bf16.mxu0 %v1424_v36  ;;  %v8748_v37 = vpack.c.bf16 %v7299_v44, %v7298_v34  ;;  %v8760_v34 = vpack.c.bf16 %v7341_v33, %v7340_v31 }
 0x2b1   :  { %8373 = vmatpush3.bf16.msra.mxu0 %v1424_v36 }
 0x2b4   :  { %8375 = vmatmul.mubr.msk.bf16.vlgmr.msra.gmra.mrb[60].mxu0 %vm1439_vm3, %v9285_v25  ;;  %v8756_v25 = vpack.c.bf16 %v7327_v46, %v7326_v45 }
 0x34f   :  { %v8240_v26 = vpop.f32.mrb[32].mxu0  ;;  %v8232_v42 = vpop.f32.mrb[36].mxu1 }
 0x350   :  { %v1552_v32 = vpop.f32.mrb[33].mxu0  ;;  %v1480_v38 = vpop.f32.mrb[37].mxu1 }
 0x351   :  { %v8241_v35 = vpop.f32.mrb[34].mxu0  ;;  %8246 = vmatprep.mubr.msk.f32.mxu1 %vm1570_vm4, %v1552_v32  ;;  %v8233_v36 = vpop.f32.mrb[38].mxu1 }
 0x352   :  { %v1555_v30 = vpop.f32.mrb[35].mxu0  ;;  %v1483_v6 = vpop.f32.mrb[39].mxu1 }
 0x353   :  { %8247 = vmatmul.mubr.msk.f32.vlgmr.msra.gmra.mrb[40].mxu1 %vm1570_vm4, %v1555_v30  ;;  %v7368_v30 = vld [vmem:[%s9563_s6 + $0x70] sm:$0xff] }
 0x354   :  { %8249 = vmatprep.mubr.msk.f32.mxu1 %vm1570_vm4, %v8240_v26  ;;  %8747 = vmatpush3.bf16.msra.mxu1 %v8744_v40  ;;  %v7354_v26 = vld [vmem:[%s9563_s6 + $0x60] sm:$0xff] }
 0x355   :  { %8749 = vmatprep.subr.bf16.mxu1 %v8748_v37 }
 0x357   :  { %8250 = vmatmul.mubr.msk.f32.gmra.mrb[42].mxu1 %vm1570_vm4, %v8241_v35  ;;  %v8268_v21 = vpop.f32.mrb[36].mxu0 }
 0x358   :  { %8256 = vmatprep.mubr.msk.f32.mxu1 %vm1570_vm4, %v1480_v38  ;;  %v1820_v28 = vpop.f32.mrb[37].mxu0 }
 0x359   :  { %v8269_v27 = vpop.f32.mrb[38].mxu0 }
 0x35a   :  { %v1823_v43 = vpop.f32.mrb[39].mxu0 }
 0x35b   :  { %8257 = vmatmul.mubr.msk.f32.vlgmr.msra.gmra.mrb[40].mxu1 %vm1570_vm4, %v1483_v6  ;;  %v7369_v6 = vld [vmem:[%s9563_s6 + $0x78] sm:$0xff] }
 0x35c   :  { %8259 = vmatprep.mubr.msk.f32.mxu1 %vm1570_vm4, %v8232_v42  ;;  %8751 = vmatpush3.bf16.msra.mxu1 %v8748_v37  ;;  %v7355_v42 = vld [vmem:[%s9563_s6 + $0x68] sm:$0xff] }
 0x35d   :  { %8753 = vmatprep.subr.bf16.mxu1 %v8752_v41 }
 0x35f   :  { %8260 = vmatmul.mubr.msk.f32.gmra.mrb[42].mxu1 %vm1570_vm4, %v8233_v36  ;;  %v8286_v48 = vpop.f32.mrb[40].mxu0  ;;  %v8764_v36 = vpack.c.bf16 %v7355_v42, %v7354_v26 }
 0x360   :  { %8274 = vmatprep.mubr.msk.f32.mxu1 %vm1570_vm4, %v1820_v28  ;;  %v1994_v19 = vpop.f32.mrb[41].mxu0  ;;  %v8768_v28 = vpack.c.bf16 %v7369_v6, %v7368_v30 }
 0x361   :  { %v8287_v50 = vpop.f32.mrb[42].mxu0 }
 0x362   :  { %v1997_v29 = vpop.f32.mrb[43].mxu0 }
 0x363   :  { %8275 = vmatmul.mubr.msk.f32.vlgmr.msra.gmra.mrb[40].mxu1 %vm1570_vm4, %v1823_v43  ;;  %v7383_v43 = vld [vmem:[%s9563_s6 + $0x88] sm:$0xff] }
 0x364   :  { %8277 = vmatprep.mubr.msk.f32.mxu1 %vm1570_vm4, %v8268_v21  ;;  %8755 = vmatpush3.bf16.msra.mxu1 %v8752_v41  ;;  %v7382_v41 = vld [vmem:[%s9563_s6 + $0x80] sm:$0xff]  ;;  %s11419_s6 = sld [smem:[#allocation17_spill]] }
 0x365   :  { %8757 = vmatprep.subr.bf16.mxu1 %v8756_v25 }
 0x367   :  { %8278 = vmatmul.mubr.msk.f32.gmra.mrb[42].mxu1 %vm1570_vm4, %v8269_v27  ;;  %v8304_v47 = vpop.f32.mrb[44].mxu0 }
 0x368   :  { %8292 = vmatprep.mubr.msk.f32.mxu1 %vm1570_vm4, %v1994_v19  ;;  %v2168_v49 = vpop.f32.mrb[45].mxu0  ;;  %v8772_v19 = vpack.c.bf16 %v7383_v43, %v7382_v41 }
 0x369   :  { %v8305_v40 = vpop.f32.mrb[46].mxu0 }
 0x36a   :  { %v2171_v44 = vpop.f32.mrb[47].mxu0 }
 0x36b   :  { %8293 = vmatmul.mubr.msk.f32.vlgmr.msra.gmra.mrb[40].mxu1 %vm1570_vm4, %v1997_v29 }
 0x36c   :  { %8295 = vmatprep.mubr.msk.f32.mxu1 %vm1570_vm4, %v8286_v48  ;;  %8759 = vmatpush3.bf16.msra.mxu1 %v8756_v25 }
 0x36d   :  { %8761 = vmatprep.subr.bf16.mxu1 %v8760_v34 }
 0x36f   :  { %8296 = vmatmul.mubr.msk.f32.gmra.mrb[42].mxu1 %vm1570_vm4, %v8287_v50  ;;  %v8322_v32 = vpop.f32.mrb[48].mxu0 }
 0x370   :  { %8310 = vmatprep.mubr.msk.f32.mxu1 %vm1570_vm4, %v2168_v49  ;;  %v2342_v38 = vpop.f32.mrb[49].mxu0  ;;  %v2995_v49 = vpop.permute.xlu1 %2994 }
 0x371   :  { %v8323_v35 = vpop.f32.mrb[50].mxu0 }
 0x372   :  { %v2345_v37 = vpop.f32.mrb[51].mxu0 }
 0x373   :  { %8311 = vmatmul.mubr.msk.f32.vlgmr.msra.gmra.mrb[40].mxu1 %vm1570_vm4, %v2171_v44 }
 0x374   :  { %8313 = vmatprep.mubr.msk.f32.mxu1 %vm1570_vm4, %v8304_v47  ;;  %8763 = vmatpush3.bf16.msra.mxu1 %v8760_v34  ;;  %v10094_v47 = vld [vmem:[%s11418_s27] sm:$0xff]   ;;  %v3023_v34 = vpop.permute.xlu1 %3022 }
 0x375   :  { %8765 = vmatprep.subr.bf16.mxu1 %v8764_v36  ;;  %8392 = vmatprep.mubr.msk.bf16.mxu0 %vm1439_vm3, %v10094_v47 }
 0x377   :  { %8314 = vmatmul.mubr.msk.f32.gmra.mrb[42].mxu1 %vm1570_vm4, %v8305_v40  ;;  %v8340_v39 = vpop.f32.mrb[52].mxu0  ;;  %v2990_v40 = vpop.permute.xlu0 %2989 }
 0x378   :  { %8328 = vmatprep.mubr.msk.f32.mxu1 %vm1570_vm4, %v2342_v38  ;;  %v2516_v20 = vpop.f32.mrb[53].mxu0  ;;  %v3005_v26 = vpop.permute.xlu1 %3004 }
 0x379   :  { %v8341_v21 = vpop.f32.mrb[54].mxu0 }
 0x37a   :  { %v2519_v27 = vpop.f32.mrb[55].mxu0 }
 0x37b   :  { %8329 = vmatmul.mubr.msk.f32.vlgmr.msra.gmra.mrb[40].mxu1 %vm1570_vm4, %v2345_v37  ;;  %v3018_v44 = vpop.permute.xlu0 %3017 }
 0x37c   :  { %8331 = vmatprep.mubr.msk.f32.mxu1 %vm1570_vm4, %v8322_v32  ;;  %8767 = vmatpush3.bf16.msra.mxu1 %v8764_v36 }
 0x37d   :  { %8769 = vmatprep.subr.bf16.mxu1 %v8768_v28 }
 0x37f   :  { %8332 = vmatmul.mubr.msk.f32.gmra.mrb[42].mxu1 %vm1570_vm4, %v8323_v35  ;;  %v8358_v45 = vpop.f32.mrb[56].mxu0  ;;  %v3000_v32 = vpop.permute.xlu0 %2999 }
 0x380   :  { %8346 = vmatprep.mubr.msk.f32.mxu1 %vm1570_vm4, %v2516_v20  ;;  %v2690_v46 = vpop.f32.mrb[57].mxu0 }
 0x381   :  { %v8359_v48 = vpop.f32.mrb[58].mxu0 }
 0x382   :  { %v2693_v50 = vpop.f32.mrb[59].mxu0 }
 0x383   :  { %8347 = vmatmul.mubr.msk.f32.vlgmr.msra.gmra.mrb[40].mxu1 %vm1570_vm4, %v2519_v27  ;;  %v3028_v41 = vpop.permute.xlu0 %3027 }
 0x384   :  { %8349 = vmatprep.mubr.msk.f32.mxu1 %vm1570_vm4, %v8340_v39  ;;  %8771 = vmatpush3.bf16.msra.mxu1 %v8768_v28 }
 0x385   :  { %8773 = vmatprep.subr.bf16.mxu1 %v8772_v19 }
 0x387   :  { %8350 = vmatmul.mubr.msk.f32.gmra.mrb[42].mxu1 %vm1570_vm4, %v8341_v21  ;;  %v8376_v25 = vpop.f32.mrb[60].mxu0  ;;  %v3033_v21 = vpop.permute.xlu1 %3032 }
 0x388   :  { %8364 = vmatprep.mubr.msk.f32.mxu1 %vm1570_vm4, %v2690_v46  ;;  %v2864_v29 = vpop.f32.mrb[61].mxu0 }
 0x389   :  { %v8377_v31 = vpop.f32.mrb[62].mxu0 }
 0x38a   :  { %v2867_v33 = vpop.f32.mrb[63].mxu0 }
 0x38b   :  { %8365 = vmatmul.mubr.msk.f32.vlgmr.msra.gmra.mrb[40].mxu1 %vm1570_vm4, %v2693_v50  ;;  %v10108_v50 = vpop.permute.xlu0 %3051 }
 0x38c   :  { %8367 = vmatprep.mubr.msk.f32.mxu1 %vm1570_vm4, %v8358_v45  ;;  %8775 = vmatpush3.bf16.msra.mxu1 %v8772_v19  ;;  %v10104_v19 = vld [vmem:[%s11419_s6] sm:$0xff]  }
 0x38f   :  { %8368 = vmatmul.mubr.msk.f32.gmra.mrb[42].mxu1 %vm1570_vm4, %v8359_v48  ;;  %v10099_v48 = vld [vmem:[%s11418_s27 + $0x8] sm:$0xff]  }
 0x390   :  { %8382 = vmatprep.mubr.msk.f32.mxu1 %vm1570_vm4, %v2864_v29  ;;  %v10112_v29 = vpop.permute.xlu0 %3061 }
 0x393   :  { %8383 = vmatmul.mubr.msk.f32.vlgmr.msra.gmra.mrb[40].mxu1 %vm1570_vm4, %v2867_v33 }
 0x394   :  { %8385 = vmatprep.mubr.msk.f32.mxu1 %vm1570_vm4, %v8376_v25  ;;  %v10110_v25 = vpop.permute.xlu1 %3056 }
 0x397   :  { %8386 = vmatmul.mubr.msk.f32.gmra.mrb[42].mxu1 %vm1570_vm4, %v8377_v31 }
 0x466   :  { %v8384_v42 = vpop.f32.mrb[40].mxu1 }
 0x467   :  { %v3008_v38 = vmul.f32 %v8384_v42, %v2995_v49  ;;  %v2960_v35 = vpop.f32.mrb[41].mxu1 }
 0x468   :  { %v3007_v36 = vmul.f32 %v2990_v40, %v2960_v35  ;;  %v10115_v40 = vpop.permute.xlu1 %3066 }
 0x469   :  { %v3036_v37 = vadd.f32 %v3023_v34, %v3008_v38 }
 0x46a   :  { %v3035_v30 = vadd.f32 %v3018_v44, %v3007_v36  ;;  %v8387_v6 = vpop.f32.mrb[42].mxu1 }
 0x46b   :  { %v3010_v39 = vmul.f32 %v8387_v6, %v3005_v26  ;;  %v2970_v20 = vpop.f32.mrb[43].mxu1 }
 0x46c   :  { %v3009_v28 = vmul.f32 %v3000_v32, %v2970_v20  ;;  %v3043_v27 = vpack.c.bf16 %v3036_v37, %v3035_v30 }
 0x46d   :  { %v3038_v43 = vadd.f32 %v3033_v21, %v3010_v39  ;;  %v10121_v21 = vld [vmem:[%s11419_s6 + $0x8] sm:$0xff]  }
 0x46e   :  { %v3037_v45 = vadd.f32 %v3028_v41, %v3009_v28  ;;  %8388 = vmatprep.subr.bf16.mxu0 %v3043_v27  ;;  %v3241_v28 = vld [vmem:[%s11420_s4] sm:$0xff] }
 0x46f   :  { %8389 = vmatpush3.bf16.msra.mxu0 %v3043_v27  ;;  %v3242_v27 = vld [vmem:[%s11420_s4 + $0x8] sm:$0xff] }
 0x470   :  { %v3044_v46 = vpack.c.bf16 %v3038_v43, %v3037_v45  ;;  %v8776_v41 = vpack.c.bf16 %v3242_v27, %v3241_v28 }
 0x472   :  { %8390 = vmatprep.subr.bf16.mxu0 %v3044_v46  ;;  %8777 = vmatprep.subr.bf16.mxu1 %v8776_v41 }
 0x473   :  { %8391 = vmatpush3.bf16.msra.mxu0 %v3044_v46  ;;  %8779 = vmatpush3.bf16.msra.mxu1 %v8776_v41  ;;  %v10127_v46 = vpop.permute.xlu0 %3219 }
 0x476   :  { %8393 = vmatmul.mubr.msk.bf16.vlgmr.msra.gmra.mrb[64].mxu0 %vm1439_vm3, %v10099_v48 }
 0x477   :  { %8400 = vmatprep.mubr.msk.bf16.mxu0 %vm1439_vm3, %v10104_v19 }
 0x549   :  { %v8394_v31 = vpop.f32.mrb[64].mxu0 }
 0x54a   :  { %v3128_v33 = vadd.f32 %v8394_v31, %v10112_v29  ;;  %v3119_v49 = vpop.f32.mrb[65].mxu0 }
 0x54b   :  { %v3120_v34 = vadd.f32 %v3119_v49, %v10108_v50  ;;  %v8395_v44 = vpop.f32.mrb[66].mxu0 }
 0x54c   :  { %v3131_v26 = vadd.f32 %v8395_v44, %v10115_v40  ;;  %v3122_v42 = vpop.f32.mrb[67].mxu0  ;;  %v3136_v38 = vmax.f32 %v3128_v33, 0.0  ;;  %v10129_v44 = vpop.permute.xlu1 %3224 }
 0x54d   :  { %v3123_v32 = vadd.f32 %v3122_v42, %v10110_v25  ;;  %v3134_v36 = vmax.f32 %v3120_v34, 0.0 }
 0x54e   :  { %v3137_v35 = vmax.f32 %v3131_v26, 0.0 }
 0x54f   :  { %v3135_v6 = vmax.f32 %v3123_v32, 0.0 }
 0x550   :  { %v3143_v39 = vpack.c.bf16 %v3137_v35, %v3136_v38  ;;  %v10132_v35 = vpop.permute.xlu0 %3229 }
 0x551   :  { %v3142_v20 = vpack.c.bf16 %v3135_v6, %v3134_v36 }
 0x553   :  { %8396 = vmatprep.subr.bf16.mxu0 %v3142_v20 }
 0x554   :  { %8397 = vmatpush3.bf16.msra.mxu0 %v3142_v20  ;;  %v711_v28 = vpop.permute.xlu0 %710 }
 0x555   :  { %8398 = vmatprep.subr.bf16.mxu0 %v3143_v39 }
 0x558   :  { %8399 = vmatpush3.bf16.msra.mxu0 %v3143_v39  ;;  %v739_v41 = vpop.permute.xlu0 %738 }
 0x55b   :  { %8401 = vmatmul.mubr.msk.bf16.vlgmr.msra.gmra.mrb[68].mxu0 %vm1439_vm3, %v10121_v21 }
 0x62e   :  { %v8402_v31 = vpop.f32.mrb[68].mxu0 }
 0x62f   :  { %v3194_v33 = vpop.f32.mrb[69].mxu0  ;;  %v3211_v26 = vadd.f32 %v8402_v31, %v3037_v45 }
 0x630   :  { %v3209_v49 = vadd.f32 %v3194_v33, %v3035_v30  ;;  %v8403_v34 = vpop.f32.mrb[70].mxu0  ;;  %v10138_v30 = vpop.permute.xlu1 %3234 }
 0x631   :  { %v3197_v42 = vpop.f32.mrb[71].mxu0  ;;  %v3212_v36 = vadd.f32 %v8403_v34, %v3038_v43  ;;  %v3239_v39 = vadd.f32 %v10132_v35, %v3211_v26  ;;  %v9294_v43 = vld [vmem:[%s11421_s10] sm:$0xff]   ;;  %v721_v34 = vpop.permute.xlu0 %720 }
 0x632   :  { %v3237_v32 = vadd.f32 %v10127_v46, %v3209_v49  ;;  %v3210_v38 = vadd.f32 %v3197_v42, %v3036_v37  ;;  %v9290_v37 = vld [vmem:[%s11421_s10 + $0x10] sm:$0xff]   ;;  %8418 = vmatprep.mubr.msk.bf16.mxu0 %vm1439_vm3, %v9294_v43  ;;  %v728_v49 = vmul.f32 %v711_v28, %v9964_v23 }
 0x633   :  { %v3240_v45 = vadd.f32 %v10138_v30, %v3212_v36 }
 0x634   :  { %v3238_v6 = vadd.f32 %v10129_v44, %v3210_v38  ;;  %8408 = vmatprep.mubr.msk.f32.mxu1 %vm1570_vm4, %v3237_v32  ;;  %v716_v20 = vpop.permute.xlu1 %715  ;;  %v730_v32 = vmul.f32 %v9962_v22, %v721_v34  ;;  %v756_v36 = vadd.f32 %v739_v41, %v728_v49  ;;  %v7413_v22 = vld [vmem:[%s11422_s11 + $0x48] sm:$0xff]  ;;  %v9291_v34 = vld [vmem:[%s11421_s10 + $0x18] sm:$0xff]  }
 0x635   :  { %v729_v31 = vmul.f32 %v716_v20, %v9968_v24  ;;  %v749_v43 = vpop.permute.xlu0 %748 }
 0x636   :  { %8409 = vmatmul.mubr.msk.f32.vlgmr.msra.gmra.mrb[44].mxu1 %vm1570_vm4, %v3238_v6  ;;  %v758_v28 = vadd.f32 %v749_v43, %v730_v32  ;;  %v7415_v32 = vld [vmem:[%s11422_s11 + $0x58] sm:$0xff]  ;;  %v7418_v43 = vld [vmem:[%s11422_s11 + $0x70] sm:$0xff] }
 0x637   :  { %8411 = vmatprep.mubr.msk.f32.mxu1 %vm1570_vm4, %v3239_v39 }
 0x638   :  { %v744_v27 = vpop.permute.xlu1 %743 }
 0x639   :  { %v757_v42 = vadd.f32 %v744_v27, %v729_v31  ;;  %v7412_v31 = vld [vmem:[%s11422_s11 + $0x40] sm:$0xff] }
 0x63a   :  { %8412 = vmatmul.mubr.msk.f32.gmra.mrb[46].mxu1 %vm1570_vm4, %v3240_v45  ;;  %v8780_v49 = vpack.c.bf16 %v7413_v22, %v7412_v31  ;;  %v9299_v31 = vld [vmem:[%s11421_s10 + $0x48] sm:$0xff]   ;;  %v9300_v22 = vld [vmem:[%s11421_s10 + $0x50] sm:$0xff]  }
 0x63b   :  { %8426 = vmatprep.mubr.msk.bf16.mxu1 %vm1439_vm3, %v9290_v37 }
 0x63c   :  { %v726_v33 = vpop.permute.xlu1 %725 }
 0x63d   :  { %v731_v26 = vmul.f32 %v9966_v52, %v726_v33 }
 0x640   :  { %v754_v45 = vpop.permute.xlu1 %753 }
 0x641   :  { %v759_v24 = vadd.f32 %v754_v45, %v731_v26  ;;  %v9295_v26 = vld [vmem:[%s11421_s10 + $0x8] sm:$0xff]  }
 0x709   :  { %v8410_v38 = vpop.f32.mrb[44].mxu1 }
 0x70a   :  { %v3341_v6 = vmul.f32 %v8410_v38, %v757_v42  ;;  %v3321_v39 = vpop.f32.mrb[45].mxu1  ;;  %v7414_v42 = vld [vmem:[%s11422_s11 + $0x50] sm:$0xff]  ;;  %v9292_v38 = vld [vmem:[%s11421_s10 + $0x20] sm:$0xff]  }
 0x70b   :  { %v3340_v37 = vmul.f32 %v3321_v39, %v756_v36  ;;  %v8784_v36 = vpack.c.bf16 %v7415_v32, %v7414_v42  ;;  %v7417_v39 = vld [vmem:[%s11422_s11 + $0x68] sm:$0xff]  ;;  %v9305_v42 = vld [vmem:[%s11421_s10 + $0x78] sm:$0xff]   ;;  %v9306_v32 = vld [vmem:[%s11421_s10 + $0x80] sm:$0xff]  }
 0x70d   :  { %v10151_v20 = vpack.c.bf16 %v3341_v6, %v3340_v37  ;;  %v8413_v23 = vpop.f32.mrb[46].mxu1  ;;  %v7416_v6 = vld [vmem:[%s11422_s11 + $0x60] sm:$0xff]  ;;  %v9293_v37 = vld [vmem:[%s11421_s10 + $0x28] sm:$0xff]  }
 0x70e   :  { %v3343_v52 = vmul.f32 %v8413_v23, %v759_v24  ;;  %v3331_v27 = vpop.f32.mrb[47].mxu1  ;;  %v8788_v45 = vpack.c.bf16 %v7417_v39, %v7416_v6  ;;  %v7419_v24 = vld [vmem:[%s11422_s11 + $0x78] sm:$0xff]  ;;  %v9296_v23 = vld [vmem:[%s11421_s10 + $0x30] sm:$0xff]   ;;  %v3416_v6 = vld [vmem:[%s11422_s11 + $0x8] sm:$0xff] }
 0x70f   :  { %v3342_v41 = vmul.f32 %v3331_v27, %v758_v28  ;;  %8414 = vmatprep.subr.bf16.mxu0 %v10151_v20  ;;  %8422 = vmatprep.subr.bf16.mxu1 %v10151_v20  ;;  %v8792_v28 = vpack.c.bf16 %v7419_v24, %v7418_v43  ;;  %v9298_v27 = vld [vmem:[%s11421_s10 + $0x40] sm:$0xff]  }
 0x710   :  { %8415 = vmatpush3.bf16.msra.mxu0 %v10151_v20  ;;  %8423 = vmatpush3.bf16.msra.mxu1 %v10151_v20 }
 0x711   :  { %v10159_v33 = vpack.c.bf16 %v3343_v52, %v3342_v41  ;;  %v9297_v52 = vld [vmem:[%s11421_s10 + $0x38] sm:$0xff]  }
 0x712   :  { %v9301_v41 = vld [vmem:[%s11421_s10 + $0x58] sm:$0xff]  }
 0x713   :  { %8416 = vmatprep.subr.bf16.mxu0 %v10159_v33  ;;  %8424 = vmatprep.subr.bf16.mxu1 %v10159_v33 }
 0x714   :  { %8417 = vmatpush3.bf16.msra.mxu0 %v10159_v33  ;;  %8425 = vmatpush3.bf16.msra.mxu1 %v10159_v33 }
 0x715   :  { %8474 = vmatprep.subr.bf16.mxu1 %v10151_v20  ;;  %8781 = vmatprep.subr.bf16.mxu0 %v8780_v49 }
 0x717   :  { %8427 = vmatmul.mubr.msk.bf16.vlgmr.msra.gmra.mrb[48].mxu1 %vm1439_vm3, %v9291_v34  ;;  %8419 = vmatmul.mubr.msk.bf16.vlgmr.msra.gmra.mrb[72].mxu0 %vm1439_vm3, %v9295_v26  ;;  %v9303_v34 = vld [vmem:[%s11421_s10 + $0x68] sm:$0xff]   ;;  %v9304_v26 = vld [vmem:[%s11421_s10 + $0x70] sm:$0xff]  }
 0x718   :  { %8475 = vmatpush3.bf16.msra.mxu1 %v10151_v20  ;;  %8478 = vmatprep.mubr.msk.bf16.mxu1 %vm1439_vm3, %v9292_v38  ;;  %v9307_v38 = vld [vmem:[%s11421_s10 + $0x88] sm:$0xff]  }
 0x719   :  { %8476 = vmatprep.subr.bf16.mxu1 %v10159_v33  ;;  %8783 = vmatpush3.bf16.msra.mxu0 %v8780_v49  ;;  %v9302_v49 = vld [vmem:[%s11421_s10 + $0x60] sm:$0xff]  }
 0x71a   :  { %8785 = vmatprep.subr.bf16.mxu0 %v8784_v36 }
 0x71c   :  { %8477 = vmatpush3.bf16.msra.mxu1 %v10159_v33 }
 0x71d   :  { %8504 = vmatprep.subr.bf16.mxu1 %v10151_v20  ;;  %8787 = vmatpush3.bf16.msra.mxu0 %v8784_v36  ;;  %v3415_v36 = vld [vmem:[%s11422_s11] sm:$0xff] }
 0x71e   :  { %8789 = vmatprep.subr.bf16.mxu0 %v8788_v45  ;;  %v8796_v39 = vpack.c.bf16 %v3416_v6, %v3415_v36  ;;  %v7436_v36 = vld [vmem:[%s11422_s11 + $0x80] sm:$0xff]  ;;  %v7437_v6 = vld [vmem:[%s11422_s11 + $0x88] sm:$0xff] }
 0x71f   :  { %8479 = vmatmul.mubr.msk.bf16.vlgmr.msra.gmra.mrb[52].mxu1 %vm1439_vm3, %v9293_v37 }
 0x720   :  { %8505 = vmatpush3.bf16.msra.mxu1 %v10151_v20  ;;  %8508 = vmatprep.mubr.msk.bf16.mxu1 %vm1439_vm3, %v9296_v23 }
 0x721   :  { %8506 = vmatprep.subr.bf16.mxu1 %v10159_v33  ;;  %8791 = vmatpush3.bf16.msra.mxu0 %v8788_v45  ;;  %v3417_v45 = vld [vmem:[%s11422_s11 + $0x10] sm:$0xff] }
 0x722   :  { %8793 = vmatprep.subr.bf16.mxu0 %v8792_v28 }
 0x724   :  { %8507 = vmatpush3.bf16.msra.mxu1 %v10159_v33 }
 0x725   :  { %8534 = vmatprep.subr.bf16.mxu1 %v10151_v20  ;;  %8795 = vmatpush3.bf16.msra.mxu0 %v8792_v28 }
 0x726   :  { %8797 = vmatprep.subr.bf16.mxu0 %v8796_v39 }
 0x727   :  { %8509 = vmatmul.mubr.msk.bf16.vlgmr.msra.gmra.mrb[56].mxu1 %vm1439_vm3, %v9297_v52 }
 0x728   :  { %8535 = vmatpush3.bf16.msra.mxu1 %v10151_v20  ;;  %8538 = vmatprep.mubr.msk.bf16.mxu1 %vm1439_vm3, %v9298_v27  ;;  %v3419_v27 = vld [vmem:[%s11422_s11 + $0x20] sm:$0xff] }
 0x729   :  { %8536 = vmatprep.subr.bf16.mxu1 %v10159_v33 }
 0x72c   :  { %8537 = vmatpush3.bf16.msra.mxu1 %v10159_v33 }
 0x72d   :  { %8564 = vmatprep.subr.bf16.mxu1 %v10151_v20 }
 0x72f   :  { %8539 = vmatmul.mubr.msk.bf16.vlgmr.msra.gmra.mrb[60].mxu1 %vm1439_vm3, %v9299_v31  ;;  %v3420_v31 = vld [vmem:[%s11422_s11 + $0x28] sm:$0xff] }
 0x730   :  { %8565 = vmatpush3.bf16.msra.mxu1 %v10151_v20  ;;  %8568 = vmatprep.mubr.msk.bf16.mxu1 %vm1439_vm3, %v9300_v22 }
 0x731   :  { %8566 = vmatprep.subr.bf16.mxu1 %v10159_v33 }
 0x734   :  { %8567 = vmatpush3.bf16.msra.mxu1 %v10159_v33 }
 0x735   :  { %8594 = vmatprep.subr.bf16.mxu1 %v10151_v20 }
 0x737   :  { %8569 = vmatmul.mubr.msk.bf16.vlgmr.msra.gmra.mrb[64].mxu1 %vm1439_vm3, %v9301_v41  ;;  %v8804_v41 = vpack.c.bf16 %v3420_v31, %v3419_v27  ;;  %v7441_v27 = vld [vmem:[%s11422_s11 + $0xa8] sm:$0xff] }
 0x738   :  { %8595 = vmatpush3.bf16.msra.mxu1 %v10151_v20  ;;  %8598 = vmatprep.mubr.msk.bf16.mxu1 %vm1439_vm3, %v9302_v49  ;;  %v3421_v49 = vld [vmem:[%s11422_s11 + $0x30] sm:$0xff] }
 0x739   :  { %8596 = vmatprep.subr.bf16.mxu1 %v10159_v33 }
 0x73c   :  { %8597 = vmatpush3.bf16.msra.mxu1 %v10159_v33 }
 0x73d   :  { %8624 = vmatprep.subr.bf16.mxu1 %v10151_v20 }
 0x73f   :  { %8599 = vmatmul.mubr.msk.bf16.vlgmr.msra.gmra.mrb[68].mxu1 %vm1439_vm3, %v9303_v34  ;;  %v3422_v34 = vld [vmem:[%s11422_s11 + $0x38] sm:$0xff] }
 0x740   :  { %8625 = vmatpush3.bf16.msra.mxu1 %v10151_v20  ;;  %8628 = vmatprep.mubr.msk.bf16.mxu1 %vm1439_vm3, %v9304_v26 }
 0x741   :  { %8626 = vmatprep.subr.bf16.mxu1 %v10159_v33 }
 0x744   :  { %8627 = vmatpush3.bf16.msra.mxu1 %v10159_v33 }
 0x745   :  { %8654 = vmatprep.subr.bf16.mxu1 %v10151_v20 }
 0x747   :  { %8629 = vmatmul.mubr.msk.bf16.vlgmr.msra.gmra.mrb[72].mxu1 %vm1439_vm3, %v9305_v42 }
 0x748   :  { %8655 = vmatpush3.bf16.msra.mxu1 %v10151_v20  ;;  %8658 = vmatprep.mubr.msk.bf16.mxu1 %vm1439_vm3, %v9306_v32  ;;  %v3418_v20 = vld [vmem:[%s11422_s11 + $0x18] sm:$0xff]  ;;  %v8808_v32 = vpack.c.bf16 %v3422_v34, %v3421_v49  ;;  %v7442_v49 = vld [vmem:[%s11422_s11 + $0xb0] sm:$0xff] }
 0x749   :  { %8656 = vmatprep.subr.bf16.mxu1 %v10159_v33  ;;  %v8800_v28 = vpack.c.bf16 %v3418_v20, %v3417_v45  ;;  %v8812_v45 = vpack.c.bf16 %v7437_v6, %v7436_v36  ;;  %v7438_v20 = vld [vmem:[%s11422_s11 + $0x90] sm:$0xff]  ;;  %v7443_v34 = vld [vmem:[%s11422_s11 + $0xb8] sm:$0xff]  ;;  %v7456_v6 = vld [vmem:[%s11422_s11 + $0xc0] sm:$0xff] }
 0x74c   :  { %8657 = vmatpush3.bf16.msra.mxu1 %v10159_v33 }
 0x74f   :  { %8659 = vmatmul.mubr.msk.bf16.vlgmr.msra.gmra.mrb[76].mxu1 %vm1439_vm3, %v9307_v38 }
 0x750   :  { %8688 = vmatprep.mubr.msk.bf16.mxu1 %vm1439_vm3, %v10094_v47 }
 0x7ea   :  { %v8428_v37 = vpop.f32.mrb[48].mxu1  ;;  %v8420_v43 = vpop.f32.mrb[72].mxu0 }
 0x7eb   :  { %v3478_v24 = vpop.f32.mrb[49].mxu1  ;;  %v3400_v23 = vpop.f32.mrb[73].mxu0 }
 0x7ec   :  { %v8429_v33 = vpop.f32.mrb[50].mxu1  ;;  %8446 = vmatprep.mubr.msk.f32.mxu0 %vm284_vm0, %v3478_v24  ;;  %v8421_v52 = vpop.f32.mrb[74].mxu0 }
 0x7ed   :  { %v3481_v47 = vpop.f32.mrb[51].mxu1  ;;  %v3403_v22 = vpop.f32.mrb[75].mxu0 }
 0x7ee   :  { %8447 = vmatmul.mubr.msk.f32.vlgmr.msra.gmra.mrb[76].mxu0 %vm284_vm0, %v3481_v47  ;;  %v7440_v47 = vld [vmem:[%s11422_s11 + $0xa0] sm:$0xff] }
 0x7ef   :  { %8799 = vmatpush3.bf16.msra.mxu0 %v8796_v39  ;;  %8449 = vmatprep.mubr.msk.f32.mxu0 %vm284_vm0, %v8428_v37  ;;  %v7439_v37 = vld [vmem:[%s11422_s11 + $0x98] sm:$0xff] }
 0x7f0   :  { %8801 = vmatprep.subr.bf16.mxu0 %v8800_v28 }
 0x7f2   :  { %8450 = vmatmul.mubr.msk.f32.gmra.mrb[78].mxu0 %vm284_vm0, %v8429_v33  ;;  %v8480_v26 = vpop.f32.mrb[52].mxu1  ;;  %v8816_v33 = vpack.c.bf16 %v7439_v37, %v7438_v20  ;;  %v7458_v37 = vld [vmem:[%s11422_s11 + $0xd0] sm:$0xff] }
 0x7f3   :  { %8803 = vmatpush3.bf16.msra.mxu0 %v8800_v28  ;;  %8468 = vmatprep.mubr.msk.f32.mxu0 %vm284_vm0, %v3400_v23  ;;  %v3751_v42 = vpop.f32.mrb[53].mxu1 }
 0x7f4   :  { %8805 = vmatprep.subr.bf16.mxu0 %v8804_v41  ;;  %v8481_v38 = vpop.f32.mrb[54].mxu1 }
 0x7f5   :  { %v3754_v39 = vpop.f32.mrb[55].mxu1 }
 0x7f7   :  { %8807 = vmatpush3.bf16.msra.mxu0 %v8804_v41  ;;  %v8820_v41 = vpack.c.bf16 %v7441_v27, %v7440_v47 }
 0x7f8   :  { %8809 = vmatprep.subr.bf16.mxu0 %v8808_v32 }
 0x7fa   :  { %v10250_v24 = vpop.f32.mrb[56].mxu1 }
 0x7fb   :  { %8811 = vmatpush3.bf16.msra.mxu0 %v8808_v32  ;;  %v3931_v23 = vpop.f32.mrb[57].mxu1 }
 0x7fc   :  { %8813 = vmatprep.subr.bf16.mxu0 %v8812_v45  ;;  %v10252_v28 = vpop.f32.mrb[58].mxu1 }
 0x7fd   :  { %v10256_v31 = vpop.f32.mrb[59].mxu1 }
 0x7fe   :  { %8469 = vmatmul.mubr.msk.f32.vlgmr.msra.gmra.mrb[76].mxu0 %vm284_vm0, %v3403_v22  ;;  %v8824_v22 = vpack.c.bf16 %v7443_v34, %v7442_v49  ;;  %v7460_v34 = vld [vmem:[%s11422_s11 + $0xe0] sm:$0xff] }
 0x7ff   :  { %8471 = vmatprep.mubr.msk.f32.mxu0 %vm284_vm0, %v8420_v43  ;;  %8815 = vmatpush3.bf16.msra.mxu0 %v8812_v45  ;;  %v7457_v45 = vld [vmem:[%s11422_s11 + $0xc8] sm:$0xff] }
 0x800   :  { %8817 = vmatprep.subr.bf16.mxu0 %v8816_v33 }
 0x802   :  { %8472 = vmatmul.mubr.msk.f32.gmra.mrb[78].mxu0 %vm284_vm0, %v8421_v52  ;;  %v10263_v32 = vpop.f32.mrb[60].mxu1  ;;  %v8828_v52 = vpack.c.bf16 %v7457_v45, %v7456_v6  ;;  %v7463_v6 = vld [vmem:[%s11422_s11 + $0xf8] sm:$0xff] }
 0x803   :  { %8819 = vmatpush3.bf16.msra.mxu0 %v8816_v33  ;;  %8498 = vmatprep.mubr.msk.f32.mxu0 %vm284_vm0, %v3751_v42  ;;  %v10266_v36 = vpop.f32.mrb[61].mxu1  ;;  %v7459_v33 = vld [vmem:[%s11422_s11 + $0xd8] sm:$0xff] }
 0x804   :  { %8821 = vmatprep.subr.bf16.mxu0 %v8820_v41  ;;  %v10268_v43 = vpop.f32.mrb[62].mxu1  ;;  %v8832_v27 = vpack.c.bf16 %v7459_v33, %v7458_v37 }
 0x805   :  { %v10272_v20 = vpop.f32.mrb[63].mxu1 }
 0x807   :  { %8823 = vmatpush3.bf16.msra.mxu0 %v8820_v41  ;;  %v8836_v41 = vpack.c.bf16 %v7461_v18, %v7460_v34  ;;  %v7476_v18 = vld [vmem:[%s11422_s11 + $0x100] sm:$0xff]  ;;  %v7478_v34 = vld [vmem:[%s11422_s11 + $0x110] sm:$0xff] }
 0x808   :  { %8825 = vmatprep.subr.bf16.mxu0 %v8824_v22 }
 0x80a   :  { %v10276_v42 = vpop.f32.mrb[64].mxu1 }
 0x80b   :  { %8827 = vmatpush3.bf16.msra.mxu0 %v8824_v22  ;;  %v10278_v47 = vpop.f32.mrb[65].mxu1  ;;  %v7462_v22 = vld [vmem:[%s11422_s11 + $0xf0] sm:$0xff] }
 0x80c   :  { %8829 = vmatprep.subr.bf16.mxu0 %v8828_v52  ;;  %v10280_v49 = vpop.f32.mrb[66].mxu1 }
 0x80d   :  { %v10284_v17 = vpop.f32.mrb[67].mxu1 }
 0x80e   :  { %8499 = vmatmul.mubr.msk.f32.vlgmr.msra.gmra.mrb[76].mxu0 %vm284_vm0, %v3754_v39  ;;  %v8840_v39 = vpack.c.bf16 %v7463_v6, %v7462_v22 }
 0x80f   :  { %8501 = vmatprep.mubr.msk.f32.mxu0 %vm284_vm0, %v8480_v26  ;;  %8831 = vmatpush3.bf16.msra.mxu0 %v8828_v52  ;;  %v7477_v52 = vld [vmem:[%s11422_s11 + $0x108] sm:$0xff] }
 0x810   :  { %8833 = vmatprep.subr.bf16.mxu0 %v8832_v27 }
 0x812   :  { %8502 = vmatmul.mubr.msk.f32.gmra.mrb[78].mxu0 %vm284_vm0, %v8481_v38  ;;  %v10291_v45 = vpop.f32.mrb[68].mxu1  ;;  %v8844_v38 = vpack.c.bf16 %v7477_v52, %v7476_v18  ;;  %v7483_v18 = vld [vmem:[%s11422_s11 + $0x138] sm:$0xff] }
 0x813   :  { %8835 = vmatpush3.bf16.msra.mxu0 %v8832_v27  ;;  %8528 = vmatprep.mubr.msk.f32.mxu0 %vm284_vm0, %v3931_v23  ;;  %v10294_v37 = vpop.f32.mrb[69].mxu1  ;;  %v7479_v27 = vld [vmem:[%s11422_s11 + $0x118] sm:$0xff] }
 0x814   :  { %8837 = vmatprep.subr.bf16.mxu0 %v8836_v41  ;;  %v10296_v26 = vpop.f32.mrb[70].mxu1  ;;  %v8848_v22 = vpack.c.bf16 %v7479_v27, %v7478_v34  ;;  %v7498_v27 = vld [vmem:[%s11422_s11 + $0x150] sm:$0xff] }
 0x815   :  { %v10300_v33 = vpop.f32.mrb[71].mxu1 }
 0x817   :  { %8839 = vmatpush3.bf16.msra.mxu0 %v8836_v41  ;;  %v8852_v41 = vpack.c.bf16 %v7481_v10, %v7480_v11  ;;  %v7496_v11 = vld [vmem:[%s11422_s11 + $0x140] sm:$0xff] }
 0x818   :  { %8841 = vmatprep.subr.bf16.mxu0 %v8840_v39 }
 0x81a   :  { %v10304_v23 = vpop.f32.mrb[72].mxu1 }
 0x81b   :  { %8843 = vmatpush3.bf16.msra.mxu0 %v8840_v39  ;;  %v10306_v12 = vpop.f32.mrb[73].mxu1  ;;  %v7482_v39 = vld [vmem:[%s11422_s11 + $0x130] sm:$0xff] }
 0x81c   :  { %8845 = vmatprep.subr.bf16.mxu0 %v8844_v38  ;;  %v10308_v6 = vpop.f32.mrb[74].mxu1 }
 0x81d   :  { %v10312_v9 = vpop.f32.mrb[75].mxu1 }
 0x81e   :  { %8529 = vmatmul.mubr.msk.f32.vlgmr.msra.gmra.mrb[76].mxu0 %vm284_vm0, %v10256_v31 }
 0x81f   :  { %8531 = vmatprep.mubr.msk.f32.mxu0 %vm284_vm0, %v10250_v24  ;;  %8847 = vmatpush3.bf16.msra.mxu0 %v8844_v38  ;;  %v8856_v24 = vpack.c.bf16 %v7483_v18, %v7482_v39  ;;  %v7497_v38 = vld [vmem:[%s11422_s11 + $0x148] sm:$0xff]  ;;  %v7502_v18 = vld [vmem:[%s11422_s11 + $0x170] sm:$0xff] }
 0x820   :  { %8849 = vmatprep.subr.bf16.mxu0 %v8848_v22  ;;  %v7501_v39 = vld [vmem:[%s11422_s11 + $0x168] sm:$0xff] }
 0x822   :  { %8532 = vmatmul.mubr.msk.f32.gmra.mrb[78].mxu0 %vm284_vm0, %v10252_v28  ;;  %v10322_v52 = vpop.f32.mrb[76].mxu1  ;;  %v8860_v28 = vpack.c.bf16 %v7497_v38, %v7496_v11  ;;  %v7503_v11 = vld [vmem:[%s11422_s11 + $0x178] sm:$0xff]  ;;  %v7518_v38 = vld [vmem:[%s11422_s11 + $0x190] sm:$0xff] }
 0x823   :  { %8851 = vmatpush3.bf16.msra.mxu0 %v8848_v22  ;;  %8558 = vmatprep.mubr.msk.f32.mxu0 %vm284_vm0, %v10266_v36  ;;  %v10326_v31 = vpop.f32.mrb[77].mxu1  ;;  %v7499_v22 = vld [vmem:[%s11422_s11 + $0x158] sm:$0xff] }
 0x824   :  { %8853 = vmatprep.subr.bf16.mxu0 %v8852_v41  ;;  %v10328_v10 = vpop.f32.mrb[78].mxu1  ;;  %v8864_v36 = vpack.c.bf16 %v7499_v22, %v7498_v27  ;;  %v7520_v27 = vld [vmem:[%s11422_s11 + $0x1a0] sm:$0xff]  ;;  %v7521_v22 = vld [vmem:[%s11422_s11 + $0x1a8] sm:$0xff] }
 0x825   :  { %v10332_v34 = vpop.f32.mrb[79].mxu1 }
 0x827   :  { %8855 = vmatpush3.bf16.msra.mxu0 %v8852_v41  ;;  %v8868_v41 = vpack.c.bf16 %v7501_v39, %v7500_v16  ;;  %v7523_v39 = vld [vmem:[%s11422_s11 + $0x1b8] sm:$0xff] }
 0x828   :  { %8857 = vmatprep.subr.bf16.mxu0 %v8856_v24 }
 0x82b   :  { %8859 = vmatpush3.bf16.msra.mxu0 %v8856_v24  ;;  %v7516_v24 = vld [vmem:[%s11422_s11 + $0x180] sm:$0xff] }
 0x82c   :  { %8861 = vmatprep.subr.bf16.mxu0 %v8860_v28 }
 0x82e   :  { %8559 = vmatmul.mubr.msk.f32.vlgmr.msra.gmra.mrb[76].mxu0 %vm284_vm0, %v10272_v20  ;;  %v8872_v20 = vpack.c.bf16 %v7503_v11, %v7502_v18  ;;  %v7538_v11 = vld [vmem:[%s11422_s11 + $0x1d0] sm:$0xff] }
 0x82f   :  { %8561 = vmatprep.mubr.msk.f32.mxu0 %vm284_vm0, %v10263_v32  ;;  %8863 = vmatpush3.bf16.msra.mxu0 %v8860_v28  ;;  %v7517_v32 = vld [vmem:[%s11422_s11 + $0x188] sm:$0xff]  ;;  %v7519_v28 = vld [vmem:[%s11422_s11 + $0x198] sm:$0xff] }
 0x830   :  { %8865 = vmatprep.subr.bf16.mxu0 %v8864_v36  ;;  %v8876_v16 = vpack.c.bf16 %v7517_v32, %v7516_v24  ;;  %v7540_v24 = vld [vmem:[%s11422_s11 + $0x1e0] sm:$0xff]  ;;  %v7541_v32 = vld [vmem:[%s11422_s11 + $0x1e8] sm:$0xff] }
 0x832   :  { %8562 = vmatmul.mubr.msk.f32.gmra.mrb[78].mxu0 %vm284_vm0, %v10268_v43  ;;  %v8880_v43 = vpack.c.bf16 %v7519_v28, %v7518_v38  ;;  %v7543_v38 = vld [vmem:[%s11422_s11 + $0x1f8] sm:$0xff]  ;;  %v7556_v28 = vld [vmem:[%s11422_s11 + $0x200] sm:$0xff] }
 0x833   :  { %8867 = vmatpush3.bf16.msra.mxu0 %v8864_v36  ;;  %8588 = vmatprep.mubr.msk.f32.mxu0 %vm284_vm0, %v10278_v47  ;;  %v8884_v47 = vpack.c.bf16 %v7521_v22, %v7520_v27  ;;  %v7522_v36 = vld [vmem:[%s11422_s11 + $0x1b0] sm:$0xff]  ;;  %v7559_v22 = vld [vmem:[%s11422_s11 + $0x218] sm:$0xff] }
 0x834   :  { %8869 = vmatprep.subr.bf16.mxu0 %v8868_v41  ;;  %v7558_v27 = vld [vmem:[%s11422_s11 + $0x210] sm:$0xff] }
 0x837   :  { %8871 = vmatpush3.bf16.msra.mxu0 %v8868_v41  ;;  %v7536_v41 = vld [vmem:[%s11422_s11 + $0x1c0] sm:$0xff] }
 0x838   :  { %8873 = vmatprep.subr.bf16.mxu0 %v8872_v20 }
 0x83b   :  { %8875 = vmatpush3.bf16.msra.mxu0 %v8872_v20  ;;  %v7539_v20 = vld [vmem:[%s11422_s11 + $0x1d8] sm:$0xff] }
 0x83c   :  { %8877 = vmatprep.subr.bf16.mxu0 %v8876_v16 }
 0x83e   :  { %8589 = vmatmul.mubr.msk.f32.vlgmr.msra.gmra.mrb[76].mxu0 %vm284_vm0, %v10284_v17  ;;  %v8888_v17 = vpack.c.bf16 %v7523_v39, %v7522_v36  ;;  %v7561_v36 = vld [vmem:[%s11422_s11 + $0x228] sm:$0xff]  ;;  %v7562_v39 = vld [vmem:[%s11422_s11 + $0x230] sm:$0xff] }
 0x83f   :  { %8591 = vmatprep.mubr.msk.f32.mxu0 %vm284_vm0, %v10276_v42  ;;  %8879 = vmatpush3.bf16.msra.mxu0 %v8876_v16  ;;  %v7537_v42 = vld [vmem:[%s11422_s11 + $0x1c8] sm:$0xff]  ;;  %v7542_v16 = vld [vmem:[%s11422_s11 + $0x1f0] sm:$0xff] }
 0x840   :  { %8881 = vmatprep.subr.bf16.mxu0 %v8880_v43  ;;  %v8892_v18 = vpack.c.bf16 %v7537_v42, %v7536_v41 }
 0x842   :  { %8592 = vmatmul.mubr.msk.f32.gmra.mrb[78].mxu0 %vm284_vm0, %v10280_v49  ;;  %v8896_v49 = vpack.c.bf16 %v7539_v20, %v7538_v11 }
 0x843   :  { %8883 = vmatpush3.bf16.msra.mxu0 %v8880_v43  ;;  %8618 = vmatprep.mubr.msk.f32.mxu0 %vm284_vm0, %v10294_v37  ;;  %v8900_v37 = vpack.c.bf16 %v7541_v32, %v7540_v24 }
 0x844   :  { %8885 = vmatprep.subr.bf16.mxu0 %v8884_v47 }
 0x847   :  { %8887 = vmatpush3.bf16.msra.mxu0 %v8884_v47  ;;  %v8912_v47 = vpack.c.bf16 %v7559_v22, %v7558_v27 }
 0x848   :  { %8889 = vmatprep.subr.bf16.mxu0 %v8888_v17 }
 0x84b   :  { %8891 = vmatpush3.bf16.msra.mxu0 %v8888_v17  ;;  %v7563_v17 = vld [vmem:[%s11422_s11 + $0x238] sm:$0xff] }
 0x84c   :  { %8893 = vmatprep.subr.bf16.mxu0 %v8892_v18  ;;  %v8920_v41 = vpack.c.bf16 %v7563_v17, %v7562_v39 }
 0x84e   :  { %8619 = vmatmul.mubr.msk.f32.vlgmr.msra.gmra.mrb[76].mxu0 %vm284_vm0, %v10300_v33  ;;  %v8904_v33 = vpack.c.bf16 %v7543_v38, %v7542_v16 }
 0x84f   :  { %8621 = vmatprep.mubr.msk.f32.mxu0 %vm284_vm0, %v10291_v45  ;;  %8895 = vmatpush3.bf16.msra.mxu0 %v8892_v18  ;;  %v7557_v45 = vld [vmem:[%s11422_s11 + $0x208] sm:$0xff] }
 0x850   :  { %8897 = vmatprep.subr.bf16.mxu0 %v8896_v49  ;;  %v8908_v43 = vpack.c.bf16 %v7557_v45, %v7556_v28 }
 0x852   :  { %8622 = vmatmul.mubr.msk.f32.gmra.mrb[78].mxu0 %vm284_vm0, %v10296_v26  ;;  %v7560_v26 = vld [vmem:[%s11422_s11 + $0x220] sm:$0xff] }
 0x853   :  { %8899 = vmatpush3.bf16.msra.mxu0 %v8896_v49  ;;  %8648 = vmatprep.mubr.msk.f32.mxu0 %vm284_vm0, %v10306_v12  ;;  %v8916_v12 = vpack.c.bf16 %v7561_v36, %v7560_v26 }
 0x854   :  { %8901 = vmatprep.subr.bf16.mxu0 %v8900_v37 }
 0x857   :  { %8903 = vmatpush3.bf16.msra.mxu0 %v8900_v37 }
 0x858   :  { %8905 = vmatprep.subr.bf16.mxu0 %v8904_v33 }
 0x85b   :  { %8907 = vmatpush3.bf16.msra.mxu0 %v8904_v33 }
 0x85c   :  { %8909 = vmatprep.subr.bf16.mxu0 %v8908_v43 }
 0x85e   :  { %8649 = vmatmul.mubr.msk.f32.vlgmr.msra.gmra.mrb[76].mxu0 %vm284_vm0, %v10312_v9  ;;  %v11423_v9 = vmov 0  }
 0x85f   :  { %8651 = vmatprep.mubr.msk.f32.mxu0 %vm284_vm0, %v10304_v23  ;;  %8911 = vmatpush3.bf16.msra.mxu0 %v8908_v43  ;;  %v4968_v23 = vpop.permute.xlu1 %4967 }
 0x860   :  { %8913 = vmatprep.subr.bf16.mxu0 %v8912_v47 }
 0x862   :  { %8652 = vmatmul.mubr.msk.f32.gmra.mrb[78].mxu0 %vm284_vm0, %v10308_v6  ;;  %v4963_v6 = vpop.permute.xlu0 %4962 }
 0x863   :  { %8915 = vmatpush3.bf16.msra.mxu0 %v8912_v47  ;;  %8678 = vmatprep.mubr.msk.f32.mxu0 %vm284_vm0, %v10326_v31  ;;  %v4996_v42 = vpop.permute.xlu1 %4995 }
 0x864   :  { %8917 = vmatprep.subr.bf16.mxu0 %v8916_v12 }
 0x866   :  { %v4991_v31 = vpop.permute.xlu0 %4990 }
 0x867   :  { %8919 = vmatpush3.bf16.msra.mxu0 %v8916_v12  ;;  %v4978_v18 = vpop.permute.xlu1 %4977 }
 0x868   :  { %8921 = vmatprep.subr.bf16.mxu0 %v8920_v41 }
 0x86a   :  { %v4973_v20 = vpop.permute.xlu0 %4972 }
 0x86b   :  { %8923 = vmatpush3.bf16.msra.mxu0 %v8920_v41 }
 0x86e   :  { %8679 = vmatmul.mubr.msk.f32.vlgmr.msra.gmra.mrb[76].mxu0 %vm284_vm0, %v10332_v34  ;;  %v5001_v45 = vpop.permute.xlu0 %5000 }
 0x86f   :  { %8681 = vmatprep.mubr.msk.f32.mxu0 %vm284_vm0, %v10322_v52 }
 0x872   :  { %8682 = vmatmul.mubr.msk.f32.gmra.mrb[78].mxu0 %vm284_vm0, %v10328_v10  ;;  %v5006_v10 = vpop.permute.xlu1 %5005 }
 0x873   :  { %5682 = vmatprep.mubr.bf16.mxu0 %v11423_v9 }
 0x941   :  { %v8680_v11 = vpop.f32.mrb[76].mxu0 }
 0x942   :  { %v4981_v49 = vmul.f32 %v8680_v11, %v4968_v23  ;;  %v4933_v24 = vpop.f32.mrb[77].mxu0  ;;  %v5126_v11 = vld [vmem:[%s11424_s16] sm:$0xff] }
 0x943   :  { %v4980_v32 = vmul.f32 %v4963_v6, %v4933_v24 }
 0x944   :  { %v10403_v37 = vadd.f32 %v4996_v42, %v4981_v49  ;;  %v5151_v49 = vld [vmem:[%s11424_s16 + $0xc8] sm:$0xff] }
 0x945   :  { %v10405_v34 = vadd.f32 %v4991_v31, %v4980_v32  ;;  %v8683_v52 = vpop.f32.mrb[78].mxu0 }
 0x946   :  { %v4983_v16 = vmul.f32 %v8683_v52, %v4978_v18  ;;  %v4943_v38 = vpop.f32.mrb[79].mxu0  ;;  %v5127_v18 = vld [vmem:[%s11424_s16 + $0x8] sm:$0xff]  ;;  %v5142_v52 = vld [vmem:[%s11424_s16 + $0x80] sm:$0xff] }
 0x947   :  { %v4982_v33 = vmul.f32 %v4973_v20, %v4943_v38  ;;  %v5012_v28 = vpack.c.bf16 %v10403_v37, %v10405_v34  ;;  %v5134_v20 = vld [vmem:[%s11424_s16 + $0x40] sm:$0xff]  ;;  %v5159_v38 = vld [vmem:[%s11424_s16 + $0x108] sm:$0xff] }
 0x948   :  { %v10409_v43 = vadd.f32 %v5006_v10, %v4983_v16  ;;  %v8926_v24 = vpack.c.bf16 %v5134_v20, %v5126_v11  ;;  %v5150_v16 = vld [vmem:[%s11424_s16 + $0xc0] sm:$0xff]  ;;  %v5167_v10 = vld [vmem:[%s11424_s16 + $0x148] sm:$0xff] }
 0x949   :  { %v10411_v27 = vadd.f32 %v5001_v45, %v4982_v33  ;;  %8684 = vmatprep.subr.bf16.mxu1 %v5012_v28  ;;  %v8930_v33 = vpack.c.bf16 %v5150_v16, %v5142_v52  ;;  %v5158_v45 = vld [vmem:[%s11424_s16 + $0x100] sm:$0xff]  ;;  %v5144_v52 = vld [vmem:[%s11424_s16 + $0x90] sm:$0xff] }
 0x94a   :  { %8685 = vmatpush3.bf16.msra.mxu1 %v5012_v28  ;;  %v8932_v28 = vpack.c.bf16 %v5167_v10, %v5159_v38  ;;  %v5152_v16 = vld [vmem:[%s11424_s16 + $0xd0] sm:$0xff]  ;;  %v5161_v38 = vld [vmem:[%s11424_s16 + $0x118] sm:$0xff] }
 0x94b   :  { %v5013_v22 = vpack.c.bf16 %v10409_v43, %v10411_v27  ;;  %v5169_v10 = vld [vmem:[%s11424_s16 + $0x158] sm:$0xff] }
 0x94d   :  { %8686 = vmatprep.subr.bf16.mxu1 %v5013_v22 }
 0x94e   :  { %8687 = vmatpush3.bf16.msra.mxu1 %v5013_v22  ;;  %v5166_v22 = vld [vmem:[%s11424_s16 + $0x140] sm:$0xff] }
 0x951   :  { %8689 = vmatmul.mubr.msk.bf16.vlgmr.msra.gmra.mrb[80].mxu1 %vm1439_vm3, %v10099_v48 }
 0x952   :  { %8696 = vmatprep.mubr.msk.bf16.mxu1 %vm1439_vm3, %v10104_v19 }
 0xa24   :  { %v8690_v47 = vpop.f32.mrb[80].mxu1 }
 0xa25   :  { %v5057_v26 = vadd.f32 %v8690_v47, %v10112_v29  ;;  %v5048_v36 = vpop.f32.mrb[81].mxu1  ;;  %v8934_v47 = vpack.c.bf16 %v5166_v22, %v5158_v45  ;;  %v5168_v45 = vld [vmem:[%s11424_s16 + $0x150] sm:$0xff]  ;;  %v5177_v22 = vld [vmem:[%s11424_s16 + $0x198] sm:$0xff] }
 0xa26   :  { %v5049_v12 = vadd.f32 %v5048_v36, %v10108_v50  ;;  %v8691_v39 = vpop.f32.mrb[82].mxu1  ;;  %v5135_v50 = vld [vmem:[%s11424_s16 + $0x48] sm:$0xff] }
 0xa27   :  { %v5060_v17 = vadd.f32 %v8691_v39, %v10115_v40  ;;  %v5051_v41 = vpop.f32.mrb[83].mxu1  ;;  %v5065_v23 = vmax.f32 %v5057_v26, 0.0  ;;  %v8924_v40 = vpack.c.bf16 %v5135_v50, %v5127_v18  ;;  %v5175_v26 = vld [vmem:[%s11424_s16 + $0x188] sm:$0xff]  ;;  %v5174_v39 = vld [vmem:[%s11424_s16 + $0x180] sm:$0xff]  ;;  %v5145_v18 = vld [vmem:[%s11424_s16 + $0x98] sm:$0xff] }
 0xa28   :  { %v5052_v48 = vadd.f32 %v5051_v41, %v10110_v25  ;;  %v5063_v19 = vmax.f32 %v5049_v12, 0.0  ;;  %v5143_v25 = vld [vmem:[%s11424_s16 + $0x88] sm:$0xff]  ;;  %v5129_v41 = vld [vmem:[%s11424_s16 + $0x18] sm:$0xff] }
 0xa29   :  { %v5066_v6 = vmax.f32 %v5060_v17, 0.0  ;;  %v8928_v32 = vpack.c.bf16 %v5151_v49, %v5143_v25  ;;  %v5183_v36 = vld [vmem:[%s11424_s16 + $0x1c8] sm:$0xff]  ;;  %v5153_v50 = vld [vmem:[%s11424_s16 + $0xd8] sm:$0xff] }
 0xa2a   :  { %v5064_v42 = vmax.f32 %v5052_v48, 0.0  ;;  %v8936_v12 = vpack.c.bf16 %v5183_v36, %v5175_v26  ;;  %v5137_v48 = vld [vmem:[%s11424_s16 + $0x58] sm:$0xff] }
 0xa2b   :  { %v5068_v31 = vpack.c.bf16 %v5066_v6, %v5065_v23  ;;  %v8940_v23 = vpack.c.bf16 %v5137_v48, %v5129_v41  ;;  %v9378_v6 = vmov 0.0   ;;  %v5130_v48 = vld [vmem:[%s11424_s16 + $0x20] sm:$0xff] }
 0xa2c   :  { %v5067_v29 = vpack.c.bf16 %v5064_v42, %v5063_v19  ;;  %v5128_v42 = vld [vmem:[%s11424_s16 + $0x10] sm:$0xff] }
 0xa2e   :  { %8692 = vmatprep.subr.bf16.mxu1 %v5067_v29 }
 0xa2f   :  { %8693 = vmatpush3.bf16.msra.mxu1 %v5067_v29 }
 0xa30   :  { %8694 = vmatprep.subr.bf16.mxu1 %v5068_v31 }
 0xa33   :  { %8695 = vmatpush3.bf16.msra.mxu1 %v5068_v31  ;;  %v5136_v31 = vld [vmem:[%s11424_s16 + $0x50] sm:$0xff] }
 0xa34   :  { %8925 = vmatprep.subr.bf16.mxu1 %v8924_v40  ;;  %v8942_v25 = vpack.c.bf16 %v5136_v31, %v5128_v42  ;;  %v5155_v42 = vld [vmem:[%s11424_s16 + $0xe8] sm:$0xff] }
 0xa36   :  { %8697 = vmatmul.mubr.msk.bf16.vlgmr.msra.gmra.mrb[84].mxu1 %vm1439_vm3, %v10121_v21  ;;  %v5182_v21 = vld [vmem:[%s11424_s16 + $0x1c0] sm:$0xff] }
 0xa37   :  { %8927 = vmatpush1.bf16.msra.mxu1 %v8926_v24  ;;  %v8938_v17 = vpack.c.bf16 %v5182_v21, %v5174_v39  ;;  %5266 = vmatprep.mubr.f32.mxu1 %v9378_v6  ;;  %v5184_v39 = vld [vmem:[%s11424_s16 + $0x1d0] sm:$0xff]  ;;  %v5131_v21 = vld [vmem:[%s11424_s16 + $0x28] sm:$0xff] }
 0xa38   :  { %8929 = vmatprep.subr.bf16.mxu1 %v8928_v32  ;;  %v8944_v32 = vpack.c.bf16 %v5153_v50, %v5145_v18  ;;  %v5154_v18 = vld [vmem:[%s11424_s16 + $0xe0] sm:$0xff]  ;;  %v5163_v50 = vld [vmem:[%s11424_s16 + $0x128] sm:$0xff] }
 0xa3b   :  { %8931 = vmatpush1.bf16.msra.mxu1 %v8930_v33 }
 0xa3c   :  { %8933 = vmatprep.subr.bf16.mxu1 %v8932_v28  ;;  %v5160_v28 = vld [vmem:[%s11424_s16 + $0x110] sm:$0xff] }
 0xa3f   :  { %8935 = vmatpush1.bf16.msra.mxu1 %v8934_v47  ;;  %v5185_v47 = vld [vmem:[%s11424_s16 + $0x1d8] sm:$0xff] }
 0xa40   :  { %8937 = vmatprep.subr.bf16.mxu1 %v8936_v12  ;;  %v8952_v36 = vpack.c.bf16 %v5185_v47, %v5177_v22  ;;  %v5176_v12 = vld [vmem:[%s11424_s16 + $0x190] sm:$0xff] }
 0xa41   :  { %v5132_v22 = vld [vmem:[%s11424_s16 + $0x30] sm:$0xff] }
 0xa42   :  { %v5140_v47 = vld [vmem:[%s11424_s16 + $0x70] sm:$0xff] }
 0xa43   :  { %8939 = vmatpush1.bf16.msra.mxu1 %v8938_v17  ;;  %v5139_v17 = vld [vmem:[%s11424_s16 + $0x68] sm:$0xff] }
 0xa44   :  { %8941 = vmatprep.subr.bf16.mxu1 %v8940_v23  ;;  %v8956_v41 = vpack.c.bf16 %v5139_v17, %v5131_v21  ;;  %v5138_v23 = vld [vmem:[%s11424_s16 + $0x60] sm:$0xff]  ;;  %v5156_v21 = vld [vmem:[%s11424_s16 + $0xf0] sm:$0xff]  ;;  %v5165_v17 = vld [vmem:[%s11424_s16 + $0x138] sm:$0xff] }
 0xa45   :  { %v8958_v31 = vpack.c.bf16 %v5138_v23, %v5130_v48  ;;  %v5164_v23 = vld [vmem:[%s11424_s16 + $0x130] sm:$0xff] }
 0xb09   :  { %v8698_v19 = vpop.f32.mrb[84].mxu1 }
 0xb0a   :  { %v5103_v29 = vpop.f32.mrb[85].mxu1 }
 0xb0b   :  { %v5118_v40 = vadd.f32 %v5103_v29, %v10405_v34  ;;  %v8699_v11 = vpop.f32.mrb[86].mxu1  ;;  %v8946_v34 = vpack.c.bf16 %v5152_v16, %v5144_v52  ;;  %v5146_v29 = vld [vmem:[%s11424_s16 + $0xa0] sm:$0xff]  ;;  %v5187_v52 = vld [vmem:[%s11424_s16 + $0x1e8] sm:$0xff] }
 0xb0c   :  { %v5106_v20 = vpop.f32.mrb[87].mxu1  ;;  %v5121_v26 = vadd.f32 %v8699_v11, %v10409_v43  ;;  %v8962_v11 = vpack.c.bf16 %v5154_v18, %v5146_v29  ;;  %v5180_v18 = vld [vmem:[%s11424_s16 + $0x1b0] sm:$0xff] }
 0xb0d   :  { %v10450_v49 = vadd.f32 %v5118_v40, %v10127_v46  ;;  %v5119_v24 = vadd.f32 %v5106_v20, %v10403_v37  ;;  %v5120_v46 = vadd.f32 %v8698_v19, %v10411_v27  ;;  %v8948_v37 = vpack.c.bf16 %v5169_v10, %v5161_v38  ;;  %v5147_v19 = vld [vmem:[%s11424_s16 + $0xa8] sm:$0xff]  ;;  %v5178_v10 = vld [vmem:[%s11424_s16 + $0x1a0] sm:$0xff] }
 0xb0e   :  { %v8950_v27 = vpack.c.bf16 %v5168_v45, %v5160_v28  ;;  %v10483_v43 = vadd.f32 %v5121_v26, %v10138_v30  ;;  %v8960_v30 = vpack.c.bf16 %v5155_v42, %v5147_v19  ;;  %v5171_v40 = vld [vmem:[%s11424_s16 + $0x168] sm:$0xff]  ;;  %v5157_v26 = vld [vmem:[%s11424_s16 + $0xf8] sm:$0xff]  ;;  %v5172_v19 = vld [vmem:[%s11424_s16 + $0x170] sm:$0xff] }
 0xb0f   :  { %7572 = vmatmul.mubr.msk.f32.vlgmr.msra.gmra.mrb[88].mxu1 %vm284_vm0, %v10450_v49  ;;  %v10462_v33 = vadd.f32 %v5119_v24, %v10129_v44  ;;  %v10472_v44 = vadd.f32 %v5120_v46, %v10132_v35  ;;  %v8954_v35 = vpack.c.bf16 %v5184_v39, %v5176_v12  ;;  %v8964_v20 = vpack.c.bf16 %v5171_v40, %v5163_v50  ;;  %v5170_v24 = vld [vmem:[%s11424_s16 + $0x160] sm:$0xff]  ;;  %v5133_v46 = vld [vmem:[%s11424_s16 + $0x38] sm:$0xff]  ;;  %v5148_v39 = vld [vmem:[%s11424_s16 + $0xb0] sm:$0xff] }
 0xb10   :  { %8943 = vmatpush1.bf16.msra.mxu1 %v8942_v25  ;;  %5272 = vmatprep.mubr.f32.mxu1 %v9378_v6  ;;  %v5162_v25 = vld [vmem:[%s11424_s16 + $0x120] sm:$0xff]  ;;  %v5181_v42 = vld [vmem:[%s11424_s16 + $0x1b8] sm:$0xff]  ;;  %v5188_v50 = vld [vmem:[%s11424_s16 + $0x1f0] sm:$0xff] }
 0xb11   :  { %8945 = vmatprep.subr.bf16.mxu1 %v8944_v32  ;;  %v5179_v32 = vld [vmem:[%s11424_s16 + $0x1a8] sm:$0xff]  ;;  %v8966_v16 = vpack.c.bf16 %v5170_v24, %v5162_v25  ;;  %v8986_v40 = vpack.c.bf16 %v5188_v50, %v5180_v18 }
 0xb12   :  { %v8968_v38 = vpack.c.bf16 %v5187_v52, %v5179_v32 }
 0xb13   :  { %7573 = vmatmul.mubr.msk.f32.gmra.mrb[90].mxu1 %vm284_vm0, %v10462_v33 }
 0xb14   :  { %8947 = vmatpush1.bf16.msra.mxu1 %v8946_v34  ;;  %5278 = vmatprep.mubr.f32.mxu1 %v9378_v6  ;;  %v5186_v34 = vld [vmem:[%s11424_s16 + $0x1e0] sm:$0xff] }
 0xb15   :  { %8949 = vmatprep.subr.bf16.mxu1 %v8948_v37  ;;  %v5141_v37 = vld [vmem:[%s11424_s16 + $0x78] sm:$0xff]  ;;  %v8970_v28 = vpack.c.bf16 %v5186_v34, %v5178_v10 }
 0xb16   :  { %v8972_v45 = vpack.c.bf16 %v5141_v37, %v5133_v46 }
 0xb17   :  { %7574 = vmatmul.mubr.msk.f32.gmra.mrb[92].mxu1 %vm284_vm0, %v10472_v44 }
 0xb18   :  { %8951 = vmatpush1.bf16.msra.mxu1 %v8950_v27  ;;  %5284 = vmatprep.mubr.f32.mxu1 %v9378_v6  ;;  %v5149_v27 = vld [vmem:[%s11424_s16 + $0xb8] sm:$0xff] }
 0xb19   :  { %8953 = vmatprep.subr.bf16.mxu1 %v8952_v36  ;;  %v8974_v36 = vpack.c.bf16 %v5140_v47, %v5132_v22  ;;  %v8976_v12 = vpack.c.bf16 %v5157_v26, %v5149_v27 }
 0xb1b   :  { %7575 = vmatmul.mubr.msk.f32.gmra.mrb[94].mxu1 %vm284_vm0, %v10483_v43 }
 0xb1c   :  { %8955 = vmatpush1.bf16.msra.mxu1 %v8954_v35  ;;  %5355 = vmatprep.mubr.f32.mxu1 %v9378_v6  ;;  %v5173_v35 = vld [vmem:[%s11424_s16 + $0x178] sm:$0xff] }
 0xb1d   :  { %8957 = vmatprep.subr.bf16.mxu1 %v8956_v41  ;;  %v8978_v41 = vpack.c.bf16 %v5156_v21, %v5148_v39  ;;  %v8980_v48 = vpack.c.bf16 %v5173_v35, %v5165_v17 }
 0xb1f   :  { %7576 = vmatmul.mubr.msk.f32.vlgmr.msra.gmra.mrb[96].mxu1 %vm284_vm0, %v10450_v49 }
 0xb20   :  { %8959 = vmatpush1.bf16.msra.mxu1 %v8958_v31  ;;  %5361 = vmatprep.mubr.f32.mxu1 %v9378_v6  ;;  %v5189_v31 = vld [vmem:[%s11424_s16 + $0x1f8] sm:$0xff] }
 0xb21   :  { %8961 = vmatprep.subr.bf16.mxu1 %v8960_v30  ;;  %v8982_v30 = vpack.c.bf16 %v5172_v19, %v5164_v23  ;;  %v8984_v29 = vpack.c.bf16 %v5189_v31, %v5181_v42 }
 0xb23   :  { %7577 = vmatmul.mubr.msk.f32.gmra.mrb[98].mxu1 %vm284_vm0, %v10462_v33 }
 0xb24   :  { %8963 = vmatpush1.bf16.msra.mxu1 %v8962_v11  ;;  %5367 = vmatprep.mubr.f32.mxu1 %v9378_v6  ;;  %v10554_v11 = vpop.permute.xlu0 %509 }
 0xb25   :  { %8965 = vmatprep.subr.bf16.mxu1 %v8964_v20  ;;  %v528_v25 = vmul.f32 %v10554_v11, %v9900_v53 }
 0xb27   :  { %7578 = vmatmul.mubr.msk.f32.gmra.mrb[100].mxu1 %vm284_vm0, %v10472_v44 }
 0xb28   :  { %8967 = vmatpush1.bf16.msra.mxu1 %v8966_v16  ;;  %5373 = vmatprep.mubr.f32.mxu1 %v9378_v6  ;;  %v10558_v20 = vpop.permute.xlu0 %565 }
 0xb29   :  { %8969 = vmatprep.subr.bf16.mxu1 %v8968_v38  ;;  %v584_v16 = vadd.f32 %v10558_v20, %v528_v25 }
 0xb2b   :  { %7579 = vmatmul.mubr.msk.f32.gmra.mrb[102].mxu1 %vm284_vm0, %v10483_v43 }
 0xb2c   :  { %8971 = vmatpush1.bf16.msra.mxu1 %v8970_v28  ;;  %5444 = vmatprep.mubr.f32.mxu1 %v9378_v6 }
 0xb2d   :  { %8973 = vmatprep.subr.bf16.mxu1 %v8972_v45 }
 0xb2f   :  { %7580 = vmatmul.mubr.msk.f32.vlgmr.msra.gmra.mrb[104].mxu1 %vm284_vm0, %v10450_v49 }
 0xb30   :  { %8975 = vmatpush1.bf16.msra.mxu1 %v8974_v36  ;;  %5450 = vmatprep.mubr.f32.mxu1 %v9378_v6 }
 0xb31   :  { %8977 = vmatprep.subr.bf16.mxu1 %v8976_v12 }
 0xb33   :  { %7581 = vmatmul.mubr.msk.f32.gmra.mrb[106].mxu1 %vm284_vm0, %v10462_v33 }
 0xb34   :  { %8979 = vmatpush1.bf16.msra.mxu1 %v8978_v41  ;;  %5456 = vmatprep.mubr.f32.mxu1 %v9378_v6 }
 0xb35   :  { %8981 = vmatprep.subr.bf16.mxu1 %v8980_v48  ;;  %v530_v48 = vmul.f32 %v10554_v11, %v9908_v57 }
 0xb37   :  { %7582 = vmatmul.mubr.msk.f32.gmra.mrb[108].mxu1 %vm284_vm0, %v10472_v44  ;;  %v586_v50 = vadd.f32 %v10558_v20, %v530_v48 }
 0xb38   :  { %8983 = vmatpush1.bf16.msra.mxu1 %v8982_v30  ;;  %5462 = vmatprep.mubr.f32.mxu1 %v9378_v6 }
 0xb39   :  { %8985 = vmatprep.subr.bf16.mxu1 %v8984_v29 }
 0xb3b   :  { %7583 = vmatmul.mubr.msk.f32.gmra.mrb[110].mxu1 %vm284_vm0, %v10483_v43 }
 0xb3c   :  { %8987 = vmatpush1.bf16.msra.mxu1 %v8986_v40  ;;  %5533 = vmatprep.mubr.f32.mxu1 %v9378_v6 }
 0xb3f   :  { %7584 = vmatmul.mubr.msk.f32.vlgmr.msra.gmra.mrb[112].mxu1 %vm284_vm0, %v10450_v49  ;;  %v10556_v49 = vpop.permute.xlu1 %514 }
 0xb40   :  { %5539 = vmatprep.mubr.f32.mxu1 %v9378_v6  ;;  %v536_v32 = vmul.f32 %v10556_v49, %v9904_v55  ;;  %v538_v57 = vmul.f32 %v10556_v49, %v9912_v59 }
 0xb43   :  { %7585 = vmatmul.mubr.msk.f32.gmra.mrb[114].mxu1 %vm284_vm0, %v10462_v33  ;;  %v527_v33 = vmul.f32 %v10554_v11, %v9898_v51 }
 0xb44   :  { %5545 = vmatprep.mubr.f32.mxu1 %v9378_v6 }
 0xb45   :  { %v583_v24 = vadd.f32 %v10558_v20, %v527_v33 }
 0xb47   :  { %7586 = vmatmul.mubr.msk.f32.gmra.mrb[116].mxu1 %vm284_vm0, %v10472_v44  ;;  %v10564_v44 = vpop.permute.xlu1 %570 }
 0xb48   :  { %5551 = vmatprep.mubr.f32.mxu1 %v9378_v6  ;;  %v10566_v6 = vpop.permute.xlu0 %519  ;;  %v592_v28 = vadd.f32 %v10564_v44, %v536_v32  ;;  %v10635_v32 = vld [vmem:[%s11425_s18] sm:$0xff]   ;;  %v594_v59 = vadd.f32 %v10564_v44, %v538_v57 }
 0xb49   :  { %v544_v55 = vmul.f32 %v10566_v6, %v9916_v61 }
 0xb4b   :  { %7587 = vmatmul.mubr.msk.f32.gmra.mrb[118].mxu1 %vm284_vm0, %v10483_v43  ;;  %v535_v43 = vmul.f32 %v10556_v49, %v9902_v54  ;;  %v10579_v53 = vpop.permute.xlu1 %524  ;;  %v543_v54 = vmul.f32 %v10566_v6, %v9914_v60 }
 0xb4c   :  { %5735 = vmatprep.mubr.bf16.mxu1 %v11423_v9  ;;  %v10587_v46 = vpop.permute.xlu0 %575  ;;  %v551_v60 = vmul.f32 %v10579_v53, %v9918_v62  ;;  %v552_v61 = vmul.f32 %v10579_v53, %v9920_v63  ;;  %v529_v62 = vmul.f32 %v10554_v11, %v9906_v56  ;;  %v537_v56 = vmul.f32 %v10556_v49, %v9910_v58 }
 0xb4d   :  { %v591_v34 = vadd.f32 %v10564_v44, %v535_v43  ;;  %v599_v26 = vadd.f32 %v10587_v46, %v543_v54  ;;  %v600_v21 = vadd.f32 %v10587_v46, %v544_v55 }
 0xb4e   :  { %v585_v29 = vadd.f32 %v10558_v20, %v529_v62  ;;  %v593_v58 = vadd.f32 %v10564_v44, %v537_v56 }
 0xb4f   :  { %v10601_v36 = vpop.permute.xlu1 %580 }
 0xb50   :  { %v607_v63 = vadd.f32 %v10601_v36, %v551_v60  ;;  %v608_v19 = vadd.f32 %v10601_v36, %v552_v61 }
 0xbe2   :  { %v10573_v52 = vpop.f32.mrb[88].mxu1 }
 0xbe3   :  { %v5562_v51 = vmul.f32 %v10573_v52, %v583_v24  ;;  %v10577_v38 = vpop.f32.mrb[89].mxu1 }
 0xbe4   :  { %v5563_v10 = vmul.f32 %v10577_v38, %v584_v16  ;;  %v545_v16 = vmul.f32 %v10566_v6, %v9922_v0 }
 0xbe6   :  { %v10589_v37 = vpop.f32.mrb[90].mxu1  ;;  %v601_v0 = vadd.f32 %v10587_v46, %v545_v16 }
 0xbe7   :  { %v5570_v45 = vmul.f32 %v10589_v37, %v591_v34  ;;  %v10593_v22 = vpop.f32.mrb[91].mxu1 }
 0xbe8   :  { %v5571_v47 = vmul.f32 %v10593_v22, %v592_v28  ;;  %v553_v28 = vmul.f32 %v10579_v53, %v9926_v2  ;;  %v531_v2 = vmul.f32 %v10554_v11, %v9930_v4 }
 0xbe9   :  { %v5594_v27 = vpack.c.bf16 %v5570_v45, %v5562_v51  ;;  %v546_v51 = vmul.f32 %v10566_v6, %v9924_v1 }
 0xbea   :  { %v5595_v12 = vpack.c.bf16 %v5571_v47, %v5563_v10  ;;  %v10603_v39 = vpop.f32.mrb[92].mxu1  ;;  %v554_v47 = vmul.f32 %v10579_v53, %v9928_v3  ;;  %v532_v3 = vmul.f32 %v10554_v11, %v9932_v5  ;;  %v587_v4 = vadd.f32 %v10558_v20, %v531_v2 }
 0xbeb   :  { %v5578_v17 = vmul.f32 %v10603_v39, %v599_v26  ;;  %v10607_v35 = vpop.f32.mrb[93].mxu1  ;;  %v602_v1 = vadd.f32 %v10587_v46, %v546_v51 }
 0xbec   :  { %v5579_v41 = vmul.f32 %v10607_v35, %v600_v21  ;;  %5650 = vmatprep.subr.bf16.mxu0 %v5595_v12  ;;  %v10665_v21 = vld [vmem:[%s11425_s18 + $0x8] sm:$0xff]   ;;  %v588_v5 = vadd.f32 %v10558_v20, %v532_v3 }
 0xbed   :  { %5651 = vmatpush1.bf16.msra.mxu0 %v5594_v27 }
 0xbee   :  { %v10615_v23 = vpop.f32.mrb[94].mxu1 }
 0xbef   :  { %v5586_v42 = vmul.f32 %v10615_v23, %v607_v63  ;;  %v10619_v31 = vpop.f32.mrb[95].mxu1 }
 0xbf0   :  { %v5587_v30 = vmul.f32 %v10619_v31, %v608_v19 }
 0xbf1   :  { %v5602_v18 = vpack.c.bf16 %v5586_v42, %v5578_v17  ;;  %v609_v17 = vadd.f32 %v10601_v36, %v553_v28  ;;  %v539_v42 = vmul.f32 %v10556_v49, %v9934_v7 }
 0xbf2   :  { %v5603_v40 = vpack.c.bf16 %v5587_v30, %v5579_v41  ;;  %v10628_v33 = vpop.f32.mrb[96].mxu1  ;;  %v610_v41 = vadd.f32 %v10601_v36, %v554_v47 }
 0xbf3   :  { %v5564_v25 = vmul.f32 %v10628_v33, %v585_v29  ;;  %v10631_v43 = vpop.f32.mrb[97].mxu1  ;;  %v540_v29 = vmul.f32 %v10556_v49, %v9936_v8  ;;  %v595_v7 = vadd.f32 %v10564_v44, %v539_v42  ;;  %v548_v8 = vmul.f32 %v10566_v6, %v9948_v14 }
 0xbf4   :  { %v5565_v24 = vmul.f32 %v10631_v43, %v586_v50  ;;  %5652 = vmatprep.subr.bf16.mxu0 %v5603_v40 }
 0xbf5   :  { %5653 = vmatpush1.bf16.msra.mxu0 %v5602_v18  ;;  %v604_v14 = vadd.f32 %v10587_v46, %v548_v8 }
 0xbf6   :  { %v10643_v10 = vpop.f32.mrb[98].mxu1 }
 0xbf7   :  { %v5572_v54 = vmul.f32 %v10643_v10, %v593_v58  ;;  %v10646_v34 = vpop.f32.mrb[99].mxu1 }
 0xbf8   :  { %v5573_v55 = vmul.f32 %v10646_v34, %v594_v59  ;;  %7590 = vmatmul.mubr.msk.bf16.vlgmr.msra.gmra.mrb[80].mxu0 %vm1439_vm3, %v10635_v32 }
 0xbf9   :  { %v5596_v45 = vpack.c.bf16 %v5572_v54, %v5564_v25  ;;  %5692 = vmatprep.mubr.bf16.mxu0 %v11423_v9  ;;  %v547_v25 = vmul.f32 %v10566_v6, %v9946_v13  ;;  %v555_v13 = vmul.f32 %v10579_v53, %v9950_v15 }
 0xbfa   :  { %v5597_v60 = vpack.c.bf16 %v5573_v55, %v5565_v24  ;;  %v10658_v27 = vpop.f32.mrb[100].mxu1  ;;  %v596_v24 = vadd.f32 %v10564_v44, %v540_v29 }
 0xbfb   :  { %v5580_v26 = vmul.f32 %v10658_v27, %v601_v0  ;;  %v10661_v61 = vpop.f32.mrb[101].mxu1  ;;  %v603_v54 = vadd.f32 %v10587_v46, %v547_v25  ;;  %v11426_v0 = vld [vmem:[#allocation32_spill] sm:$0xff]  ;;  %v611_v2 = vadd.f32 %v10601_v36, %v555_v13 }
 0xbfc   :  { %v5581_v12 = vmul.f32 %v10661_v61, %v602_v1  ;;  %5703 = vmatprep.subr.bf16.mxu1 %v5597_v60  ;;  %v556_v28 = vmul.f32 %v10579_v53, %v11426_v0 }
 0xbfd   :  { %5704 = vmatpush1.bf16.msra.mxu1 %v5596_v45 }
 0xbfe   :  { %v10673_v62 = vpop.f32.mrb[102].mxu1 }
 0xbff   :  { %v5588_v63 = vmul.f32 %v10673_v62, %v609_v17  ;;  %v10676_v48 = vpop.f32.mrb[103].mxu1  ;;  %v11428_v17 = vld [vmem:[#allocation29_spill] sm:$0xff] }
 0xc00   :  { %v5589_v19 = vmul.f32 %v10676_v48, %v610_v41  ;;  %7591 = vmatmul.mubr.msk.bf16.gmra.mrb[84].mxu0 %vm1439_vm3, %v10665_v21  ;;  %v534_v3 = vmul.f32 %v10554_v11, %v11428_v17  ;;  %v612_v41 = vadd.f32 %v10601_v36, %v556_v28 }
 0xc01   :  { %v5604_v30 = vpack.c.bf16 %v5588_v63, %v5580_v26  ;;  %5788 = vmatprep.mubr.bf16.mxu0 %v11423_v9 }
 0xc02   :  { %v5605_v56 = vpack.c.bf16 %v5589_v19, %v5581_v12  ;;  %v10688_v18 = vpop.f32.mrb[104].mxu1  ;;  %v11427_v12 = vld [vmem:[#allocation28_spill] sm:$0xff] }
 0xc03   :  { %v5566_v50 = vmul.f32 %v10688_v18, %v587_v4  ;;  %v10691_v57 = vpop.f32.mrb[105].mxu1  ;;  %v533_v15 = vmul.f32 %v10554_v11, %v11427_v12  ;;  %v590_v11 = vadd.f32 %v10558_v20, %v534_v3 }
 0xc04   :  { %v5567_v40 = vmul.f32 %v10691_v57, %v588_v5  ;;  %5705 = vmatprep.subr.bf16.mxu1 %v5605_v56  ;;  %v11429_v5 = vld [vmem:[#allocation30_spill] sm:$0xff] }
 0xc05   :  { %5706 = vmatpush1.bf16.msra.mxu1 %v5604_v30  ;;  %v589_v30 = vadd.f32 %v10558_v20, %v533_v15  ;;  %v541_v29 = vmul.f32 %v10556_v49, %v11429_v5  ;;  %v11434_v15 = vld [vmem:[#allocation36_spill] sm:$0xff] }
 0xc06   :  { %v10700_v58 = vpop.f32.mrb[106].mxu1 }
 0xc07   :  { %v5574_v16 = vmul.f32 %v10700_v58, %v595_v7  ;;  %v10703_v59 = vpop.f32.mrb[107].mxu1 }
 0xc08   :  { %v5575_v51 = vmul.f32 %v10703_v59, %v596_v24  ;;  %7592 = vmatmul.mubr.msk.bf16.vlgmr.msra.gmra.mrb[120].mxu1 %vm1439_vm3, %v10635_v32 }
 0xc09   :  { %v5598_v55 = vpack.c.bf16 %v5574_v16, %v5566_v50  ;;  %5745 = vmatprep.mubr.bf16.mxu1 %v11423_v9  ;;  %v11430_v50 = vld [vmem:[#allocation31_spill] sm:$0xff] }
 0xc0a   :  { %v5599_v45 = vpack.c.bf16 %v5575_v51, %v5567_v40  ;;  %v10715_v1 = vpop.f32.mrb[108].mxu1  ;;  %v542_v40 = vmul.f32 %v10556_v49, %v11430_v50  ;;  %v597_v51 = vadd.f32 %v10564_v44, %v541_v29 }
 0xc0b   :  { %v5582_v47 = vmul.f32 %v10715_v1, %v603_v54  ;;  %v10718_v60 = vpop.f32.mrb[109].mxu1  ;;  %v11431_v54 = vld [vmem:[#allocation33_spill] sm:$0xff] }
 0xc0c   :  { %v5583_v26 = vmul.f32 %v10718_v60, %v604_v14  ;;  %5756 = vmatprep.subr.bf16.mxu0 %v5599_v45  ;;  %v549_v13 = vmul.f32 %v10566_v6, %v11431_v54  ;;  %v598_v20 = vadd.f32 %v10564_v44, %v542_v40 }
 0xc0d   :  { %5757 = vmatpush1.bf16.msra.mxu0 %v5598_v55  ;;  %v11432_v55 = vld [vmem:[#allocation34_spill] sm:$0xff] }
 0xc0e   :  { %v10727_v63 = vpop.f32.mrb[110].mxu1  ;;  %v550_v49 = vmul.f32 %v10566_v6, %v11432_v55 }
 0xc0f   :  { %v5590_v19 = vmul.f32 %v10727_v63, %v611_v2  ;;  %v10730_v4 = vpop.f32.mrb[111].mxu1  ;;  %v558_v2 = vmul.f32 %v10579_v53, %v11434_v15 }
 0xc10   :  { %v5591_v42 = vmul.f32 %v10730_v4, %v612_v41  ;;  %7593 = vmatmul.mubr.msk.bf16.gmra.mrb[124].mxu1 %vm1439_vm3, %v10665_v21  ;;  %v606_v6 = vadd.f32 %v10587_v46, %v550_v49 }
 0xc11   :  { %v5606_v56 = vpack.c.bf16 %v5590_v19, %v5582_v47  ;;  %5841 = vmatprep.mubr.bf16.mxu1 %v11423_v9  ;;  %v605_v47 = vadd.f32 %v10587_v46, %v549_v13  ;;  %v614_v5 = vadd.f32 %v10601_v36, %v558_v2 }
 0xc12   :  { %v5607_v7 = vpack.c.bf16 %v5591_v42, %v5583_v26  ;;  %v10742_v25 = vpop.f32.mrb[112].mxu1  ;;  %v11433_v26 = vld [vmem:[#allocation35_spill] sm:$0xff] }
 0xc13   :  { %v5568_v24 = vmul.f32 %v10742_v25, %v589_v30  ;;  %v10745_v8 = vpop.f32.mrb[113].mxu1  ;;  %v557_v12 = vmul.f32 %v10579_v53, %v11433_v26 }
 0xc14   :  { %v5569_v16 = vmul.f32 %v10745_v8, %v590_v11  ;;  %5758 = vmatprep.subr.bf16.mxu0 %v5607_v7 }
 0xc15   :  { %5759 = vmatpush1.bf16.msra.mxu0 %v5606_v56  ;;  %v613_v30 = vadd.f32 %v10601_v36, %v557_v12  ;;  %v10792_v36 = vpop.permute.xlu0 %5616 }
 0xc16   :  { %v10754_v14 = vpop.f32.mrb[114].mxu1 }
 0xc17   :  { %v5576_v0 = vmul.f32 %v10754_v14, %v597_v51  ;;  %v10757_v28 = vpop.f32.mrb[115].mxu1 }
 0xc18   :  { %v5577_v45 = vmul.f32 %v10757_v28, %v598_v20  ;;  %7594 = vmatmul.mubr.msk.bf16.vlgmr.msra.gmra.mrb[88].mxu0 %vm1439_vm3, %v10635_v32 }
 0xc19   :  { %v5600_v44 = vpack.c.bf16 %v5576_v0, %v5568_v24  ;;  %5798 = vmatprep.mubr.bf16.mxu0 %v11423_v9 }
 0xc1a   :  { %v5601_v17 = vpack.c.bf16 %v5577_v45, %v5569_v16  ;;  %v10769_v3 = vpop.f32.mrb[116].mxu1  ;;  %v10795_v16 = vpop.permute.xlu1 %5621 }
 0xc1b   :  { %v5584_v41 = vmul.f32 %v10769_v3, %v605_v47  ;;  %v10772_v19 = vpop.f32.mrb[117].mxu1  ;;  %v10800_v47 = vpop.permute.xlu0 %5626 }
 0xc1c   :  { %v5585_v42 = vmul.f32 %v10772_v19, %v606_v6  ;;  %5809 = vmatprep.subr.bf16.mxu1 %v5601_v17 }
 0xc1d   :  { %5810 = vmatpush1.bf16.msra.mxu1 %v5600_v44 }
 0xc1e   :  { %v10777_v29 = vpop.f32.mrb[118].mxu1  ;;  %v10803_v15 = vpop.permute.xlu1 %5631 }
 0xc1f   :  { %v5592_v46 = vmul.f32 %v10777_v29, %v613_v30  ;;  %v10780_v53 = vpop.f32.mrb[119].mxu1 }
 0xc20   :  { %v5593_v56 = vmul.f32 %v10780_v53, %v614_v5  ;;  %7595 = vmatmul.mubr.msk.bf16.gmra.mrb[92].mxu0 %vm1439_vm3, %v10665_v21 }
 0xc21   :  { %v5608_v11 = vpack.c.bf16 %v5592_v46, %v5584_v41  ;;  %5962 = vmatprep.mubr.bf16.mxu0 %v11423_v9 }
 0xc22   :  { %v5609_v50 = vpack.c.bf16 %v5593_v56, %v5585_v42 }
 0xc24   :  { %5811 = vmatprep.subr.bf16.mxu1 %v5609_v50 }
 0xc25   :  { %5812 = vmatpush1.bf16.msra.mxu1 %v5608_v11 }
 0xc28   :  { %7596 = vmatmul.mubr.msk.bf16.vlgmr.msra.gmra.mrb[128].mxu1 %vm1439_vm3, %v10635_v32 }
 0xc29   :  { %5851 = vmatprep.mubr.bf16.mxu1 %v11423_v9 }
 0xc30   :  { %7597 = vmatmul.mubr.msk.bf16.gmra.mrb[132].mxu1 %vm1439_vm3, %v10665_v21 }
 0xc31   :  { %6015 = vmatprep.mubr.bf16.mxu1 %v11423_v9 }
 0xccb   :  { %v5684_v40 = vpop.f32.mrb[80].mxu0 }
 0xccc   :  { %v5685_v7 = vadd.f32 %v5684_v40, %v10792_v36  ;;  %v5686_v24 = vpop.f32.mrb[81].mxu0 }
 0xccd   :  { %v5687_v51 = vadd.f32 %v5686_v24, %v10792_v36  ;;  %v5688_v54 = vpop.f32.mrb[82].mxu0 }
 0xcce   :  { %v5689_v32 = vadd.f32 %v5688_v54, %v10795_v16  ;;  %v5690_v13 = vpop.f32.mrb[83].mxu0  ;;  %v5862_v55 = vmax.f32 %v5685_v7, 0.0 }
 0xccf   :  { %v5691_v20 = vadd.f32 %v5690_v13, %v10795_v16  ;;  %v5863_v49 = vmax.f32 %v5687_v51, 0.0  ;;  %v10811_v13 = vld [vmem:[%s11435_s22] sm:$0xff]  }
 0xcd0   :  { %v5870_v21 = vmax.f32 %v5689_v32, 0.0 }
 0xcd1   :  { %v5871_v0 = vmax.f32 %v5691_v20, 0.0 }
 0xcd2   :  { %v5898_v45 = vpack.c.bf16 %v5870_v21, %v5862_v55 }
 0xcd3   :  { %v5899_v26 = vpack.c.bf16 %v5871_v0, %v5863_v49  ;;  %v5694_v12 = vpop.f32.mrb[84].mxu0 }
 0xcd4   :  { %v5695_v44 = vadd.f32 %v5694_v12, %v10800_v47  ;;  %v5696_v6 = vpop.f32.mrb[85].mxu0 }
 0xcd5   :  { %v5697_v2 = vadd.f32 %v5696_v6, %v10800_v47  ;;  %v5698_v17 = vpop.f32.mrb[86].mxu0  ;;  %5930 = vmatprep.subr.bf16.mxu0 %v5899_v26 }
 0xcd6   :  { %v5699_v41 = vadd.f32 %v5698_v17, %v10803_v15  ;;  %v5700_v42 = vpop.f32.mrb[87].mxu0  ;;  %5931 = vmatpush1.bf16.msra.mxu0 %v5898_v45  ;;  %v5878_v5 = vmax.f32 %v5695_v44, 0.0 }
 0xcd7   :  { %v5701_v30 = vadd.f32 %v5700_v42, %v10803_v15  ;;  %v5879_v56 = vmax.f32 %v5697_v2, 0.0 }
 0xcd8   :  { %v5886_v46 = vmax.f32 %v5699_v41, 0.0 }
 0xcd9   :  { %v5887_v11 = vmax.f32 %v5701_v30, 0.0  ;;  %v10821_v30 = vld [vmem:[%s11435_s22 + $0x8] sm:$0xff]  }
 0xcda   :  { %v5906_v50 = vpack.c.bf16 %v5886_v46, %v5878_v5 }
 0xcdb   :  { %v5907_v40 = vpack.c.bf16 %v5887_v11, %v5879_v56  ;;  %v5737_v7 = vpop.f32.mrb[120].mxu1 }
 0xcdc   :  { %v5738_v24 = vadd.f32 %v5737_v7, %v10792_v36  ;;  %v5739_v51 = vpop.f32.mrb[121].mxu1 }
 0xcdd   :  { %v5740_v54 = vadd.f32 %v5739_v51, %v10792_v36  ;;  %v5741_v32 = vpop.f32.mrb[122].mxu1  ;;  %5932 = vmatprep.subr.bf16.mxu0 %v5907_v40 }
 0xcde   :  { %v5742_v20 = vadd.f32 %v5741_v32, %v10795_v16  ;;  %v5743_v55 = vpop.f32.mrb[123].mxu1  ;;  %5933 = vmatpush1.bf16.msra.mxu0 %v5906_v50  ;;  %v5864_v49 = vmax.f32 %v5738_v24, 0.0 }
 0xcdf   :  { %v5744_v21 = vadd.f32 %v5743_v55, %v10795_v16  ;;  %v5865_v45 = vmax.f32 %v5740_v54, 0.0 }
 0xce0   :  { %v5872_v0 = vmax.f32 %v5742_v20, 0.0 }
 0xce1   :  { %v5873_v26 = vmax.f32 %v5744_v21, 0.0  ;;  %7600 = vmatmul.mubr.msk.bf16.vlgmr.msra.gmra.mrb[96].mxu0 %vm1439_vm3, %v10811_v13 }
 0xce2   :  { %v5900_v12 = vpack.c.bf16 %v5872_v0, %v5864_v49  ;;  %5972 = vmatprep.mubr.bf16.mxu0 %v11423_v9 }
 0xce3   :  { %v5901_v44 = vpack.c.bf16 %v5873_v26, %v5865_v45  ;;  %v5747_v6 = vpop.f32.mrb[124].mxu1 }
 0xce4   :  { %v5748_v2 = vadd.f32 %v5747_v6, %v10800_v47  ;;  %v5749_v17 = vpop.f32.mrb[125].mxu1 }
 0xce5   :  { %v5750_v41 = vadd.f32 %v5749_v17, %v10800_v47  ;;  %v5751_v42 = vpop.f32.mrb[126].mxu1  ;;  %5983 = vmatprep.subr.bf16.mxu1 %v5901_v44 }
 0xce6   :  { %v5752_v5 = vadd.f32 %v5751_v42, %v10803_v15  ;;  %v5753_v46 = vpop.f32.mrb[127].mxu1  ;;  %5984 = vmatpush1.bf16.msra.mxu1 %v5900_v12  ;;  %v5880_v11 = vmax.f32 %v5748_v2, 0.0 }
 0xce7   :  { %v5754_v56 = vadd.f32 %v5753_v46, %v10803_v15  ;;  %v5881_v40 = vmax.f32 %v5750_v41, 0.0 }
 0xce8   :  { %v5888_v50 = vmax.f32 %v5752_v5, 0.0 }
 0xce9   :  { %v5889_v7 = vmax.f32 %v5754_v56, 0.0  ;;  %7601 = vmatmul.mubr.msk.bf16.gmra.mrb[100].mxu0 %vm1439_vm3, %v10821_v30 }
 0xcea   :  { %v5908_v24 = vpack.c.bf16 %v5888_v50, %v5880_v11  ;;  %6068 = vmatprep.mubr.bf16.mxu0 %v11423_v9 }
 0xceb   :  { %v5909_v51 = vpack.c.bf16 %v5889_v7, %v5881_v40  ;;  %v5790_v54 = vpop.f32.mrb[88].mxu0 }
 0xcec   :  { %v5791_v32 = vadd.f32 %v5790_v54, %v10792_v36  ;;  %v5792_v20 = vpop.f32.mrb[89].mxu0 }
 0xced   :  { %v5793_v55 = vadd.f32 %v5792_v20, %v10792_v36  ;;  %v5794_v21 = vpop.f32.mrb[90].mxu0  ;;  %5985 = vmatprep.subr.bf16.mxu1 %v5909_v51 }
 0xcee   :  { %v5795_v49 = vadd.f32 %v5794_v21, %v10795_v16  ;;  %v5796_v0 = vpop.f32.mrb[91].mxu0  ;;  %5986 = vmatpush1.bf16.msra.mxu1 %v5908_v24  ;;  %v5866_v26 = vmax.f32 %v5791_v32, 0.0 }
 0xcef   :  { %v5797_v45 = vadd.f32 %v5796_v0, %v10795_v16  ;;  %v5867_v44 = vmax.f32 %v5793_v55, 0.0 }
 0xcf0   :  { %v5874_v12 = vmax.f32 %v5795_v49, 0.0 }
 0xcf1   :  { %v5875_v6 = vmax.f32 %v5797_v45, 0.0  ;;  %7602 = vmatmul.mubr.msk.bf16.vlgmr.msra.gmra.mrb[136].mxu1 %vm1439_vm3, %v10811_v13 }
 0xcf2   :  { %v5902_v2 = vpack.c.bf16 %v5874_v12, %v5866_v26  ;;  %6025 = vmatprep.mubr.bf16.mxu1 %v11423_v9 }
 0xcf3   :  { %v5903_v17 = vpack.c.bf16 %v5875_v6, %v5867_v44  ;;  %v5800_v41 = vpop.f32.mrb[92].mxu0 }
 0xcf4   :  { %v5801_v42 = vadd.f32 %v5800_v41, %v10800_v47  ;;  %v5802_v5 = vpop.f32.mrb[93].mxu0 }
 0xcf5   :  { %v5803_v46 = vadd.f32 %v5802_v5, %v10800_v47  ;;  %v5804_v56 = vpop.f32.mrb[94].mxu0  ;;  %6036 = vmatprep.subr.bf16.mxu0 %v5903_v17 }
 0xcf6   :  { %v5805_v11 = vadd.f32 %v5804_v56, %v10803_v15  ;;  %v5806_v50 = vpop.f32.mrb[95].mxu0  ;;  %6037 = vmatpush1.bf16.msra.mxu0 %v5902_v2  ;;  %v5882_v7 = vmax.f32 %v5801_v42, 0.0 }
 0xcf7   :  { %v5807_v40 = vadd.f32 %v5806_v50, %v10803_v15  ;;  %v5883_v51 = vmax.f32 %v5803_v46, 0.0 }
 0xcf8   :  { %v5890_v24 = vmax.f32 %v5805_v11, 0.0 }
 0xcf9   :  { %v5891_v54 = vmax.f32 %v5807_v40, 0.0  ;;  %7603 = vmatmul.mubr.msk.bf16.gmra.mrb[140].mxu1 %vm1439_vm3, %v10821_v30 }
 0xcfa   :  { %v5910_v32 = vpack.c.bf16 %v5890_v24, %v5882_v7  ;;  %6121 = vmatprep.mubr.bf16.mxu1 %v11423_v9 }
 0xcfb   :  { %v5911_v20 = vpack.c.bf16 %v5891_v54, %v5883_v51  ;;  %v5843_v55 = vpop.f32.mrb[128].mxu1 }
 0xcfc   :  { %v5844_v21 = vadd.f32 %v5843_v55, %v10792_v36  ;;  %v5845_v49 = vpop.f32.mrb[129].mxu1  ;;  %v6439_v55 = vld [vmem:[%s9578_s15 + $0x88] sm:$0xff] }
 0xcfd   :  { %v5846_v0 = vadd.f32 %v5845_v49, %v10792_v36  ;;  %v5847_v45 = vpop.f32.mrb[130].mxu1  ;;  %6038 = vmatprep.subr.bf16.mxu0 %v5911_v20  ;;  %v6422_v49 = vld [vmem:[%s9578_s15] sm:$0xff] }
 0xcfe   :  { %v5848_v26 = vadd.f32 %v5847_v45, %v10795_v16  ;;  %v5849_v12 = vpop.f32.mrb[131].mxu1  ;;  %6039 = vmatpush1.bf16.msra.mxu0 %v5910_v32  ;;  %v5868_v6 = vmax.f32 %v5844_v21, 0.0 }
 0xcff   :  { %v5850_v44 = vadd.f32 %v5849_v12, %v10795_v16  ;;  %v5869_v17 = vmax.f32 %v5846_v0, 0.0  ;;  %v6423_v0 = vld [vmem:[%s9578_s15 + $0x8] sm:$0xff]  ;;  %v6424_v12 = vld [vmem:[%s9578_s15 + $0x10] sm:$0xff] }
 0xd00   :  { %v5876_v2 = vmax.f32 %v5848_v26, 0.0  ;;  %v8990_v45 = vpack.c.bf16 %v6423_v0, %v6422_v49  ;;  %v6440_v26 = vld [vmem:[%s9578_s15 + $0x90] sm:$0xff] }
 0xd01   :  { %v5877_v41 = vmax.f32 %v5850_v44, 0.0  ;;  %7604 = vmatmul.mubr.msk.bf16.vlgmr.msra.gmra.mrb[104].mxu0 %vm1439_vm3, %v10811_v13  ;;  %v6448_v0 = vld [vmem:[%s9578_s15 + $0xd0] sm:$0xff] }
 0xd02   :  { %v5904_v42 = vpack.c.bf16 %v5876_v2, %v5868_v6  ;;  %6078 = vmatprep.mubr.bf16.mxu0 %v11423_v9  ;;  %v6442_v6 = vld [vmem:[%s9578_s15 + $0xa0] sm:$0xff]  ;;  %v6443_v2 = vld [vmem:[%s9578_s15 + $0xa8] sm:$0xff] }
 0xd03   :  { %v5905_v5 = vpack.c.bf16 %v5877_v41, %v5869_v17  ;;  %v5853_v36 = vpop.f32.mrb[132].mxu1  ;;  %v8996_v17 = vpack.c.bf16 %v6443_v2, %v6442_v6  ;;  %v6426_v41 = vld [vmem:[%s9578_s15 + $0x20] sm:$0xff]  ;;  %v6456_v2 = vld [vmem:[%s9578_s15 + $0x110] sm:$0xff] }
 0xd04   :  { %v5854_v46 = vadd.f32 %v5853_v36, %v10800_v47  ;;  %v5855_v56 = vpop.f32.mrb[133].mxu1  ;;  %v6444_v36 = vld [vmem:[%s9578_s15 + $0xb0] sm:$0xff] }
 0xd05   :  { %v5856_v11 = vadd.f32 %v5855_v56, %v10800_v47  ;;  %v5857_v50 = vpop.f32.mrb[134].mxu1  ;;  %6089 = vmatprep.subr.bf16.mxu1 %v5905_v5 }
 0xd06   :  { %v5858_v16 = vadd.f32 %v5857_v50, %v10803_v15  ;;  %v5859_v40 = vpop.f32.mrb[135].mxu1  ;;  %6090 = vmatpush1.bf16.msra.mxu1 %v5904_v42  ;;  %v5884_v24 = vmax.f32 %v5854_v46, 0.0  ;;  %v6427_v42 = vld [vmem:[%s9578_s15 + $0x28] sm:$0xff]  ;;  %v6445_v46 = vld [vmem:[%s9578_s15 + $0xb8] sm:$0xff] }
 0xd07   :  { %v5860_v7 = vadd.f32 %v5859_v40, %v10803_v15  ;;  %v5885_v54 = vmax.f32 %v5856_v11, 0.0  ;;  %v6438_v15 = vld [vmem:[%s9578_s15 + $0x80] sm:$0xff]  ;;  %v8998_v5 = vpack.c.bf16 %v6427_v42, %v6426_v41  ;;  %v9000_v56 = vpack.c.bf16 %v6445_v46, %v6444_v36  ;;  %v6428_v11 = vld [vmem:[%s9578_s15 + $0x30] sm:$0xff]  ;;  %v6429_v50 = vld [vmem:[%s9578_s15 + $0x38] sm:$0xff] }
 0xd08   :  { %v5892_v51 = vmax.f32 %v5858_v16, 0.0  ;;  %v8988_v21 = vpack.c.bf16 %v6439_v55, %v6438_v15  ;;  %v9002_v16 = vpack.c.bf16 %v6429_v50, %v6428_v11  ;;  %v6446_v40 = vld [vmem:[%s9578_s15 + $0xc0] sm:$0xff]  ;;  %v6435_v50 = vld [vmem:[%s9578_s15 + $0x68] sm:$0xff] }
 0xd09   :  { %v5893_v32 = vmax.f32 %v5860_v7, 0.0  ;;  %7605 = vmatmul.mubr.msk.bf16.gmra.mrb[108].mxu0 %vm1439_vm3, %v10821_v30  ;;  %v6447_v7 = vld [vmem:[%s9578_s15 + $0xc8] sm:$0xff]  ;;  %v6454_v55 = vld [vmem:[%s9578_s15 + $0x100] sm:$0xff] }
 0xd0a   :  { %v5912_v47 = vpack.c.bf16 %v5892_v51, %v5884_v24  ;;  %8989 = vmatprep.subr.bf16.mxu0 %v8988_v21  ;;  %v6470_v24 = vld [vmem:[%s9578_s15 + $0x180] sm:$0xff]  ;;  %v9004_v51 = vpack.c.bf16 %v6447_v7, %v6446_v40  ;;  %v6455_v21 = vld [vmem:[%s9578_s15 + $0x108] sm:$0xff] }
 0xd0b   :  { %v5913_v20 = vpack.c.bf16 %v5893_v32, %v5885_v54  ;;  %8991 = vmatpush3.bf16.msra.mxu0 %v8990_v45  ;;  %v6471_v54 = vld [vmem:[%s9578_s15 + $0x188] sm:$0xff]  ;;  %v6430_v32 = vld [vmem:[%s9578_s15 + $0x40] sm:$0xff]  ;;  %v9022_v49 = vpack.c.bf16 %v6455_v21, %v6454_v55  ;;  %v6449_v45 = vld [vmem:[%s9578_s15 + $0xd8] sm:$0xff] }
 0xd0c   :  { %v6450_v42 = vld [vmem:[%s9578_s15 + $0xe0] sm:$0xff]  ;;  %v6436_v55 = vld [vmem:[%s9578_s15 + $0x70] sm:$0xff]  ;;  %v6437_v21 = vld [vmem:[%s9578_s15 + $0x78] sm:$0xff] }
 0xd0d   :  { %6091 = vmatprep.subr.bf16.mxu1 %v5913_v20  ;;  %v9020_v20 = vpack.c.bf16 %v6471_v54, %v6470_v24  ;;  %v6474_v36 = vld [vmem:[%s9578_s15 + $0x1a0] sm:$0xff]  ;;  %v6459_v24 = vld [vmem:[%s9578_s15 + $0x128] sm:$0xff]  ;;  %v6452_v54 = vld [vmem:[%s9578_s15 + $0xf0] sm:$0xff] }
 0xd0e   :  { %6092 = vmatpush1.bf16.msra.mxu1 %v5912_v47  ;;  %v6431_v47 = vld [vmem:[%s9578_s15 + $0x48] sm:$0xff]  ;;  %v6434_v11 = vld [vmem:[%s9578_s15 + $0x60] sm:$0xff] }
 0xd0f   :  { %v9006_v15 = vpack.c.bf16 %v6431_v47, %v6430_v32  ;;  %9021 = vmatprep.subr.bf16.mxu1 %v9020_v20  ;;  %v9014_v40 = vpack.c.bf16 %v6435_v50, %v6434_v11  ;;  %v6458_v7 = vld [vmem:[%s9578_s15 + $0x120] sm:$0xff]  ;;  %v6453_v32 = vld [vmem:[%s9578_s15 + $0xf8] sm:$0xff]  ;;  %v6476_v47 = vld [vmem:[%s9578_s15 + $0x1b0] sm:$0xff] }
 0xd10   :  { %v9016_v20 = vpack.c.bf16 %v6453_v32, %v6452_v54  ;;  %v6465_v11 = vld [vmem:[%s9578_s15 + $0x158] sm:$0xff]  ;;  %v6484_v32 = vld [vmem:[%s9578_s15 + $0x1f0] sm:$0xff] }
 0xd11   :  { %7606 = vmatmul.mubr.msk.bf16.vlgmr.msra.gmra.mrb[144].mxu1 %vm1439_vm3, %v10811_v13  ;;  %v6441_v13 = vld [vmem:[%s9578_s15 + $0x98] sm:$0xff] }
 0xd12   :  { %6131 = vmatprep.mubr.bf16.mxu1 %v11423_v9  ;;  %v8992_v9 = vpack.c.bf16 %v6441_v13, %v6440_v26  ;;  %v6472_v26 = vld [vmem:[%s9578_s15 + $0x190] sm:$0xff]  ;;  %9023 = vmatpush3.bf16.msra.mxu1 %v9022_v49  ;;  %v9008_v13 = vpack.c.bf16 %v6449_v45, %v6448_v0  ;;  %v9018_v0 = vpack.c.bf16 %v6437_v21, %v6436_v55  ;;  %v6469_v55 = vld [vmem:[%s9578_s15 + $0x178] sm:$0xff] }
 0xd13   :  { %v6460_v45 = vld [vmem:[%s9578_s15 + $0x130] sm:$0xff] }
 0xd14   :  { %8993 = vmatprep.subr.bf16.mxu0 %v8992_v9  ;;  %v6473_v9 = vld [vmem:[%s9578_s15 + $0x198] sm:$0xff] }
 0xd19   :  { %7607 = vmatmul.mubr.msk.bf16.gmra.mrb[148].mxu1 %vm1439_vm3, %v10821_v30  ;;  %v6425_v30 = vld [vmem:[%s9578_s15 + $0x18] sm:$0xff] }
 0xd1a   :  { %v8994_v44 = vpack.c.bf16 %v6425_v30, %v6424_v12  ;;  %v6432_v12 = vld [vmem:[%s9578_s15 + $0x50] sm:$0xff]  ;;  %v6433_v30 = vld [vmem:[%s9578_s15 + $0x58] sm:$0xff] }
 0xd1b   :  { %v9010_v6 = vpack.c.bf16 %v6433_v30, %v6432_v12  ;;  %v6479_v12 = vld [vmem:[%s9578_s15 + $0x1c8] sm:$0xff]  ;;  %v6502_v30 = vld [vmem:[%s9578_s15 + $0x280] sm:$0xff] }
 0xd1c   :  { %8995 = vmatpush3.bf16.msra.mxu0 %v8994_v44  ;;  %v9024_v44 = vpack.c.bf16 %v6473_v9, %v6472_v26  ;;  %v6461_v26 = vld [vmem:[%s9578_s15 + $0x138] sm:$0xff]  ;;  %v6478_v9 = vld [vmem:[%s9578_s15 + $0x1c0] sm:$0xff] }
 0xd1d   :  { %8997 = vmatprep.subr.bf16.mxu0 %v8996_v17  ;;  %v6457_v17 = vld [vmem:[%s9578_s15 + $0x118] sm:$0xff] }
 0xd1e   :  { %v9026_v41 = vpack.c.bf16 %v6457_v17, %v6456_v2  ;;  %9025 = vmatprep.subr.bf16.mxu1 %v9024_v44  ;;  %v9036_v44 = vpack.c.bf16 %v6479_v12, %v6478_v9  ;;  %v6462_v2 = vld [vmem:[%s9578_s15 + $0x140] sm:$0xff]  ;;  %v6463_v17 = vld [vmem:[%s9578_s15 + $0x148] sm:$0xff] }
 0xd20   :  { %8999 = vmatpush3.bf16.msra.mxu0 %v8998_v5  ;;  %v6451_v5 = vld [vmem:[%s9578_s15 + $0xe8] sm:$0xff]  ;;  %9027 = vmatpush3.bf16.msra.mxu1 %v9026_v41 }
 0xd21   :  { %9001 = vmatprep.subr.bf16.mxu0 %v9000_v56  ;;  %v9012_v46 = vpack.c.bf16 %v6451_v5, %v6450_v42  ;;  %v6475_v56 = vld [vmem:[%s9578_s15 + $0x1a8] sm:$0xff]  ;;  %v9038_v42 = vpack.c.bf16 %v6463_v17, %v6462_v2  ;;  %v6480_v5 = vld [vmem:[%s9578_s15 + $0x1d0] sm:$0xff] }
 0xd24   :  { %9003 = vmatpush3.bf16.msra.mxu0 %v9002_v16  ;;  %v9028_v16 = vpack.c.bf16 %v6475_v56, %v6474_v36  ;;  %v6481_v36 = vld [vmem:[%s9578_s15 + $0x1d8] sm:$0xff]  ;;  %v6464_v56 = vld [vmem:[%s9578_s15 + $0x150] sm:$0xff] }
 0xd25   :  { %9005 = vmatprep.subr.bf16.mxu0 %v9004_v51  ;;  %v9030_v51 = vpack.c.bf16 %v6459_v24, %v6458_v7  ;;  %v9042_v50 = vpack.c.bf16 %v6465_v11, %v6464_v56  ;;  %v6466_v24 = vld [vmem:[%s9578_s15 + $0x160] sm:$0xff] }
 0xd26   :  { %9029 = vmatprep.subr.bf16.mxu1 %v9028_v16  ;;  %v6482_v16 = vld [vmem:[%s9578_s15 + $0x1e0] sm:$0xff] }
 0xd27   :  { %9031 = vmatpush3.bf16.msra.mxu1 %v9030_v51  ;;  %v6467_v51 = vld [vmem:[%s9578_s15 + $0x168] sm:$0xff] }
 0xd28   :  { %9007 = vmatpush3.bf16.msra.mxu0 %v9006_v15  ;;  %v6477_v15 = vld [vmem:[%s9578_s15 + $0x1b8] sm:$0xff]  ;;  %v9046_v54 = vpack.c.bf16 %v6467_v51, %v6466_v24 }
 0xd29   :  { %9009 = vmatprep.subr.bf16.mxu0 %v9008_v13  ;;  %v9032_v49 = vpack.c.bf16 %v6477_v15, %v6476_v47  ;;  %v9034_v13 = vpack.c.bf16 %v6461_v26, %v6460_v45  ;;  %v6485_v47 = vld [vmem:[%s9578_s15 + $0x1f8] sm:$0xff]  ;;  %v6468_v15 = vld [vmem:[%s9578_s15 + $0x170] sm:$0xff]  ;;  %v10928_v26 = vpop.permute.xlu0 %6180 }
 0xd2a   :  { %v9050_v21 = vpack.c.bf16 %v6469_v55, %v6468_v15 }
 0xd2b   :  { %9033 = vmatprep.subr.bf16.mxu1 %v9032_v49  ;;  %v6534_v49 = vld [vmem:[%s9578_s15 + $0x380] sm:$0xff] }
 0xd2c   :  { %9011 = vmatpush3.bf16.msra.mxu0 %v9010_v6  ;;  %9035 = vmatpush3.bf16.msra.mxu1 %v9034_v13  ;;  %v6503_v6 = vld [vmem:[%s9578_s15 + $0x288] sm:$0xff]  ;;  %v10930_v13 = vpop.permute.xlu1 %6185 }
 0xd2d   :  { %9013 = vmatprep.subr.bf16.mxu0 %v9012_v46  ;;  %v9052_v41 = vpack.c.bf16 %v6503_v6, %v6502_v30  ;;  %9037 = vmatprep.subr.bf16.mxu1 %v9036_v44  ;;  %v9040_v46 = vpack.c.bf16 %v6481_v36, %v6480_v5  ;;  %v10932_v9 = vpop.permute.xlu0 %6190 }
 0xd30   :  { %9015 = vmatpush3.bf16.msra.mxu0 %v9014_v40  ;;  %9039 = vmatpush3.bf16.msra.mxu1 %v9038_v42  ;;  %v6483_v40 = vld [vmem:[%s9578_s15 + $0x1e8] sm:$0xff]  ;;  %v10935_v6 = vpop.permute.xlu1 %6236 }
 0xd31   :  { %9017 = vmatprep.subr.bf16.mxu0 %v9016_v20  ;;  %9041 = vmatprep.subr.bf16.mxu1 %v9040_v46  ;;  %v9044_v7 = vpack.c.bf16 %v6483_v40, %v6482_v16  ;;  %v9048_v20 = vpack.c.bf16 %v6485_v47, %v6484_v32  ;;  %v10943_v11 = vpop.permute.xlu0 %6241 }
 0xd34   :  { %9019 = vmatpush3.bf16.msra.mxu0 %v9018_v0  ;;  %9043 = vmatpush3.bf16.msra.mxu1 %v9042_v50  ;;  %v6535_v0 = vld [vmem:[%s9578_s15 + $0x388] sm:$0xff]  ;;  %v10948_v16 = vpop.permute.xlu1 %6195 }
 0xd35   :  { %9053 = vmatprep.subr.bf16.mxu0 %v9052_v41  ;;  %9045 = vmatprep.subr.bf16.mxu1 %v9044_v7  ;;  %v9084_v45 = vpack.c.bf16 %v6535_v0, %v6534_v49 }
 0xd38   :  { %9047 = vmatpush3.bf16.msra.mxu1 %v9046_v54 }
 0xd39   :  { %9049 = vmatprep.subr.bf16.mxu1 %v9048_v20 }
 0xd3c   :  { %9051 = vmatpush3.bf16.msra.mxu1 %v9050_v21  ;;  %v10956_v21 = vpop.permute.xlu0 %6246 }
 0xd3d   :  { %9085 = vmatprep.subr.bf16.mxu1 %v9084_v45 }
 0xdb4   :  { %v5964_v12 = vpop.f32.mrb[96].mxu0 }
 0xdb5   :  { %v6142_v30 = vadd.f32 %v5964_v12, %v10573_v52  ;;  %v5966_v44 = vpop.f32.mrb[97].mxu0  ;;  %v10962_v12 = vpop.permute.xlu1 %6251 }
 0xdb6   :  { %v6143_v2 = vadd.f32 %v5966_v44, %v10577_v38  ;;  %v5968_v17 = vpop.f32.mrb[98].mxu0 }
 0xdb7   :  { %v6198_v41 = vadd.f32 %v10928_v26, %v6142_v30  ;;  %v6150_v42 = vadd.f32 %v5968_v17, %v10589_v37  ;;  %v5970_v5 = vpop.f32.mrb[99].mxu0 }
 0xdb8   :  { %v6199_v36 = vadd.f32 %v10928_v26, %v6143_v2  ;;  %v6151_v46 = vadd.f32 %v5970_v5, %v10593_v22 }
 0xdb9   :  { %v6206_v56 = vadd.f32 %v10930_v13, %v6150_v42  ;;  %v6254_v50 = vmul.f32 %v10935_v6, %v6198_v41 }
 0xdba   :  { %v6207_v52 = vadd.f32 %v10930_v13, %v6151_v46  ;;  %v6255_v40 = vmul.f32 %v10935_v6, %v6199_v36 }
 0xdbb   :  { %v6262_v38 = vmul.f32 %v10943_v11, %v6206_v56 }
 0xdbc   :  { %v6263_v37 = vmul.f32 %v10943_v11, %v6207_v52  ;;  %v5974_v7 = vpop.f32.mrb[100].mxu0 }
 0xdbd   :  { %v6286_v24 = vadd.f32 %v6262_v38, %v6254_v50  ;;  %v6158_v22 = vadd.f32 %v5974_v7, %v10603_v39  ;;  %v5976_v51 = vpop.f32.mrb[101].mxu0 }
 0xdbe   :  { %v6295_v54 = vadd.f32 %v6263_v37, %v6255_v40  ;;  %v6159_v32 = vadd.f32 %v5976_v51, %v10607_v35  ;;  %v5978_v47 = vpop.f32.mrb[102].mxu0 }
 0xdbf   :  { %v6214_v20 = vadd.f32 %v10932_v9, %v6158_v22  ;;  %v6166_v15 = vadd.f32 %v5978_v47, %v10615_v23  ;;  %v5980_v55 = vpop.f32.mrb[103].mxu0 }
 0xdc0   :  { %v6215_v49 = vadd.f32 %v10932_v9, %v6159_v32  ;;  %v6167_v0 = vadd.f32 %v5980_v55, %v10619_v31 }
 0xdc1   :  { %v6270_v45 = vmul.f32 %v10956_v21, %v6214_v20  ;;  %v6222_v39 = vadd.f32 %v10948_v16, %v6166_v15 }
 0xdc2   :  { %v6271_v35 = vmul.f32 %v10956_v21, %v6215_v49  ;;  %v6223_v30 = vadd.f32 %v10948_v16, %v6167_v0 }
 0xdc3   :  { %v6287_v44 = vadd.f32 %v6286_v24, %v6270_v45  ;;  %v6278_v23 = vmul.f32 %v10962_v12, %v6222_v39 }
 0xdc4   :  { %v6296_v2 = vadd.f32 %v6295_v54, %v6271_v35  ;;  %v6279_v17 = vmul.f32 %v10962_v12, %v6223_v30  ;;  %v6017_v41 = vpop.f32.mrb[136].mxu1 }
 0xdc5   :  { %v6288_v42 = vadd.f32 %v6287_v44, %v6278_v23  ;;  %v6144_v31 = vadd.f32 %v6017_v41, %v10628_v33  ;;  %v6019_v5 = vpop.f32.mrb[137].mxu1 }
 0xdc6   :  { %v6297_v36 = vadd.f32 %v6296_v2, %v6279_v17  ;;  %v6145_v46 = vadd.f32 %v6019_v5, %v10631_v43  ;;  %v6021_v56 = vpop.f32.mrb[138].mxu1 }
 0xdc7   :  { %v6289_v52 = vrot.slane %v6288_v42, 4  ;;  %v6200_v50 = vadd.f32 %v10928_v26, %v6144_v31  ;;  %v6152_v38 = vadd.f32 %v6021_v56, %v10643_v10  ;;  %v6023_v40 = vpop.f32.mrb[139].mxu1  ;;  %v6486_v56 = vld [vmem:[%s9578_s15 + $0x200] sm:$0xff] }
 0xdc8   :  { %v6298_v37 = vrot.slane %v6297_v36, 4  ;;  %v6201_v7 = vadd.f32 %v10928_v26, %v6145_v46  ;;  %v6153_v24 = vadd.f32 %v6023_v40, %v10646_v34  ;;  %v6359_v46 = vld [vmem:[%s9573_s17 + $0x8] sm:$0xff]  ;;  %v6504_v40 = vld [vmem:[%s9578_s15 + $0x290] sm:$0xff] }
 0xdc9   :  { %v6290_v22 = vadd.f32 %v6289_v52, %v6288_v42  ;;  %v6208_v51 = vadd.f32 %v10930_v13, %v6152_v38  ;;  %v6256_v43 = vmul.f32 %v10935_v6, %v6200_v50  ;;  %v6487_v52 = vld [vmem:[%s9578_s15 + $0x208] sm:$0xff] }
 0xdca   :  { %v6299_v33 = vadd.f32 %v6298_v37, %v6297_v36  ;;  %v6209_v54 = vadd.f32 %v10930_v13, %v6153_v24  ;;  %v6257_v10 = vmul.f32 %v10935_v6, %v6201_v7  ;;  %v6505_v37 = vld [vmem:[%s9578_s15 + $0x298] sm:$0xff] }
 0xdcb   :  { %v6291_v32 = vrot.slane %v6290_v22, 2  ;;  %v6264_v47 = vmul.f32 %v10943_v11, %v6208_v51  ;;  %v11003_v51 = vld [vmem:[%s9578_s15 + $0x210] sm:$0xff] }
 0xdcc   :  { %v6300_v20 = vrot.slane %v6299_v33, 2  ;;  %v6265_v15 = vmul.f32 %v10943_v11, %v6209_v54  ;;  %v6027_v55 = vpop.f32.mrb[140].mxu1 }
 0xdcd   :  { %v6292_v49 = vadd.f32 %v6291_v32, %v6290_v22  ;;  %v6304_v0 = vadd.f32 %v6264_v47, %v6256_v43  ;;  %v6160_v34 = vadd.f32 %v6027_v55, %v10658_v27  ;;  %v6029_v45 = vpop.f32.mrb[141].mxu1  ;;  %v6367_v22 = vld [vmem:[%s9573_s17 + $0x48] sm:$0xff] }
 0xdce   :  { %v6301_v39 = vadd.f32 %v6300_v20, %v6299_v33  ;;  %v6313_v35 = vadd.f32 %v6265_v15, %v6257_v10  ;;  %v6161_v30 = vadd.f32 %v6029_v45, %v10661_v61  ;;  %v6031_v44 = vpop.f32.mrb[142].mxu1  ;;  %v11006_v33 = vld [vmem:[%s9578_s15 + $0x218] sm:$0xff]  ;;  %v9054_v20 = vpack.c.bf16 %v6487_v52, %v6486_v56  ;;  %v11011_v10 = vld [vmem:[%s9578_s15 + $0x2a0] sm:$0xff]  ;;  %v11014_v15 = vld [vmem:[%s9578_s15 + $0x2a8] sm:$0xff] }
 0xdcf   :  { %v6293_v23 = vrot.slane %v6292_v49, 1  ;;  %v6216_v2 = vadd.f32 %v10932_v9, %v6160_v34  ;;  %v6168_v17 = vadd.f32 %v6031_v44, %v10673_v62  ;;  %v6033_v41 = vpop.f32.mrb[143].mxu1  ;;  %v9056_v45 = vpack.c.bf16 %v6505_v37, %v6504_v40  ;;  %v11041_v56 = vld [vmem:[%s9578_s15 + $0x230] sm:$0xff]  ;;  %v11044_v52 = vld [vmem:[%s9578_s15 + $0x238] sm:$0xff]  ;;  %v11051_v40 = vld [vmem:[%s9578_s15 + $0x2c0] sm:$0xff] }
 0xdd0   :  { %v6302_v42 = vrot.slane %v6301_v39, 1  ;;  %v6217_v27 = vadd.f32 %v10932_v9, %v6161_v30  ;;  %v6169_v31 = vadd.f32 %v6033_v41, %v10676_v48  ;;  %v6358_v48 = vld [vmem:[%s9573_s17] sm:$0xff]  ;;  %v11030_v41 = vld [vmem:[%s9578_s15 + $0x2b0] sm:$0xff]  ;;  %v11054_v37 = vld [vmem:[%s9578_s15 + $0x2c8] sm:$0xff] }
 0xdd1   :  { %v10986_v5 = vadd.f32 %v6293_v23, %v6292_v49  ;;  %v6272_v61 = vmul.f32 %v10956_v21, %v6216_v2  ;;  %v6224_v36 = vadd.f32 %v10948_v16, %v6168_v17  ;;  %v6366_v17 = vld [vmem:[%s9573_s17 + $0x40] sm:$0xff] }
 0xdd2   :  { %v6273_v62 = vmul.f32 %v10956_v21, %v6217_v27  ;;  %v6225_v50 = vadd.f32 %v10948_v16, %v6169_v31  ;;  %v10995_v38 = vadd.f32 %v6302_v42, %v6301_v39  ;;  %v11019_v39 = vld [vmem:[%s9578_s15 + $0x220] sm:$0xff]  ;;  %v11033_v42 = vld [vmem:[%s9578_s15 + $0x2b8] sm:$0xff] }
 0xdd3   :  { %v6305_v7 = vadd.f32 %v6304_v0, %v6272_v61  ;;  %v6280_v24 = vmul.f32 %v10962_v12, %v6224_v36  ;;  %v6390_v34 = vmul.f32 %v6358_v48, %v10986_v5  ;;  %v6375_v36 = vld [vmem:[%s9573_s17 + $0x88] sm:$0xff] }
 0xdd4   :  { %v6314_v54 = vadd.f32 %v6313_v35, %v6273_v62  ;;  %v6281_v32 = vmul.f32 %v10962_v12, %v6225_v50  ;;  %v6070_v43 = vpop.f32.mrb[104].mxu0  ;;  %v6391_v47 = vmul.f32 %v6359_v46, %v10995_v38  ;;  %v11022_v35 = vld [vmem:[%s9578_s15 + $0x228] sm:$0xff]  ;;  %v6399_v2 = vmul.f32 %v6367_v22, %v10995_v38 }
 0xdd5   :  { %v6306_v55 = vadd.f32 %v6305_v7, %v6280_v24  ;;  %v6146_v49 = vadd.f32 %v6070_v43, %v10688_v18  ;;  %v6072_v0 = vpop.f32.mrb[105].mxu0  ;;  %v9058_v18 = vpack.c.bf16 %v11006_v33, %v11003_v51  ;;  %v9060_v46 = vpack.c.bf16 %v11014_v15, %v11011_v10  ;;  %v11061_v51 = vld [vmem:[%s9578_s15 + $0x240] sm:$0xff]  ;;  %v11064_v33 = vld [vmem:[%s9578_s15 + $0x248] sm:$0xff] }
 0xdd6   :  { %v6315_v30 = vadd.f32 %v6314_v54, %v6281_v32  ;;  %v6147_v44 = vadd.f32 %v6072_v0, %v10691_v57  ;;  %v6074_v23 = vpop.f32.mrb[106].mxu0  ;;  %6614 = vmatprep.mubr.f32.mxu0 %v6391_v47  ;;  %v6398_v22 = vmul.f32 %v6366_v17, %v10986_v5  ;;  %v6407_v43 = vmul.f32 %v6375_v36, %v10995_v38  ;;  %v6374_v47 = vld [vmem:[%s9573_s17 + $0x80] sm:$0xff] }
 0xdd7   :  { %v6307_v27 = vrot.slane %v6306_v55, 4  ;;  %v6202_v31 = vadd.f32 %v10928_v26, %v6146_v49  ;;  %v6154_v57 = vadd.f32 %v6074_v23, %v10700_v58  ;;  %v6076_v61 = vpop.f32.mrb[107].mxu0  ;;  %6615 = vmatmul.mubr.f32.vlgmr.msra.gmra.mrb[112].mxu0 %v6390_v34  ;;  %v9062_v58 = vpack.c.bf16 %v11022_v35, %v11019_v39  ;;  %v6383_v49 = vld [vmem:[%s9573_s17 + $0xc8] sm:$0xff] }
 0xdd8   :  { %v6316_v62 = vrot.slane %v6315_v30, 4  ;;  %v6203_v50 = vadd.f32 %v10928_v26, %v6147_v44  ;;  %v6155_v48 = vadd.f32 %v6076_v61, %v10703_v59  ;;  %6619 = vmatprep.mubr.f32.mxu0 %v6399_v2  ;;  %9055 = vmatpush3.bf16.msra.mxu0 %v9054_v20  ;;  %v9064_v59 = vpack.c.bf16 %v11033_v42, %v11030_v41  ;;  %v11081_v44 = vld [vmem:[%s9578_s15 + $0x300] sm:$0xff]  ;;  %v11084_v23 = vld [vmem:[%s9578_s15 + $0x308] sm:$0xff] }
 0xdd9   :  { %v6308_v7 = vadd.f32 %v6307_v27, %v6306_v55  ;;  %v6210_v24 = vadd.f32 %v10930_v13, %v6154_v57  ;;  %9057 = vmatprep.subr.bf16.mxu0 %v9056_v45  ;;  %v9066_v20 = vpack.c.bf16 %v11044_v52, %v11041_v56  ;;  %v6258_v15 = vmul.f32 %v10935_v6, %v6202_v31  ;;  %v11089_v31 = vld [vmem:[%s9578_s15 + $0x2d0] sm:$0xff] }
 0xdda   :  { %v6317_v54 = vadd.f32 %v6316_v62, %v6315_v30  ;;  %v6211_v32 = vadd.f32 %v10930_v13, %v6155_v48  ;;  %v9068_v0 = vpack.c.bf16 %v11054_v37, %v11051_v40  ;;  %v6259_v45 = vmul.f32 %v10935_v6, %v6203_v50  ;;  %v6382_v48 = vld [vmem:[%s9573_s17 + $0xc0] sm:$0xff]  ;;  %v11181_v52 = vld [vmem:[%s9578_s15 + $0x2f0] sm:$0xff] }
 0xddb   :  { %v6309_v10 = vrot.slane %v6308_v7, 2  ;;  %v6266_v55 = vmul.f32 %v10943_v11, %v6210_v24  ;;  %6620 = vmatmul.mubr.f32.gmra.mrb[114].mxu0 %v6398_v22  ;;  %v9070_v30 = vpack.c.bf16 %v11064_v33, %v11061_v51  ;;  %v6406_v27 = vmul.f32 %v6374_v47, %v10986_v5 }
 0xddc   :  { %v6318_v34 = vrot.slane %v6317_v54, 2  ;;  %v6267_v39 = vmul.f32 %v10943_v11, %v6211_v32  ;;  %v6080_v35 = vpop.f32.mrb[108].mxu0  ;;  %6624 = vmatprep.mubr.f32.mxu0 %v6407_v43  ;;  %9059 = vmatpush3.bf16.msra.mxu0 %v9058_v18  ;;  %v11092_v18 = vld [vmem:[%s9578_s15 + $0x2d8] sm:$0xff]  ;;  %v6415_v50 = vmul.f32 %v6383_v49, %v10995_v38  ;;  %v9086_v22 = vpack.c.bf16 %v11084_v23, %v11081_v44  ;;  %v11108_v38 = vld [vmem:[%s9578_s15 + $0x250] sm:$0xff] }
 0xddd   :  { %v6310_v2 = vadd.f32 %v6309_v10, %v6308_v7  ;;  %v6322_v17 = vadd.f32 %v6266_v55, %v6258_v15  ;;  %v6162_v41 = vadd.f32 %v6080_v35, %v10715_v1  ;;  %v6082_v42 = vpop.f32.mrb[109].mxu0  ;;  %9061 = vmatprep.subr.bf16.mxu0 %v9060_v46  ;;  %v11115_v10 = vld [vmem:[%s9578_s15 + $0x258] sm:$0xff]  ;;  %v11118_v15 = vld [vmem:[%s9578_s15 + $0x310] sm:$0xff]  ;;  %v11133_v35 = vld [vmem:[%s9578_s15 + $0x2e8] sm:$0xff] }
 0xdde   :  { %v6319_v57 = vadd.f32 %v6318_v34, %v6317_v54  ;;  %v6331_v61 = vadd.f32 %v6267_v39, %v6259_v45  ;;  %v6163_v36 = vadd.f32 %v6082_v42, %v10718_v60  ;;  %v6084_v62 = vpop.f32.mrb[110].mxu0  ;;  %v11102_v54 = vld [vmem:[%s9578_s15 + $0x390] sm:$0xff]  ;;  %v11105_v60 = vld [vmem:[%s9578_s15 + $0x398] sm:$0xff]  ;;  %v11130_v39 = vld [vmem:[%s9578_s15 + $0x2e0] sm:$0xff] }
 0xddf   :  { %v6311_v1 = vrot.slane %v6310_v2, 1  ;;  %v6218_v7 = vadd.f32 %v10932_v9, %v6162_v41  ;;  %v6170_v46 = vadd.f32 %v6084_v62, %v10727_v63  ;;  %v6086_v24 = vpop.f32.mrb[111].mxu0  ;;  %6625 = vmatmul.mubr.f32.gmra.mrb[116].mxu0 %v6406_v27  ;;  %v9072_v63 = vpack.c.bf16 %v11092_v18, %v11089_v31  ;;  %v11121_v55 = vld [vmem:[%s9578_s15 + $0x318] sm:$0xff]  ;;  %v6360_v27 = vld [vmem:[%s9573_s17 + $0x10] sm:$0xff]  ;;  %v11143_v62 = vld [vmem:[%s9578_s15 + $0x3a0] sm:$0xff] }
 0xde0   :  { %v6320_v32 = vrot.slane %v6319_v57, 1  ;;  %v6219_v43 = vadd.f32 %v10932_v9, %v6163_v36  ;;  %v6171_v47 = vadd.f32 %v6086_v24, %v10730_v4  ;;  %6629 = vmatprep.mubr.f32.mxu0 %v6415_v50  ;;  %9063 = vmatpush3.bf16.msra.mxu0 %v9062_v58  ;;  %v6414_v58 = vmul.f32 %v6382_v48, %v10986_v5  ;;  %v6361_v45 = vld [vmem:[%s9573_s17 + $0x18] sm:$0xff]  ;;  %v11146_v5 = vld [vmem:[%s9578_s15 + $0x3a8] sm:$0xff] }
 0xde1   :  { %v11123_v49 = vadd.f32 %v6311_v1, %v6310_v2  ;;  %v6274_v34 = vmul.f32 %v10956_v21, %v6218_v7  ;;  %v6226_v4 = vadd.f32 %v10948_v16, %v6170_v46  ;;  %9065 = vmatprep.subr.bf16.mxu0 %v9064_v59  ;;  %v9088_v36 = vpack.c.bf16 %v11105_v60, %v11102_v54  ;;  %v6369_v48 = vld [vmem:[%s9573_s17 + $0x58] sm:$0xff]  ;;  %v11155_v7 = vld [vmem:[%s9578_s15 + $0x260] sm:$0xff]  ;;  %v11158_v46 = vld [vmem:[%s9578_s15 + $0x268] sm:$0xff] }
 0xde2   :  { %v6275_v41 = vmul.f32 %v10956_v21, %v6219_v43  ;;  %v6227_v2 = vadd.f32 %v10948_v16, %v6171_v47  ;;  %v11137_v42 = vadd.f32 %v6320_v32, %v6319_v57  ;;  %v9074_v1 = vpack.c.bf16 %v11115_v10, %v11108_v38  ;;  %v11168_v43 = vld [vmem:[%s9578_s15 + $0x320] sm:$0xff]  ;;  %v11171_v47 = vld [vmem:[%s9578_s15 + $0x328] sm:$0xff]  ;;  %v6385_v31 = vld [vmem:[%s9573_s17 + $0xd8] sm:$0xff] }
 0xde3   :  { %v6323_v59 = vadd.f32 %v6322_v17, %v6274_v34  ;;  %v6282_v50 = vmul.f32 %v10962_v12, %v6226_v4  ;;  %6630 = vmatmul.mubr.f32.gmra.mrb[118].mxu0 %v6414_v58  ;;  %v9090_v57 = vpack.c.bf16 %v11121_v55, %v11118_v15  ;;  %v9076_v32 = vpack.c.bf16 %v11133_v35, %v11130_v39 }
 0xde4   :  { %v6332_v24 = vadd.f32 %v6331_v61, %v6275_v41  ;;  %v6283_v54 = vmul.f32 %v10962_v12, %v6227_v2  ;;  %v6123_v17 = vpop.f32.mrb[144].mxu1  ;;  %9067 = vmatpush3.bf16.msra.mxu0 %v9066_v20  ;;  %v6393_v60 = vmul.f32 %v6361_v45, %v11137_v42  ;;  %v6392_v58 = vmul.f32 %v6360_v27, %v11123_v49  ;;  %v11184_v20 = vld [vmem:[%s9578_s15 + $0x2f8] sm:$0xff]  ;;  %v6368_v27 = vld [vmem:[%s9573_s17 + $0x50] sm:$0xff] }
 0xde5   :  { %v6324_v34 = vadd.f32 %v6323_v59, %v6282_v50  ;;  %v6148_v61 = vadd.f32 %v6123_v17, %v10742_v25  ;;  %v6125_v4 = vpop.f32.mrb[145].mxu1  ;;  %9069 = vmatprep.subr.bf16.mxu0 %v9068_v0  ;;  %v9092_v56 = vpack.c.bf16 %v11146_v5, %v11143_v62  ;;  %v6401_v2 = vmul.f32 %v6369_v48, %v11137_v42  ;;  %v11200_v48 = vld [vmem:[%s9578_s15 + $0x3b8] sm:$0xff] }
 0xde6   :  { %v6333_v45 = vadd.f32 %v6332_v24, %v6283_v54  ;;  %v6149_v25 = vadd.f32 %v6125_v4, %v10745_v8  ;;  %v6127_v41 = vpop.f32.mrb[146].mxu1  ;;  %6699 = vmatprep.mubr.f32.mxu1 %v6393_v60  ;;  %v9078_v40 = vpack.c.bf16 %v11158_v46, %v11155_v7  ;;  %v6377_v24 = vld [vmem:[%s9573_s17 + $0x98] sm:$0xff]  ;;  %v11197_v54 = vld [vmem:[%s9578_s15 + $0x3b0] sm:$0xff] }
 0xde7   :  { %v6325_v37 = vrot.slane %v6324_v34, 4  ;;  %v6204_v0 = vadd.f32 %v10928_v26, %v6148_v61  ;;  %v6156_v59 = vadd.f32 %v6127_v41, %v10754_v14  ;;  %v6129_v50 = vpop.f32.mrb[147].mxu1  ;;  %6700 = vmatmul.mubr.f32.vlgmr.msra.gmra.mrb[152].mxu1 %v6392_v58  ;;  %v9080_v14 = vpack.c.bf16 %v11184_v20, %v11181_v52  ;;  %v11210_v61 = vld [vmem:[%s9578_s15 + $0x270] sm:$0xff]  ;;  %v11213_v58 = vld [vmem:[%s9578_s15 + $0x278] sm:$0xff] }
 0xde8   :  { %v6334_v17 = vrot.slane %v6333_v45, 4  ;;  %v6205_v60 = vadd.f32 %v10928_v26, %v6149_v25  ;;  %v6157_v4 = vadd.f32 %v6129_v50, %v10757_v28  ;;  %6704 = vmatprep.mubr.f32.mxu1 %v6401_v2  ;;  %9071 = vmatpush3.bf16.msra.mxu0 %v9070_v30  ;;  %v6400_v28 = vmul.f32 %v6368_v27, %v11123_v49  ;;  %v6376_v26 = vld [vmem:[%s9573_s17 + $0x90] sm:$0xff]  ;;  %v6525_v25 = vld [vmem:[%s9578_s15 + $0x338] sm:$0xff] }
 0xde9   :  { %v6326_v41 = vadd.f32 %v6325_v37, %v6324_v34  ;;  %v6212_v8 = vadd.f32 %v10930_v13, %v6156_v59  ;;  %9087 = vmatpush3.bf16.msra.mxu1 %v9086_v22  ;;  %9073 = vmatprep.subr.bf16.mxu0 %v9072_v63  ;;  %v6409_v30 = vmul.f32 %v6377_v24, %v11137_v42  ;;  %v6543_v59 = vld [vmem:[%s9578_s15 + $0x3c8] sm:$0xff] }
 0xdea   :  { %v6335_v51 = vadd.f32 %v6334_v17, %v6333_v45  ;;  %v6213_v33 = vadd.f32 %v10930_v13, %v6157_v4  ;;  %9089 = vmatprep.subr.bf16.mxu1 %v9088_v36  ;;  %v9096_v34 = vpack.c.bf16 %v11200_v48, %v11197_v54  ;;  %v6260_v23 = vmul.f32 %v10935_v6, %v6204_v0  ;;  %v6524_v45 = vld [vmem:[%s9578_s15 + $0x330] sm:$0xff]  ;;  %v6527_v54 = vld [vmem:[%s9578_s15 + $0x348] sm:$0xff] }
 0xdeb   :  { %v6327_v44 = vrot.slane %v6326_v41, 2  ;;  %v6268_v22 = vmul.f32 %v10943_v11, %v6212_v8  ;;  %6705 = vmatmul.mubr.f32.gmra.mrb[154].mxu1 %v6400_v28  ;;  %v9082_v18 = vpack.c.bf16 %v11213_v58, %v11210_v61  ;;  %v6261_v63 = vmul.f32 %v10935_v6, %v6205_v60  ;;  %v6526_v8 = vld [vmem:[%s9578_s15 + $0x340] sm:$0xff]  ;;  %v6545_v60 = vld [vmem:[%s9578_s15 + $0x3d8] sm:$0xff] }
 0xdec   :  { %v6336_v13 = vrot.slane %v6335_v51, 2  ;;  %v6269_v36 = vmul.f32 %v10943_v11, %v6213_v33  ;;  %v6133_v52 = vpop.f32.mrb[148].mxu1  ;;  %6709 = vmatprep.mubr.f32.mxu1 %v6409_v30  ;;  %9075 = vmatpush3.bf16.msra.mxu0 %v9074_v1  ;;  %v6408_v20 = vmul.f32 %v6376_v26, %v11123_v49  ;;  %v6384_v11 = vld [vmem:[%s9573_s17 + $0xd0] sm:$0xff]  ;;  %v9098_v35 = vpack.c.bf16 %v6525_v25, %v6524_v45  ;;  %v6370_v26 = vld [vmem:[%s9573_s17 + $0x60] sm:$0xff]  ;;  %v6529_v30 = vld [vmem:[%s9578_s15 + $0x358] sm:$0xff] }
 0xded   :  { %v6328_v2 = vadd.f32 %v6327_v44, %v6326_v41  ;;  %v6340_v27 = vadd.f32 %v6268_v22, %v6260_v23  ;;  %v6164_v37 = vadd.f32 %v6133_v52, %v10769_v3  ;;  %9091 = vmatpush3.bf16.msra.mxu1 %v9090_v57  ;;  %v6135_v6 = vpop.f32.mrb[149].mxu1  ;;  %9077 = vmatprep.subr.bf16.mxu0 %v9076_v32  ;;  %v6542_v32 = vld [vmem:[%s9578_s15 + $0x3c0] sm:$0xff]  ;;  %v6528_v33 = vld [vmem:[%s9578_s15 + $0x350] sm:$0xff]  ;;  %v6547_v23 = vld [vmem:[%s9578_s15 + $0x3e8] sm:$0xff] }
 0xdee   :  { %v6337_v38 = vadd.f32 %v6336_v13, %v6335_v51  ;;  %v6349_v10 = vadd.f32 %v6269_v36, %v6261_v63  ;;  %v6165_v1 = vadd.f32 %v6135_v6, %v10772_v19  ;;  %v6137_v0 = vpop.f32.mrb[150].mxu1  ;;  %9093 = vmatprep.subr.bf16.mxu1 %v9092_v56  ;;  %v6417_v3 = vmul.f32 %v6385_v31, %v11137_v42  ;;  %v6546_v44 = vld [vmem:[%s9578_s15 + $0x3e0] sm:$0xff]  ;;  %v6531_v25 = vld [vmem:[%s9578_s15 + $0x368] sm:$0xff]  ;;  %v6549_v6 = vld [vmem:[%s9578_s15 + $0x3f8] sm:$0xff] }
 0xdef   :  { %v6329_v15 = vrot.slane %v6328_v2, 1  ;;  %v6220_v55 = vadd.f32 %v10932_v9, %v6164_v37  ;;  %v6172_v57 = vadd.f32 %v6137_v0, %v10777_v29  ;;  %v6139_v39 = vpop.f32.mrb[151].mxu1  ;;  %6710 = vmatmul.mubr.f32.gmra.mrb[156].mxu1 %v6408_v20  ;;  %v6416_v29 = vmul.f32 %v6384_v11, %v11123_v49  ;;  %v6378_v52 = vld [vmem:[%s9573_s17 + $0xa0] sm:$0xff]  ;;  %v6548_v37 = vld [vmem:[%s9578_s15 + $0x3f0] sm:$0xff] }
 0xdf0   :  { %v6338_v50 = vrot.slane %v6337_v38, 1  ;;  %v6221_v19 = vadd.f32 %v10932_v9, %v6165_v1  ;;  %v6173_v62 = vadd.f32 %v6139_v39, %v10780_v53  ;;  %6714 = vmatprep.mubr.f32.mxu1 %v6417_v3  ;;  %9079 = vmatpush3.bf16.msra.mxu0 %v9078_v40  ;;  %v11436_v9 = vpack.c.bf16 %v11171_v47, %v11168_v43  ;;  %v6363_v53 = vld [vmem:[%s9573_s17 + $0x28] sm:$0xff]  ;;  %v6362_v40 = vld [vmem:[%s9573_s17 + $0x20] sm:$0xff]  ;;  %v6544_v47 = vld [vmem:[%s9578_s15 + $0x3d0] sm:$0xff] }
 0xdf1   :  { %v11264_v42 = vadd.f32 %v6329_v15, %v6328_v2  ;;  %v6276_v5 = vmul.f32 %v10956_v21, %v6220_v55  ;;  %v6228_v56 = vadd.f32 %v10948_v16, %v6172_v57  ;;  %9081 = vmatprep.subr.bf16.mxu0 %v9080_v14  ;;  %v9100_v24 = vpack.c.bf16 %v6543_v59, %v6542_v32  ;;  %v6371_v43 = vld [vmem:[%s9573_s17 + $0x68] sm:$0xff]  ;;  %v6530_v45 = vld [vmem:[%s9578_s15 + $0x360] sm:$0xff]  ;;  %v6532_v57 = vld [vmem:[%s9578_s15 + $0x370] sm:$0xff] }
 0xdf2   :  { %9095 = vmatpush3.bf16.msra.mxu1 %v11436_v9  ;;  %v6277_v7 = vmul.f32 %v10956_v21, %v6221_v19  ;;  %v6229_v46 = vadd.f32 %v10948_v16, %v6173_v62  ;;  %v6339_v49 = vadd.f32 %v6338_v50, %v6337_v38  ;;  %v9102_v58 = vpack.c.bf16 %v6527_v54, %v6526_v8  ;;  %v6386_v15 = vld [vmem:[%s9573_s17 + $0xe0] sm:$0xff]  ;;  %v6533_v39 = vld [vmem:[%s9578_s15 + $0x378] sm:$0xff] }
 0xdf3   :  { %9097 = vmatprep.subr.bf16.mxu1 %v9096_v34  ;;  %v6341_v48 = vadd.f32 %v6340_v27, %v6276_v5  ;;  %v6284_v17 = vmul.f32 %v10962_v12, %v6228_v56  ;;  %6715 = vmatmul.mubr.f32.gmra.mrb[158].mxu1 %v6416_v29  ;;  %v6394_v61 = vmul.f32 %v6362_v40, %v11264_v42  ;;  %v6379_v34 = vld [vmem:[%s9573_s17 + $0xa8] sm:$0xff]  ;;  %v6365_v19 = vld [vmem:[%s9573_s17 + $0x38] sm:$0xff]  ;;  %v6364_v5 = vld [vmem:[%s9573_s17 + $0x30] sm:$0xff] }
 0xdf4   :  { %v6350_v4 = vadd.f32 %v6349_v10, %v6277_v7  ;;  %v6285_v21 = vmul.f32 %v10962_v12, %v6229_v46  ;;  %9083 = vmatpush3.bf16.msra.mxu0 %v9082_v18  ;;  %v6395_v16 = vmul.f32 %v6363_v53, %v6339_v49  ;;  %v6403_v28 = vmul.f32 %v6371_v43, %v6339_v49  ;;  %v6387_v27 = vld [vmem:[%s9573_s17 + $0xe8] sm:$0xff]  ;;  %v6373_v9 = vld [vmem:[%s9573_s17 + $0x78] sm:$0xff]  ;;  %v6372_v46 = vld [vmem:[%s9573_s17 + $0x70] sm:$0xff] }
 0xdf5   :  { %v6342_v14 = vadd.f32 %v6341_v48, %v6284_v17  ;;  %v9104_v51 = vpack.c.bf16 %v6545_v60, %v6544_v47  ;;  %v6402_v18 = vmul.f32 %v6370_v26, %v11264_v42  ;;  %v9106_v13 = vpack.c.bf16 %v6529_v30, %v6528_v33  ;;  %v6389_v8 = vld [vmem:[%s9573_s17 + $0xf8] sm:$0xff]  ;;  %v6388_v17 = vld [vmem:[%s9573_s17 + $0xf0] sm:$0xff]  ;;  %v6890_v47 = vld [vmem:[%s9583_s23] sm:$0xff] }
 0xdf6   :  { %9099 = vmatpush3.bf16.msra.mxu1 %v9098_v35  ;;  %v6351_v41 = vadd.f32 %v6350_v4, %v6285_v21  ;;  %6784 = vmatprep.mubr.f32.mxu0 %v6395_v16  ;;  %v6411_v36 = vmul.f32 %v6379_v34, %v6339_v49  ;;  %v9108_v20 = vpack.c.bf16 %v6547_v23, %v6546_v44  ;;  %v7027_v60 = vld [vmem:[%s9588_s1] sm:$0xff]  ;;  %v7028_v4 = vld [vmem:[%s9588_s1 + $0x8] sm:$0xff]  ;;  %v7029_v21 = vld [vmem:[%s9588_s1 + $0x10] sm:$0xff] }
 0xdf7   :  { %9101 = vmatprep.subr.bf16.mxu1 %v9100_v24  ;;  %v6343_v12 = vrot.slane %v6342_v14, 4  ;;  %6785 = vmatmul.mubr.f32.vlgmr.msra.gmra.mrb[120].mxu0 %v6394_v61  ;;  %v6410_v10 = vmul.f32 %v6378_v52, %v11264_v42  ;;  %v9110_v1 = vpack.c.bf16 %v6531_v25, %v6530_v45  ;;  %v6419_v3 = vmul.f32 %v6387_v27, %v6339_v49  ;;  %v6380_v24 = vld [vmem:[%s9573_s17 + $0xb0] sm:$0xff] }
 0xdf8   :  { %v6352_v22 = vrot.slane %v6351_v41, 4  ;;  %6789 = vmatprep.mubr.f32.mxu0 %v6403_v28  ;;  %v9112_v55 = vpack.c.bf16 %v6549_v6, %v6548_v37  ;;  %v6418_v59 = vmul.f32 %v6386_v15, %v11264_v42  ;;  %v9114_v50 = vpack.c.bf16 %v6533_v39, %v6532_v57  ;;  %v6381_v42 = vld [vmem:[%s9573_s17 + $0xb8] sm:$0xff]  ;;  %s9379_s17 = smov [#allocation3]  }
 0xdf9   :  { %v6344_v31 = vadd.f32 %v6343_v12, %v6342_v14  ;;  %v9124_v16 = vpack.c.bf16 %v7028_v4, %v7027_v60  ;;  %v7030_v14 = vld [vmem:[%s9588_s1 + $0x18] sm:$0xff]  ;;  %s7183_s15 = sshll.u32 %s9379_s17, 4  ;;  %s7184_s15 = int_to_ptr.vmem [resolvable:$true] %s7183_s15 }
 0xdfa   :  { %9103 = vmatpush3.bf16.msra.mxu1 %v9102_v58  ;;  %v6353_v63 = vadd.f32 %v6352_v22, %v6351_v41  ;;  %v9128_v61 = vpack.c.bf16 %v7030_v14, %v7029_v21  ;;  %v6891_v14 = vld [vmem:[%s9583_s23 + $0x8] sm:$0xff]  ;;  %p9317_p1 = scmp.lt.s32.totalorder %s7184_s15, %s7184_s15 }
 0xdfb   :  { %9105 = vmatprep.subr.bf16.mxu1 %v9104_v51  ;;  %v6345_v2 = vrot.slane %v6344_v31, 2  ;;  %6790 = vmatmul.mubr.f32.gmra.mrb[122].mxu0 %v6402_v18 }
 0xdfc   :  { %v6354_v11 = vrot.slane %v6353_v63, 2  ;;  %6794 = vmatprep.mubr.f32.mxu0 %v6411_v36 }
 0xdfd   :  { %v6346_v38 = vadd.f32 %v6345_v2, %v6344_v31 }
 0xdfe   :  { %9107 = vmatpush3.bf16.msra.mxu1 %v9106_v13  ;;  %v6355_v0 = vadd.f32 %v6354_v11, %v6353_v63 }
 0xdff   :  { %9109 = vmatprep.subr.bf16.mxu1 %v9108_v20  ;;  %v6347_v35 = vrot.slane %v6346_v38, 1  ;;  %6795 = vmatmul.mubr.f32.gmra.mrb[124].mxu0 %v6410_v10 }
 0xe00   :  { %v6356_v32 = vrot.slane %v6355_v0, 1  ;;  %6799 = vmatprep.mubr.f32.mxu0 %v6419_v3 }
 0xe01   :  { %v6348_v62 = vadd.f32 %v6347_v35, %v6346_v38 }
 0xe02   :  { %9111 = vmatpush3.bf16.msra.mxu1 %v9110_v1  ;;  %v6357_v29 = vadd.f32 %v6356_v32, %v6355_v0 }
 0xe03   :  { %9113 = vmatprep.subr.bf16.mxu1 %v9112_v55  ;;  %6800 = vmatmul.mubr.f32.gmra.mrb[126].mxu0 %v6418_v59  ;;  %v6396_v53 = vmul.f32 %v6364_v5, %v6348_v62  ;;  %v6404_v49 = vmul.f32 %v6372_v46, %v6348_v62  ;;  %v6412_v54 = vmul.f32 %v6380_v24, %v6348_v62 }
 0xe04   :  { %v6397_v56 = vmul.f32 %v6365_v19, %v6357_v29  ;;  %v6405_v7 = vmul.f32 %v6373_v9, %v6357_v29  ;;  %v6413_v40 = vmul.f32 %v6381_v42, %v6357_v29  ;;  %v6421_v48 = vmul.f32 %v6389_v8, %v6357_v29  ;;  %8708 = vmatprep.mubr.msk.f32.mxu0 %vm1439_vm3, %v6890_v47 }
 0xe05   :  { %v6420_v43 = vmul.f32 %v6388_v17, %v6348_v62 }
 0xe06   :  { %9115 = vmatpush3.bf16.msra.mxu1 %v9114_v50  ;;  %6869 = vmatprep.mubr.f32.mxu1 %v6397_v56 }
 0xe07   :  { %9125 = vmatprep.subr.bf16.mxu1 %v9124_v16 }
 0xe09   :  { %6870 = vmatmul.mubr.f32.vlgmr.msra.gmra.mrb[160].mxu1 %v6396_v53 }
 0xe0a   :  { %6874 = vmatprep.mubr.f32.mxu1 %v6405_v7  ;;  %9127 = vmatpush3.bf16.msra.mxu1 %v9124_v16 }
 0xe0b   :  { %9129 = vmatprep.subr.bf16.mxu1 %v9128_v61 }
 0xe0d   :  { %6875 = vmatmul.mubr.f32.gmra.mrb[162].mxu1 %v6404_v49 }
 0xe0e   :  { %6879 = vmatprep.mubr.f32.mxu1 %v6413_v40  ;;  %9131 = vmatpush3.bf16.msra.mxu1 %v9128_v61  ;;  %v6892_v61 = vld [vmem:[%s9583_s23 + $0x10] sm:$0xff] }
 0xe11   :  { %6880 = vmatmul.mubr.f32.gmra.mrb[164].mxu1 %v6412_v54 }
 0xe12   :  { %6884 = vmatprep.mubr.f32.mxu1 %v6421_v48 }
 0xe15   :  { %6885 = vmatmul.mubr.f32.gmra.mrb[166].mxu1 %v6420_v43 }
 0xeaa   :  { %v8018_v58 = vpop.f32.mrb[112].mxu0 }
 0xeab   :  { %v8019_v41 = vpop.f32.mrb[113].mxu0 }
 0xeac   :  { %v8020_v28 = vadd.f32 %v8019_v41, %v8018_v58  ;;  %v6893_v58 = vld [vmem:[%s9583_s23 + $0x18] sm:$0xff]  ;;  %v6894_v41 = vld [vmem:[%s9583_s23 + $0x20] sm:$0xff] }
 0xeae   :  { %v8021_v26 = vpop.f32.mrb[114].mxu0 }
 0xeaf   :  { %v8022_v51 = vpop.f32.mrb[115].mxu0 }
 0xeb0   :  { %v8023_v33 = vadd.f32 %v8022_v51, %v8021_v26  ;;  %v6896_v26 = vld [vmem:[%s9583_s23 + $0x30] sm:$0xff]  ;;  %v6897_v51 = vld [vmem:[%s9583_s23 + $0x38] sm:$0xff] }
 0xeb2   :  { %v8024_v30 = vpop.f32.mrb[116].mxu0 }
 0xeb3   :  { %v8025_v12 = vpop.f32.mrb[117].mxu0 }
 0xeb4   :  { %v8026_v34 = vadd.f32 %v8025_v12, %v8024_v30 }
 0xeb6   :  { %v8027_v44 = vpop.f32.mrb[118].mxu0 }
 0xeb7   :  { %v8028_v23 = vpop.f32.mrb[119].mxu0 }
 0xeb8   :  { %v8029_v22 = vadd.f32 %v8028_v23, %v8027_v44 }
 0xeba   :  { %v8062_v31 = vpop.f32.mrb[152].mxu1 }
 0xebb   :  { %v8063_v18 = vpop.f32.mrb[153].mxu1 }
 0xebc   :  { %v8064_v13 = vadd.f32 %v8063_v18, %v8062_v31  ;;  %v7039_v18 = vpop.permute.xlu0 %7038 }
 0xebe   :  { %v6702_v63 = vadd.f32 %v8064_v13, %v8020_v28  ;;  %v8065_v36 = vpop.f32.mrb[154].mxu1  ;;  %v6895_v28 = vld [vmem:[%s9583_s23 + $0x28] sm:$0xff]  ;;  %s9312_s23 = scalar_lea.vmem %s7184_s15, 1024 }
 0xebf   :  { %v8066_v52 = vpop.f32.mrb[155].mxu1  ;;  %p9313_p0 = scmp.ne.s32.totalorder %s7184_s15, %s9312_s23  ;;  %p9318_p2 = scmp.lt.s32.totalorder %s9312_s23, %s9312_s23 }
 0xec0   :  { %v8067_v20 = vadd.f32 %v8066_v52, %v8065_v36 }
 0xec1   :  { %p9319_p3 = por %p9318_p2, %p9317_p1 }
 0xec2   :  { %v6707_v45 = vadd.f32 %v8067_v20, %v8023_v33  ;;  %v8068_v25 = vpop.f32.mrb[156].mxu1 }
 0xec3   :  { %v8069_v2 = vpop.f32.mrb[157].mxu1  ;;  %p9320_p4 = pnand %p9319_p3, %p9313_p0 }
 0xec4   :  { %v8070_v27 = vadd.f32 %v8069_v2, %v8068_v25 }
 0xec6   :  { %v6712_v37 = vadd.f32 %v8070_v27, %v8026_v34  ;;  %v8071_v6 = vpop.f32.mrb[158].mxu1 }
 0xec7   :  { %v8072_v11 = vpop.f32.mrb[159].mxu1 }
 0xec8   :  { %v8073_v38 = vadd.f32 %v8072_v11, %v8071_v6 }
 0xeca   :  { %v6717_v10 = vadd.f32 %v8073_v38, %v8029_v22  ;;  %v8106_v1 = vpop.f32.mrb[120].mxu0 }
 0xecb   :  { %v8107_v0 = vpop.f32.mrb[121].mxu0 }
 0xecc   :  { %v8108_v3 = vadd.f32 %v8107_v0, %v8106_v1 }
 0xece   :  { %v6787_v15 = vadd.f32 %v8108_v3, %v6702_v63  ;;  %v8109_v55 = vpop.f32.mrb[122].mxu0 }
 0xecf   :  { %v8110_v57 = vpop.f32.mrb[123].mxu0 }
 0xed0   :  { %v8111_v39 = vadd.f32 %v8110_v57, %v8109_v55 }
 0xed2   :  { %v6792_v35 = vadd.f32 %v8111_v39, %v6707_v45  ;;  %v8112_v32 = vpop.f32.mrb[124].mxu0 }
 0xed3   :  { %v8113_v59 = vpop.f32.mrb[125].mxu0 }
 0xed4   :  { %v8114_v50 = vadd.f32 %v8113_v59, %v8112_v32 }
 0xed6   :  { %v6797_v19 = vadd.f32 %v8114_v50, %v6712_v37  ;;  %v8115_v62 = vpop.f32.mrb[126].mxu0 }
 0xed7   :  { %v8116_v29 = vpop.f32.mrb[127].mxu0 }
 0xed8   :  { %v8117_v5 = vadd.f32 %v8116_v29, %v8115_v62 }
 0xeda   :  { %v6802_v56 = vadd.f32 %v8117_v5, %v6717_v10 }
 0xedc   :  { %v8150_v9 = vpop.f32.mrb[160].mxu1 }
 0xedd   :  { %v8151_v53 = vpop.f32.mrb[161].mxu1 }
 0xede   :  { %v8152_v7 = vadd.f32 %v8151_v53, %v8150_v9 }
 0xee0   :  { %v6872_v46 = vadd.f32 %v8152_v7, %v6787_v15  ;;  %v8153_v42 = vpop.f32.mrb[162].mxu1 }
 0xee1   :  { %v8154_v49 = vpop.f32.mrb[163].mxu1 }
 0xee2   :  { %v8155_v40 = vadd.f32 %v8154_v49, %v8153_v42 }
 0xee4   :  { %v6877_v24 = vadd.f32 %v8155_v40, %v6792_v35  ;;  %v8156_v8 = vpop.f32.mrb[164].mxu1 }
 0xee5   :  { %v8157_v54 = vpop.f32.mrb[165].mxu1 }
 0xee6   :  { %v8158_v48 = vadd.f32 %v8157_v54, %v8156_v8  ;;  %v9116_v17 = vpack.c.bf16 %v6877_v24, %v6872_v46 }
 0xee8   :  { %v6882_v43 = vadd.f32 %v8158_v48, %v6797_v19  ;;  %v8159_v47 = vpop.f32.mrb[166].mxu1  ;;  %9117 = vmatprep.subr.bf16.mxu0 %v9116_v17 }
 0xee9   :  { %v8160_v60 = vpop.f32.mrb[167].mxu1  ;;  %9119 = vmatpush3.bf16.msra.mxu0 %v9116_v17 }
 0xeea   :  { %v8161_v4 = vadd.f32 %v8160_v60, %v8159_v47 }
 0xeec   :  { %v6887_v21 = vadd.f32 %v8161_v4, %v6802_v56 }
 0xeee   :  { %v9120_v16 = vpack.c.bf16 %v6887_v21, %v6882_v43 }
 0xef0   :  { %9121 = vmatprep.subr.bf16.mxu0 %v9120_v16 }
 0xef1   :  { %9123 = vmatpush3.bf16.msra.mxu0 %v9120_v16 }
 0xef4   :  { %8709 = vmatmul.mubr.msk.f32.vlgmr.msra.gmra.mrb[128].mxu0 %vm1439_vm3, %v6891_v14 }
 0xef5   :  { %8711 = vmatprep.mubr.msk.f32.mxu0 %vm1439_vm3, %v6892_v61 }
 0xef8   :  { %8712 = vmatmul.mubr.msk.f32.gmra.mrb[130].mxu0 %vm1439_vm3, %v6893_v58 }
 0xef9   :  { %8714 = vmatprep.mubr.msk.f32.mxu0 %vm1439_vm3, %v6894_v41 }
 0xefc   :  { %8715 = vmatmul.mubr.msk.f32.gmra.mrb[132].mxu0 %vm1439_vm3, %v6895_v28 }
 0xefd   :  { %8717 = vmatprep.mubr.msk.f32.mxu0 %vm1439_vm3, %v6896_v26 }
 0xf00   :  { %8718 = vmatmul.mubr.msk.f32.gmra.mrb[134].mxu0 %vm1439_vm3, %v6897_v51 }
 0xfc7   :  { %v8710_v33 = vpop.f32.mrb[128].mxu0 }
 0xfc8   :  { %v6988_v30 = vpop.f32.mrb[129].mxu0 }
 0xfc9   :  { %8728 = vmatprep.mubr.msk.f32.mxu1 %vm1439_vm3, %v6988_v30 }
 0xfca   :  { %8729 = vmatmul.mubr.msk.f32.vlgmr.msra.gmra.mrb[168].mxu1 %vm1439_vm3, %v8710_v33 }
 0xfcb   :  { %v8713_v12 = vpop.f32.mrb[130].mxu0 }
 0xfcc   :  { %v6998_v34 = vpop.f32.mrb[131].mxu0 }
 0xfcd   :  { %8731 = vmatprep.mubr.msk.f32.mxu1 %vm1439_vm3, %v6998_v34 }
 0xfce   :  { %8732 = vmatmul.mubr.msk.f32.gmra.mrb[170].mxu1 %vm1439_vm3, %v8713_v12 }
 0xfcf   :  { %v8716_v44 = vpop.f32.mrb[132].mxu0 }
 0xfd0   :  { %v7008_v23 = vpop.f32.mrb[133].mxu0 }
 0xfd1   :  { %8734 = vmatprep.mubr.msk.f32.mxu1 %vm1439_vm3, %v7008_v23 }
 0xfd2   :  { %8735 = vmatmul.mubr.msk.f32.gmra.mrb[172].mxu1 %vm1439_vm3, %v8716_v44 }
 0xfd3   :  { %v8719_v22 = vpop.f32.mrb[134].mxu0 }
 0xfd4   :  { %v7018_v31 = vpop.f32.mrb[135].mxu0 }
 0xfd5   :  { %8737 = vmatprep.mubr.msk.f32.mxu1 %vm1439_vm3, %v7018_v31 }
 0xfd6   :  { %8738 = vmatmul.mubr.msk.f32.gmra.mrb[174].mxu1 %vm1439_vm3, %v8719_v22 }
0x109d   :  { %v8730_v13 = vpop.f32.mrb[168].mxu1 }
0x109e   :  { %v7137_v63 = vadd.f32 %v8730_v13, %v7039_v18  ;;  %v7131_v36 = vpop.f32.mrb[169].mxu1 }
0x109f   :  { %v7132_v52 = vadd.f32 %v7131_v36, %v7039_v18 }
0x10a0   :  { %7171 = vst.msk [vmem:[#allocation3 + $0x8] sm:$0xff] %vm284_vm0, %v7137_v63 }
0x10a1   :  { %7170 = vst.msk [vmem:[#allocation3] sm:$0xff] %vm284_vm0, %v7132_v52  ;;  %v8733_v20 = vpop.f32.mrb[170].mxu1 }
0x10a2   :  { %v7147_v45 = vadd.f32 %v8733_v20, %v7039_v18  ;;  %v7141_v25 = vpop.f32.mrb[171].mxu1 }
0x10a3   :  { %v7142_v2 = vadd.f32 %v7141_v25, %v7039_v18 }
0x10a4   :  { %7173 = vst.msk [vmem:[#allocation3 + $0x18] sm:$0xff] %vm284_vm0, %v7147_v45 }
0x10a5   :  { %7172 = vst.msk [vmem:[#allocation3 + $0x10] sm:$0xff] %vm284_vm0, %v7142_v2  ;;  %v8736_v27 = vpop.f32.mrb[172].mxu1 }
0x10a6   :  { %v7157_v37 = vadd.f32 %v8736_v27, %v7039_v18  ;;  %v7151_v6 = vpop.f32.mrb[173].mxu1 }
0x10a7   :  { %v7152_v11 = vadd.f32 %v7151_v6, %v7039_v18 }
0x10a8   :  { %7175 = vst.msk [vmem:[#allocation3 + $0x28] sm:$0xff] %vm284_vm0, %v7157_v37 }
0x10a9   :  { %7174 = vst.msk [vmem:[#allocation3 + $0x20] sm:$0xff] %vm284_vm0, %v7152_v11  ;;  %v8739_v38 = vpop.f32.mrb[174].mxu1 }
0x10aa   :  { %v7167_v10 = vadd.f32 %v8739_v38, %v7039_v18  ;;  %v7161_v1 = vpop.f32.mrb[175].mxu1 }
0x10ab   :  { %v7162_v0 = vadd.f32 %v7161_v1, %v7039_v18 }
0x10ac   :  { %7177 = vst.msk [vmem:[#allocation3 + $0x38] sm:$0xff] %vm284_vm0, %v7167_v10 }
0x10ad   :  { %7176 = vst.msk [vmem:[#allocation3 + $0x30] sm:$0xff] %vm284_vm0, %v7162_v0 }
0x10ae   :  { %9323 = shalt.err (!%p9320_p4)
}
0x10af   :  { %s9324_s26 = scalar_lea.hbm %s9593_s7, 1024 }
0x10b0   :  { %p9325_p5 = scmp.ne.s32.totalorder %s9593_s7, %s9324_s26  ;;  %p9328_p6 = scmp.lt.u32.totalorder %s9324_s26, %s9593_s7 }
0x10b2   :  { %p9330_p7 = pnand %p9328_p6, %p9325_p5 }
0x10b4   :  { %9333 = shalt.err (!%p9330_p7)
}
0x10b5   :  { %s9380_s1 = smov 128   ;;  %s9381_s8 = smov 8  }
0x10b6   :  { %7189 = dma.vmem_to_hbm [thread:$0]  %s7184_s15, 1024, %s9593_s7, [#allocation4], %s9380_s1, %s9380_s1, %s9381_s8  }
0x10b7   :  { %9334 = dma.done.wait [#allocation4], 1024  }
0x10b8   :  { %9335 = vsyncadd [#allocation4], 4294966272 }
0x10b9   :  { %7193 = vsyncpa [#allocation4], 1 }

</bundles_post_ra>
